<compile_context>
chip_gen: v6e
topology: v6e:2x2x1
jax: 0.10.0
libtpu: 0.0.40
codegen_flags: <defaults>
</compile_context>

<pallas_src>
import functools

import jax
import jax.numpy as jnp
from jax.experimental import pallas as pl
from jax.experimental.pallas import tpu as pltpu


def _round_up(x, m):
    return ((x + m - 1) // m) * m


# ----------------------------------------------------------------------------
# Pallas kernel 1: 1x1 convolution == pixel-tiled matmul + bias
# ----------------------------------------------------------------------------
def _matmul_bias_kernel(x_ref, w_ref, b_ref, o_ref):
    # x: (TM, Cin), w: (Cin, Cout), b: (1, Cout)
    acc = jnp.dot(x_ref[...], w_ref[...], preferred_element_type=jnp.float32)
    o_ref[...] = (acc + b_ref[...]).astype(o_ref.dtype)


def conv1x1_pixels(x_pix, w, b, *, tile_m=512):
    """x_pix: (N, Cin) pixel-major; w: (Cin, Cout); b: (Cout,) -> (N, Cout)."""
    N, Cin = x_pix.shape
    Cout = w.shape[1]
    tm = min(tile_m, _round_up(N, 8))
    Np = _round_up(N, tm)
    if Np != N:
        x_pix = jnp.pad(x_pix, ((0, Np - N), (0, 0)))
    b2 = b.reshape(1, Cout)

    cost = pl.CostEstimate(
        flops=2 * Np * Cin * Cout,
        transcendentals=0,
        bytes_accessed=4 * (Np * Cin + Np * Cout + Cin * Cout + Cout),
    )
    y = pl.pallas_call(
        _matmul_bias_kernel,
        out_shape=jax.ShapeDtypeStruct((Np, Cout), x_pix.dtype),
        grid=(Np // tm,),
        in_specs=[
            pl.BlockSpec((tm, Cin), lambda i: (i, 0)),
            pl.BlockSpec((Cin, Cout), lambda i: (0, 0)),
            pl.BlockSpec((1, Cout), lambda i: (0, 0)),
        ],
        out_specs=pl.BlockSpec((tm, Cout), lambda i: (i, 0)),
        compiler_params=pltpu.CompilerParams(
            dimension_semantics=("parallel",),
            vmem_limit_bytes=32 * 1024 * 1024,
        ),
        cost_estimate=cost,
    )(x_pix, w, b2)
    return y[:N] if Np != N else y


# ----------------------------------------------------------------------------
# Pallas kernel 2: batched per-window attention (QK^T * inv_scale -> softmax -> @V)
# ----------------------------------------------------------------------------
def _window_attn_kernel(q_ref, k_ref, v_ref, o_ref, *, inv_scale):
    q = q_ref[...].astype(jnp.float32) * inv_scale                    # (WB, P, Cq)
    k = k_ref[...].astype(jnp.float32)                                # (WB, Cq, P)
    v = v_ref[...].astype(jnp.float32)                                # (WB, P, Cv)
    s = jnp.einsum("bpc,bck->bpk", q, k,
                   preferred_element_type=jnp.float32)                # (WB, P, P)
    s = s - jnp.max(s, axis=-1, keepdims=True)
    p = jnp.exp(s)
    denom = jnp.sum(p, axis=-1, keepdims=True)                        # (WB, P, 1)
    out = jnp.einsum("bpk,bkc->bpc", p, v,
                     preferred_element_type=jnp.float32)              # (WB, P, Cv)
    o_ref[...] = (out * pl.reciprocal(denom, approx=True)).astype(o_ref.dtype)


def window_attention(qw, kw, vw, scale, *, window_block=16):
    """qw: (NW, P, Cq), kw: (NW, Cq, P), vw: (NW, P, Cv) -> (NW, P, Cv)."""
    NW, P, Cq = qw.shape
    Cv = vw.shape[-1]
    wb = min(window_block, NW)
    NWp = _round_up(NW, wb)
    if NWp != NW:  # pad with zero windows (harmless; sliced off below)
        qw = jnp.pad(qw, ((0, NWp - NW), (0, 0), (0, 0)))
        kw = jnp.pad(kw, ((0, NWp - NW), (0, 0), (0, 0)))
        vw = jnp.pad(vw, ((0, NWp - NW), (0, 0), (0, 0)))

    kernel = functools.partial(_window_attn_kernel, inv_scale=1.0 / float(scale))
    cost = pl.CostEstimate(
        flops=NWp * (2 * P * P * Cq + 2 * P * P * Cv + 4 * P * P),
        transcendentals=NWp * P * P,
        bytes_accessed=4 * NWp * (2 * P * Cq + 2 * P * Cv),
    )
    out = pl.pallas_call(
        kernel,
        out_shape=jax.ShapeDtypeStruct((NWp, P, Cv), qw.dtype),
        grid=(NWp // wb,),
        in_specs=[
            pl.BlockSpec((wb, P, Cq), lambda i: (i, 0, 0)),
            pl.BlockSpec((wb, Cq, P), lambda i: (i, 0, 0)),
            pl.BlockSpec((wb, P, Cv), lambda i: (i, 0, 0)),
        ],
        out_specs=pl.BlockSpec((wb, P, Cv), lambda i: (i, 0, 0)),
        compiler_params=pltpu.CompilerParams(
            dimension_semantics=("parallel",),
            vmem_limit_bytes=32 * 1024 * 1024,
        ),
        cost_estimate=cost,
    )(qw, kw, vw)
    return out[:NW] if NWp != NW else out


# ----------------------------------------------------------------------------
# Module forward pass (EfficientAttentionBlock.forward, return_attention=False)
# ----------------------------------------------------------------------------
def efficient_attention_block(encoder_output, decoder_output, params, window_size):
    B, Cd, H, W = decoder_output.shape
    Ce = encoder_output.shape[1]
    Cq = Cd // 2
    ws = window_size
    scale = float(Cq) ** 0.5

    # One NCHW -> pixel-major pass per input tensor.
    dec_pix = jnp.transpose(decoder_output, (0, 2, 3, 1)).reshape(B * H * W, Cd)
    enc_pix = jnp.transpose(encoder_output, (0, 2, 3, 1)).reshape(B * H * W, Ce)

    # Query projection; key+value fused into one kernel (shared encoder read).
    q_pix = conv1x1_pixels(dec_pix, params["wq"].T, params["bq"])          # (N, Cq)
    w_kv = jnp.concatenate([params["wk"], params["wv"]], axis=0).T         # (Ce, Cq+Cd)
    b_kv = jnp.concatenate([params["bk"], params["bv"]], axis=0)
    kv_pix = conv1x1_pixels(enc_pix, w_kv, b_kv)                           # (N, Cq+Cd)

    pad_h = (ws - H % ws) % ws
    pad_w = (ws - W % ws) % ws
    Hn, Wn = H + pad_h, W + pad_w
    nH, nW = Hn // ws, Wn // ws
    P = ws * ws
    NW = B * nH * nW

    def to_windows(x_pix, C):
        # pixel-major -> (B, nH, nW, C, ws, ws)   (== PyTorch permute(0,2,4,1,3,5))
        x = x_pix.reshape(B, H, W, C)
        if pad_h or pad_w:
            x = jnp.pad(x, ((0, 0), (0, pad_h), (0, pad_w), (0, 0)))
        x = x.reshape(B, nH, ws, nW, ws, C)
        return jnp.transpose(x, (0, 1, 3, 5, 2, 4))

    q_win = to_windows(q_pix, Cq)                  # (B, nH, nW, Cq,    ws, ws)
    kv_win = to_windows(kv_pix, Cq + Cd)           # (B, nH, nW, Cq+Cd, ws, ws)

    # Reproduce PyTorch's .view() raw reinterpretation of the contiguous
    # (C, ws, ws) window block as (ws*ws, C) for query/value, (C, ws*ws) for key.
    qw = q_win.reshape(NW, P, Cq)
    kw = kv_win[:, :, :, :Cq].reshape(NW, Cq, P)
    vw = kv_win[:, :, :, Cq:].reshape(NW, P, Cd)

    refined = window_attention(qw, kw, vw, scale)  # (NW, P, Cd)

    refined = refined.reshape(B, nH, nW, Cd, ws, ws)
    refined = jnp.transpose(refined, (0, 3, 1, 4, 2, 5)).reshape(B, Cd, Hn, Wn)
    if pad_h or pad_w:
        refined = refined[:, :, :H, :W]
    # TODO(synk): residual add left to XLA so it fuses with the un-windowing transpose.
    return refined + decoder_output


# ----------------------------------------------------------------------------
# Pure-JAX reference (faithful transcription of the PyTorch forward)
# ----------------------------------------------------------------------------
def reference_forward(encoder_output, decoder_output, params, window_size):
    def conv_ref(x, w, b):
        return jnp.einsum("bchw,oc->bohw", x, w) + b[None, :, None, None]

    B, Cd, H, W = decoder_output.shape
    Cq = Cd // 2
    ws = window_size
    scale = float(Cq) ** 0.5
    q = conv_ref(decoder_output, params["wq"], params["bq"])
    k = conv_ref(encoder_output, params["wk"], params["bk"])
    v = conv_ref(encoder_output, params["wv"], params["bv"])
    pad_h = (ws - H % ws) % ws
    pad_w = (ws - W % ws) % ws
    if pad_h or pad_w:
        pad = ((0, 0), (0, 0), (0, pad_h), (0, pad_w))
        q, k, v = jnp.pad(q, pad), jnp.pad(k, pad), jnp.pad(v, pad)
    Hn, Wn = H + pad_h, W + pad_w
    nH, nW = Hn // ws, Wn // ws
    P = ws * ws

    def win(x):
        C = x.shape[1]
        return jnp.transpose(x.reshape(B, C, nH, ws, nW, ws), (0, 2, 4, 1, 3, 5))

    qw = win(q).reshape(B, nH * nW, P, Cq)
    kw = win(k).reshape(B, nH * nW, Cq, P)
    vw = win(v).reshape(B, nH * nW, P, Cd)
    att = jax.nn.softmax(jnp.matmul(qw, kw) / scale, axis=-1)
    ref = jnp.matmul(att, vw)
    ref = ref.reshape(B, nH, nW, Cd, ws, ws)
    ref = jnp.transpose(ref, (0, 3, 1, 4, 2, 5)).reshape(B, Cd, Hn, Wn)
    if pad_h or pad_w:
        ref = ref[:, :, :H, :W]
    return ref + decoder_output


# ----------------------------------------------------------------------------
if __name__ == "__main__":
    # Small shapes consistent with the module; H=W=36 exercises the spatial
    # padding path and NW=50 exercises the window-batch padding path.
    B = 2
    encoder_channels = 16
    decoder_channels = 16
    window_size = 8
    H = W = 36

    root = jax.random.PRNGKey(0)
    ks = jax.random.split(root, 8)
    Cq = decoder_channels // 2

    params = {
        "wq": 0.1 * jax.random.normal(ks[0], (Cq, decoder_channels), jnp.float32),
        "bq": 0.1 * jax.random.normal(ks[1], (Cq,), jnp.float32),
        "wk": 0.1 * jax.random.normal(ks[2], (Cq, encoder_channels), jnp.float32),
        "bk": 0.1 * jax.random.normal(ks[3], (Cq,), jnp.float32),
        "wv": 0.1 * jax.random.normal(ks[4], (decoder_channels, encoder_channels), jnp.float32),
        "bv": 0.1 * jax.random.normal(ks[5], (decoder_channels,), jnp.float32),
    }

    encoder_output = jax.random.normal(ks[6], (B, encoder_channels, H, W), jnp.float32)
    decoder_output = jax.random.normal(ks[7], (B, decoder_channels, H, W), jnp.float32)

    fwd = jax.jit(functools.partial(efficient_attention_block, window_size=window_size))
    out = jax.block_until_ready(fwd(encoder_output, decoder_output, params))

    ref = jax.block_until_ready(
        reference_forward(encoder_output, decoder_output, params, window_size))

    assert out.shape == decoder_output.shape, (out.shape, decoder_output.shape)
    max_err = float(jnp.max(jnp.abs(out - ref)))
    # approx reciprocal in the softmax denominator -> slightly looser tolerance
    assert jnp.allclose(out, ref, atol=2e-3, rtol=2e-3), max_err

    print("KERNEL_OK")
</pallas_src>

<mosaic_0001>
module attributes {stable_mosaic.version = 11 : i64} {
  func.func @_matmul_bias_kernel(%arg0: i32, %arg1: memref<512x16xf32, #tpu.memory_space<vmem>>, %arg2: memref<16x8xf32, #tpu.memory_space<vmem>>, %arg3: memref<1x8xf32, #tpu.memory_space<vmem>>, %arg4: memref<512x8xf32, #tpu.memory_space<vmem>>) attributes {dimension_semantics = [#tpu.dimension_semantics<parallel>], iteration_bounds = array<i64: 6>, scalar_prefetch = 0 : i64, scratch_operands = 0 : i64, tpu.core_type = #tpu.core_type<tc>, window_params = [{transform_indices = @transform_0, window_bounds = array<i64: 512, 16>}, {pipeline_mode = #tpu.pipeline_mode<synchronous>, transform_indices = @transform_1, window_bounds = array<i64: 16, 8>}, {pipeline_mode = #tpu.pipeline_mode<synchronous>, transform_indices = @transform_2, window_bounds = array<i64: 1, 8>}, {transform_indices = @transform_3, window_bounds = array<i64: 512, 8>}]} {
    %c0 = arith.constant 0 : index
    %c0_0 = arith.constant 0 : index
    %0 = vector.load %arg1[%c0, %c0_0] : memref<512x16xf32, #tpu.memory_space<vmem>>, vector<512x16xf32>
    %c0_1 = arith.constant 0 : index
    %c0_2 = arith.constant 0 : index
    %1 = vector.load %arg2[%c0_1, %c0_2] : memref<16x8xf32, #tpu.memory_space<vmem>>, vector<16x8xf32>
    %cst = arith.constant dense<0.000000e+00> : vector<512x8xf32>
    %2 = tpu.matmul %0, %1, %cst {dimension_numbers = #tpu.dot_dimension_numbers<[1], [0], [0], [1], [0, 0, 1, 1], [], []>} : vector<512x16xf32>, vector<16x8xf32>, vector<512x8xf32> -> vector<512x8xf32>
    %c0_3 = arith.constant 0 : index
    %c0_4 = arith.constant 0 : index
    %3 = vector.load %arg3[%c0_3, %c0_4] : memref<1x8xf32, #tpu.memory_space<vmem>>, vector<1x8xf32>
    %4 = vector.broadcast %3 : vector<1x8xf32> to vector<512x8xf32>
    %5 = arith.addf %2, %4 : vector<512x8xf32>
    %c0_5 = arith.constant 0 : index
    %c0_6 = arith.constant 0 : index
    %6 = vector.load %arg4[%c0_5, %c0_6] : memref<512x8xf32, #tpu.memory_space<vmem>>, vector<512x8xf32>
    tpu.vector_store %arg4[%c0_5, %c0_6], %5 {strides = array<i32>} : memref<512x8xf32, #tpu.memory_space<vmem>>, vector<512x8xf32>,
    return
  }
  func.func @transform_0(%arg0: i32) -> (i32, i32) {
    %c0_i32 = arith.constant 0 : i32
    %c0_i32_0 = arith.constant 0 : i32
    return %arg0, %c0_i32 : i32, i32
  }
  func.func @transform_1(%arg0: i32) -> (i32, i32) {
    %c0_i32 = arith.constant 0 : i32
    %c0_i32_0 = arith.constant 0 : i32
    %c0_i32_1 = arith.constant 0 : i32
    return %c0_i32, %c0_i32_0 : i32, i32
  }
  func.func @transform_2(%arg0: i32) -> (i32, i32) {
    %c0_i32 = arith.constant 0 : i32
    %c0_i32_0 = arith.constant 0 : i32
    %c0_i32_1 = arith.constant 0 : i32
    return %c0_i32, %c0_i32_0 : i32, i32
  }
  func.func @transform_3(%arg0: i32) -> (i32, i32) {
    %c0_i32 = arith.constant 0 : i32
    %c0_i32_0 = arith.constant 0 : i32
    return %arg0, %c0_i32 : i32, i32
  }
}

module attributes {stable_mosaic.version = 11 : i64} {
  func.func @_matmul_bias_kernel(%arg0: i32, %arg1: memref<512x16xf32, #tpu.memory_space<vmem>>, %arg2: memref<16x24xf32, #tpu.memory_space<vmem>>, %arg3: memref<1x24xf32, #tpu.memory_space<vmem>>, %arg4: memref<512x24xf32, #tpu.memory_space<vmem>>) attributes {dimension_semantics = [#tpu.dimension_semantics<parallel>], iteration_bounds = array<i64: 6>, scalar_prefetch = 0 : i64, scratch_operands = 0 : i64, tpu.core_type = #tpu.core_type<tc>, window_params = [{transform_indices = @transform_0, window_bounds = array<i64: 512, 16>}, {pipeline_mode = #tpu.pipeline_mode<synchronous>, transform_indices = @transform_1, window_bounds = array<i64: 16, 24>}, {pipeline_mode = #tpu.pipeline_mode<synchronous>, transform_indices = @transform_2, window_bounds = array<i64: 1, 24>}, {transform_indices = @transform_3, window_bounds = array<i64: 512, 24>}]} {
    %c0 = arith.constant 0 : index
    %c0_0 = arith.constant 0 : index
    %0 = vector.load %arg1[%c0, %c0_0] : memref<512x16xf32, #tpu.memory_space<vmem>>, vector<512x16xf32>
    %c0_1 = arith.constant 0 : index
    %c0_2 = arith.constant 0 : index
    %1 = vector.load %arg2[%c0_1, %c0_2] : memref<16x24xf32, #tpu.memory_space<vmem>>, vector<16x24xf32>
    %cst = arith.constant dense<0.000000e+00> : vector<512x24xf32>
    %2 = tpu.matmul %0, %1, %cst {dimension_numbers = #tpu.dot_dimension_numbers<[1], [0], [0], [1], [0, 0, 1, 1], [], []>} : vector<512x16xf32>, vector<16x24xf32>, vector<512x24xf32> -> vector<512x24xf32>
    %c0_3 = arith.constant 0 : index
    %c0_4 = arith.constant 0 : index
    %3 = vector.load %arg3[%c0_3, %c0_4] : memref<1x24xf32, #tpu.memory_space<vmem>>, vector<1x24xf32>
    %4 = vector.broadcast %3 : vector<1x24xf32> to vector<512x24xf32>
    %5 = arith.addf %2, %4 : vector<512x24xf32>
    %c0_5 = arith.constant 0 : index
    %c0_6 = arith.constant 0 : index
    %6 = vector.load %arg4[%c0_5, %c0_6] : memref<512x24xf32, #tpu.memory_space<vmem>>, vector<512x24xf32>
    tpu.vector_store %arg4[%c0_5, %c0_6], %5 {strides = array<i32>} : memref<512x24xf32, #tpu.memory_space<vmem>>, vector<512x24xf32>,
    return
  }
  func.func @transform_0(%arg0: i32) -> (i32, i32) {
    %c0_i32 = arith.constant 0 : i32
    %c0_i32_0 = arith.constant 0 : i32
    return %arg0, %c0_i32 : i32, i32
  }
  func.func @transform_1(%arg0: i32) -> (i32, i32) {
    %c0_i32 = arith.constant 0 : i32
    %c0_i32_0 = arith.constant 0 : i32
    %c0_i32_1 = arith.constant 0 : i32
    return %c0_i32, %c0_i32_0 : i32, i32
  }
  func.func @transform_2(%arg0: i32) -> (i32, i32) {
    %c0_i32 = arith.constant 0 : i32
    %c0_i32_0 = arith.constant 0 : i32
    %c0_i32_1 = arith.constant 0 : i32
    return %c0_i32, %c0_i32_0 : i32, i32
  }
  func.func @transform_3(%arg0: i32) -> (i32, i32) {
    %c0_i32 = arith.constant 0 : i32
    %c0_i32_0 = arith.constant 0 : i32
    return %arg0, %c0_i32 : i32, i32
  }
}

module attributes {stable_mosaic.version = 11 : i64} {
  func.func @_window_attn_kernel(%arg0: i32, %arg1: memref<16x64x8xf32, #tpu.memory_space<vmem>>, %arg2: memref<16x8x64xf32, #tpu.memory_space<vmem>>, %arg3: memref<16x64x16xf32, #tpu.memory_space<vmem>>, %arg4: memref<16x64x16xf32, #tpu.memory_space<vmem>>) attributes {dimension_semantics = [#tpu.dimension_semantics<parallel>], iteration_bounds = array<i64: 4>, scalar_prefetch = 0 : i64, scratch_operands = 0 : i64, tpu.core_type = #tpu.core_type<tc>, window_params = [{transform_indices = @transform_0, window_bounds = array<i64: 16, 64, 8>}, {transform_indices = @transform_1, window_bounds = array<i64: 16, 8, 64>}, {transform_indices = @transform_2, window_bounds = array<i64: 16, 64, 16>}, {transform_indices = @transform_3, window_bounds = array<i64: 16, 64, 16>}]} {
    %c0 = arith.constant 0 : index
    %c0_0 = arith.constant 0 : index
    %c0_1 = arith.constant 0 : index
    %0 = vector.load %arg1[%c0, %c0_0, %c0_1] : memref<16x64x8xf32, #tpu.memory_space<vmem>>, vector<16x64x8xf32>
    %cst = arith.constant 0.353553385 : f32
    %1 = vector.broadcast %cst : f32 to vector<16x64x8xf32>
    %2 = arith.mulf %0, %1 : vector<16x64x8xf32>
    %c0_2 = arith.constant 0 : index
    %c0_3 = arith.constant 0 : index
    %c0_4 = arith.constant 0 : index
    %3 = vector.load %arg2[%c0_2, %c0_3, %c0_4] : memref<16x8x64xf32, #tpu.memory_space<vmem>>, vector<16x8x64xf32>
    %c0_5 = arith.constant 0 : index
    %c0_6 = arith.constant 0 : index
    %c0_7 = arith.constant 0 : index
    %4 = vector.load %arg3[%c0_5, %c0_6, %c0_7] : memref<16x64x16xf32, #tpu.memory_space<vmem>>, vector<16x64x16xf32>
    "tpu.trace_start"() <{level = 10 : i32, message = "bpc,bck->bpk"}> : () -> ()
    %cst_8 = arith.constant dense<0.000000e+00> : vector<16x64x64xf32>
    %5 = tpu.matmul %2, %3, %cst_8 {dimension_numbers = #tpu.dot_dimension_numbers<[2], [1], [1], [2], [0, 0, 0, 1, 1, 2], [0], [0]>} : vector<16x64x8xf32>, vector<16x8x64xf32>, vector<16x64x64xf32> -> vector<16x64x64xf32>
    "tpu.trace_stop"() : () -> ()
    %cst_9 = arith.constant dense<0xFF800000> : vector<16x64xf32>
    %6 = vector.multi_reduction <maximumf>, %5, %cst_9 [2] : vector<16x64x64xf32> to vector<16x64xf32>
    %7 = vector.shape_cast %6 : vector<16x64xf32> to vector<16x64x1xf32>
    %8 = vector.broadcast %7 : vector<16x64x1xf32> to vector<16x64x64xf32>
    %9 = arith.subf %5, %8 : vector<16x64x64xf32>
    %10 = math.exp %9 : vector<16x64x64xf32>
    %cst_10 = arith.constant dense<0.000000e+00> : vector<16x64xf32>
    %11 = vector.multi_reduction <add>, %10, %cst_10 [2] : vector<16x64x64xf32> to vector<16x64xf32>
    %12 = vector.shape_cast %11 : vector<16x64xf32> to vector<16x64x1xf32>
    "tpu.trace_start"() <{level = 10 : i32, message = "bpk,bkc->bpc"}> : () -> ()
    %cst_11 = arith.constant dense<0.000000e+00> : vector<16x64x16xf32>
    %13 = tpu.matmul %10, %4, %cst_11 {dimension_numbers = #tpu.dot_dimension_numbers<[2], [1], [1], [2], [0, 0, 0, 1, 1, 2], [0], [0]>} : vector<16x64x64xf32>, vector<16x64x16xf32>, vector<16x64x16xf32> -> vector<16x64x16xf32>
    "tpu.trace_stop"() : () -> ()
    %14 = tpu.reciprocal %12 {approx = true} : vector<16x64x1xf32> -> vector<16x64x1xf32>
    %15 = vector.broadcast %14 : vector<16x64x1xf32> to vector<16x64x16xf32>
    %16 = arith.mulf %13, %15 : vector<16x64x16xf32>
    %c0_12 = arith.constant 0 : index
    %c0_13 = arith.constant 0 : index
    %c0_14 = arith.constant 0 : index
    %17 = vector.load %arg4[%c0_12, %c0_13, %c0_14] : memref<16x64x16xf32, #tpu.memory_space<vmem>>, vector<16x64x16xf32>
    tpu.vector_store %arg4[%c0_12, %c0_13, %c0_14], %16 {strides = array<i32>} : memref<16x64x16xf32, #tpu.memory_space<vmem>>, vector<16x64x16xf32>,
    return
  }
  func.func @transform_0(%arg0: i32) -> (i32, i32, i32) {
    %c0_i32 = arith.constant 0 : i32
    %c0_i32_0 = arith.constant 0 : i32
    %c0_i32_1 = arith.constant 0 : i32
    return %arg0, %c0_i32, %c0_i32_0 : i32, i32, i32
  }
  func.func @transform_1(%arg0: i32) -> (i32, i32, i32) {
    %c0_i32 = arith.constant 0 : i32
    %c0_i32_0 = arith.constant 0 : i32
    %c0_i32_1 = arith.constant 0 : i32
    return %arg0, %c0_i32, %c0_i32_0 : i32, i32, i32
  }
  func.func @transform_2(%arg0: i32) -> (i32, i32, i32) {
    %c0_i32 = arith.constant 0 : i32
    %c0_i32_0 = arith.constant 0 : i32
    %c0_i32_1 = arith.constant 0 : i32
    return %arg0, %c0_i32, %c0_i32_0 : i32, i32, i32
  }
  func.func @transform_3(%arg0: i32) -> (i32, i32, i32) {
    %c0_i32 = arith.constant 0 : i32
    %c0_i32_0 = arith.constant 0 : i32
    %c0_i32_1 = arith.constant 0 : i32
    return %arg0, %c0_i32, %c0_i32_0 : i32, i32, i32
  }
}

</mosaic_0001>

<bundles_post_ra>
// kernel: efficient_attention_block.3
= control target key start
LH: loop header
LB: loop body
LE: loop exit
PB: predicated region body
PF: predicated region fallthrough
CT: control target
= control target key end

     0   :  { %s1228_s12 = smov 0   ;;  %s1587_s0 = inlined_call_operand.vmem [shape: f32[3072,16], index: 0, kind: input, shape index: {}]   ;;  %s1588_s1 = inlined_call_operand.vmem [shape: f32[16,8], index: 1, kind: input, shape index: {}]   ;;  %s1589_s2 = inlined_call_operand.vmem [shape: f32[1,8], index: 2, kind: input, shape index: {}]   ;;  %s1590_s3 = inlined_call_operand.vmem [shape: f32[3072,8], index: 3, kind: output, shape index: {}]  }
   0x1 LB: > { %s946_s13 = sadd.s32 4294967295, %s1206_s12   ;;  %p950_p0 = scmp.ge.s32.totalorder %s1206_s12, 1  ;;  %s1206_s12 = sphi %s1228_s12, %s13_s12  }
   0x2   : > { %p138_p1 = scmp.lt.s32.totalorder %s1206_s12, 7 }
   0x4   : > { %p139_p2 = pnand %p950_p0, %p138_p1 }
   0x5   : > { %s951_s18 = sshll.u32 (!%p139_p2), %s946_s13, 6 }
   0x6   : > { %142 = sbr.rel (%p139_p2) target bundleno = 275 (0x113), region = 32  ;;  %p163_p3 = scmp.lt.s32.totalorder (!%p139_p2), %s951_s18, 383 }
   0xb   : > { %v239_v0 = vld [vmem:[%s1588_s1 + $0x8] sm:$0xff]  ;;  %v238_v1 = vld [vmem:[%s1588_s1] sm:$0xff]  ;;  %s1592_s18 = smov (!%p163_p3, %s951_s18), 383  ;;  %vm247_vm0 = vcmask 130048   ;;  %vm825_vm1 = vcmask 64512  }
   0xc   : > { %1088 = vmatprep.subr.mxu0 %v239_v0  ;;  %1188 = vmatprep.subr.mxu1 %v239_v0  ;;  %s952_s19 = sshll.u32 %s1592_s18, 3 }
   0xd   : > { %1089 = vmatpush3.msra.mxu0 %v239_v0  ;;  %1190 = vmatpush3.msra.mxu1 %v239_v0  ;;  %s1250_s22 = scalar_lea.vmem %s1587_s0, %s952_s19  ;;  %s1390_s27 = scalar_lea.vmem %s1590_s3, %s952_s19 }
   0xe   : > { %1090 = vmatprep.subr.mxu0 %v238_v1  ;;  %1189 = vmatprep.subr.mxu1 %v238_v1  ;;  %v174_v2 = vld [vmem:[%s1250_s22] sm:$0xff]  ;;  %v175_v4 = vld [vmem:[%s1250_s22 + $0x8] sm:$0xff]  ;;  %v176_v6 = vld [vmem:[%s1250_s22 + $0x10] sm:$0xff] }
   0xf   : > { %1091 = vmatpush3.msra.mxu0 %v238_v1  ;;  %1191 = vmatpush3.msra.mxu1 %v238_v1  ;;  %v206_v3 = vld [vmem:[%s1250_s22 + $0x100] sm:$0xff]  ;;  %v207_v5 = vld [vmem:[%s1250_s22 + $0x108] sm:$0xff]  ;;  %v208_v7 = vld [vmem:[%s1250_s22 + $0x110] sm:$0xff] }
  0x10   : > { %1092 = vmatprep.mubr.msk.f32.mxu0 %vm247_vm0, %v174_v2  ;;  %1140 = vmatprep.mubr.msk.f32.mxu1 %vm247_vm0, %v206_v3  ;;  %v177_v8 = vld [vmem:[%s1250_s22 + $0x18] sm:$0xff]  ;;  %v178_v10 = vld [vmem:[%s1250_s22 + $0x20] sm:$0xff]  ;;  %v179_v12 = vld [vmem:[%s1250_s22 + $0x28] sm:$0xff] }
  0x11   : > { %1093 = vmatmul.mubr.msk.f32.vlgmr.msra.gmra.mxu0 %vm247_vm0, %v175_v4  ;;  %1141 = vmatmul.mubr.msk.f32.vlgmr.msra.gmra.mxu1 %vm247_vm0, %v207_v5  ;;  %v209_v9 = vld [vmem:[%s1250_s22 + $0x118] sm:$0xff]  ;;  %v210_v11 = vld [vmem:[%s1250_s22 + $0x120] sm:$0xff]  ;;  %v211_v13 = vld [vmem:[%s1250_s22 + $0x128] sm:$0xff] }
  0x12   : > { %1095 = vmatprep.mubr.msk.f32.mxu0 %vm247_vm0, %v176_v6  ;;  %1143 = vmatprep.mubr.msk.f32.mxu1 %vm247_vm0, %v208_v7  ;;  %v180_v14 = vld [vmem:[%s1250_s22 + $0x30] sm:$0xff]  ;;  %v181_v16 = vld [vmem:[%s1250_s22 + $0x38] sm:$0xff]  ;;  %v182_v18 = vld [vmem:[%s1250_s22 + $0x40] sm:$0xff] }
  0x13   : > { %v212_v15 = vld [vmem:[%s1250_s22 + $0x130] sm:$0xff]  ;;  %v213_v17 = vld [vmem:[%s1250_s22 + $0x138] sm:$0xff]  ;;  %v214_v19 = vld [vmem:[%s1250_s22 + $0x140] sm:$0xff] }
  0x14   : > { %v183_v20 = vld [vmem:[%s1250_s22 + $0x48] sm:$0xff]  ;;  %v184_v22 = vld [vmem:[%s1250_s22 + $0x50] sm:$0xff]  ;;  %v185_v24 = vld [vmem:[%s1250_s22 + $0x58] sm:$0xff] }
  0x15   : > { %1096 = vmatmul.mubr.msk.f32.gmra.mxu0 %vm247_vm0, %v177_v8  ;;  %1144 = vmatmul.mubr.msk.f32.gmra.mxu1 %vm247_vm0, %v209_v9  ;;  %v215_v21 = vld [vmem:[%s1250_s22 + $0x148] sm:$0xff]  ;;  %v216_v23 = vld [vmem:[%s1250_s22 + $0x150] sm:$0xff]  ;;  %v217_v25 = vld [vmem:[%s1250_s22 + $0x158] sm:$0xff] }
  0x16   : > { %1098 = vmatprep.mubr.msk.f32.mxu0 %vm247_vm0, %v178_v10  ;;  %1146 = vmatprep.mubr.msk.f32.mxu1 %vm247_vm0, %v210_v11  ;;  %v186_v26 = vld [vmem:[%s1250_s22 + $0x60] sm:$0xff]  ;;  %v187_v28 = vld [vmem:[%s1250_s22 + $0x68] sm:$0xff]  ;;  %v188_v30 = vld [vmem:[%s1250_s22 + $0x70] sm:$0xff] }
  0x17   : > { %v218_v27 = vld [vmem:[%s1250_s22 + $0x160] sm:$0xff]  ;;  %v219_v29 = vld [vmem:[%s1250_s22 + $0x168] sm:$0xff]  ;;  %v220_v31 = vld [vmem:[%s1250_s22 + $0x170] sm:$0xff] }
  0x18   : > { %v189_v32 = vld [vmem:[%s1250_s22 + $0x78] sm:$0xff]  ;;  %v190_v34 = vld [vmem:[%s1250_s22 + $0x80] sm:$0xff]  ;;  %v191_v36 = vld [vmem:[%s1250_s22 + $0x88] sm:$0xff] }
  0x19   : > { %1099 = vmatmul.mubr.msk.f32.gmra.mxu0 %vm247_vm0, %v179_v12  ;;  %1147 = vmatmul.mubr.msk.f32.gmra.mxu1 %vm247_vm0, %v211_v13  ;;  %v221_v33 = vld [vmem:[%s1250_s22 + $0x178] sm:$0xff]  ;;  %v222_v35 = vld [vmem:[%s1250_s22 + $0x180] sm:$0xff]  ;;  %v223_v37 = vld [vmem:[%s1250_s22 + $0x188] sm:$0xff] }
  0x1a   : > { %1101 = vmatprep.mubr.msk.f32.mxu0 %vm247_vm0, %v180_v14  ;;  %1149 = vmatprep.mubr.msk.f32.mxu1 %vm247_vm0, %v212_v15  ;;  %v192_v38 = vld [vmem:[%s1250_s22 + $0x90] sm:$0xff]  ;;  %v193_v40 = vld [vmem:[%s1250_s22 + $0x98] sm:$0xff]  ;;  %v194_v42 = vld [vmem:[%s1250_s22 + $0xa0] sm:$0xff] }
  0x1b   : > { %v224_v39 = vld [vmem:[%s1250_s22 + $0x190] sm:$0xff]  ;;  %v225_v41 = vld [vmem:[%s1250_s22 + $0x198] sm:$0xff]  ;;  %v226_v43 = vld [vmem:[%s1250_s22 + $0x1a0] sm:$0xff] }
  0x1c   : > { %v195_v44 = vld [vmem:[%s1250_s22 + $0xa8] sm:$0xff]  ;;  %v196_v46 = vld [vmem:[%s1250_s22 + $0xb0] sm:$0xff]  ;;  %v197_v48 = vld [vmem:[%s1250_s22 + $0xb8] sm:$0xff] }
  0x1d   : > { %1102 = vmatmul.mubr.msk.f32.gmra.mxu0 %vm247_vm0, %v181_v16  ;;  %1150 = vmatmul.mubr.msk.f32.gmra.mxu1 %vm247_vm0, %v213_v17  ;;  %v227_v45 = vld [vmem:[%s1250_s22 + $0x1a8] sm:$0xff]  ;;  %v228_v47 = vld [vmem:[%s1250_s22 + $0x1b0] sm:$0xff]  ;;  %v229_v49 = vld [vmem:[%s1250_s22 + $0x1b8] sm:$0xff] }
  0x1e   : > { %1104 = vmatprep.mubr.msk.f32.mxu0 %vm247_vm0, %v182_v18  ;;  %1152 = vmatprep.mubr.msk.f32.mxu1 %vm247_vm0, %v214_v19  ;;  %v198_v50 = vld [vmem:[%s1250_s22 + $0xc0] sm:$0xff]  ;;  %v199_v52 = vld [vmem:[%s1250_s22 + $0xc8] sm:$0xff]  ;;  %v200_v54 = vld [vmem:[%s1250_s22 + $0xd0] sm:$0xff] }
  0x1f   : > { %v230_v51 = vld [vmem:[%s1250_s22 + $0x1c0] sm:$0xff]  ;;  %v231_v53 = vld [vmem:[%s1250_s22 + $0x1c8] sm:$0xff]  ;;  %v232_v55 = vld [vmem:[%s1250_s22 + $0x1d0] sm:$0xff] }
  0x20   : > { %v201_v56 = vld [vmem:[%s1250_s22 + $0xd8] sm:$0xff]  ;;  %v202_v58 = vld [vmem:[%s1250_s22 + $0xe0] sm:$0xff]  ;;  %v203_v60 = vld [vmem:[%s1250_s22 + $0xe8] sm:$0xff] }
  0x21   : > { %1105 = vmatmul.mubr.msk.f32.gmra.mxu0 %vm247_vm0, %v183_v20  ;;  %1153 = vmatmul.mubr.msk.f32.gmra.mxu1 %vm247_vm0, %v215_v21  ;;  %v233_v57 = vld [vmem:[%s1250_s22 + $0x1d8] sm:$0xff]  ;;  %v234_v59 = vld [vmem:[%s1250_s22 + $0x1e0] sm:$0xff]  ;;  %v235_v61 = vld [vmem:[%s1250_s22 + $0x1e8] sm:$0xff] }
  0x22   : > { %1107 = vmatprep.mubr.msk.f32.mxu0 %vm247_vm0, %v184_v22  ;;  %1155 = vmatprep.mubr.msk.f32.mxu1 %vm247_vm0, %v216_v23  ;;  %v204_v62 = vld [vmem:[%s1250_s22 + $0xf0] sm:$0xff]  ;;  %v205_v0 = vld [vmem:[%s1250_s22 + $0xf8] sm:$0xff]  ;;  %v1383_v2 = vld [vmem:[%s1589_s2] ss:$0 sm:$0xff] }
  0x23   : > { %v236_v63 = vld [vmem:[%s1250_s22 + $0x1f0] sm:$0xff]  ;;  %v237_v1 = vld [vmem:[%s1250_s22 + $0x1f8] sm:$0xff] }
  0x25   : > { %1108 = vmatmul.mubr.msk.f32.gmra.mxu0 %vm247_vm0, %v185_v24  ;;  %1156 = vmatmul.mubr.msk.f32.gmra.mxu1 %vm247_vm0, %v217_v25 }
  0x26   : > { %1110 = vmatprep.mubr.msk.f32.mxu0 %vm247_vm0, %v186_v26  ;;  %1158 = vmatprep.mubr.msk.f32.mxu1 %vm247_vm0, %v218_v27 }
  0x29   : > { %1111 = vmatmul.mubr.msk.f32.gmra.mxu0 %vm247_vm0, %v187_v28  ;;  %1159 = vmatmul.mubr.msk.f32.gmra.mxu1 %vm247_vm0, %v219_v29 }
  0x2a   : > { %1113 = vmatprep.mubr.msk.f32.mxu0 %vm247_vm0, %v188_v30  ;;  %1161 = vmatprep.mubr.msk.f32.mxu1 %vm247_vm0, %v220_v31 }
  0x2d   : > { %1114 = vmatmul.mubr.msk.f32.gmra.mxu0 %vm247_vm0, %v189_v32  ;;  %1162 = vmatmul.mubr.msk.f32.gmra.mxu1 %vm247_vm0, %v221_v33 }
  0x2e   : > { %1116 = vmatprep.mubr.msk.f32.mxu0 %vm247_vm0, %v190_v34  ;;  %1164 = vmatprep.mubr.msk.f32.mxu1 %vm247_vm0, %v222_v35 }
  0x31   : > { %1117 = vmatmul.mubr.msk.f32.gmra.mxu0 %vm247_vm0, %v191_v36  ;;  %1165 = vmatmul.mubr.msk.f32.gmra.mxu1 %vm247_vm0, %v223_v37 }
  0x32   : > { %1119 = vmatprep.mubr.msk.f32.mxu0 %vm247_vm0, %v192_v38  ;;  %1167 = vmatprep.mubr.msk.f32.mxu1 %vm247_vm0, %v224_v39 }
  0x35   : > { %1120 = vmatmul.mubr.msk.f32.gmra.mxu0 %vm247_vm0, %v193_v40  ;;  %1168 = vmatmul.mubr.msk.f32.gmra.mxu1 %vm247_vm0, %v225_v41 }
  0x36   : > { %1122 = vmatprep.mubr.msk.f32.mxu0 %vm247_vm0, %v194_v42  ;;  %1170 = vmatprep.mubr.msk.f32.mxu1 %vm247_vm0, %v226_v43 }
  0x39   : > { %1123 = vmatmul.mubr.msk.f32.gmra.mxu0 %vm247_vm0, %v195_v44  ;;  %1171 = vmatmul.mubr.msk.f32.gmra.mxu1 %vm247_vm0, %v227_v45 }
  0x3a   : > { %1125 = vmatprep.mubr.msk.f32.mxu0 %vm247_vm0, %v196_v46  ;;  %1173 = vmatprep.mubr.msk.f32.mxu1 %vm247_vm0, %v228_v47 }
  0x3d   : > { %1126 = vmatmul.mubr.msk.f32.gmra.mxu0 %vm247_vm0, %v197_v48  ;;  %1174 = vmatmul.mubr.msk.f32.gmra.mxu1 %vm247_vm0, %v229_v49 }
  0x3e   : > { %1128 = vmatprep.mubr.msk.f32.mxu0 %vm247_vm0, %v198_v50  ;;  %1176 = vmatprep.mubr.msk.f32.mxu1 %vm247_vm0, %v230_v51 }
  0x41   : > { %1129 = vmatmul.mubr.msk.f32.gmra.mxu0 %vm247_vm0, %v199_v52  ;;  %1177 = vmatmul.mubr.msk.f32.gmra.mxu1 %vm247_vm0, %v231_v53 }
  0x42   : > { %1131 = vmatprep.mubr.msk.f32.mxu0 %vm247_vm0, %v200_v54  ;;  %1179 = vmatprep.mubr.msk.f32.mxu1 %vm247_vm0, %v232_v55 }
  0x45   : > { %1132 = vmatmul.mubr.msk.f32.gmra.mxu0 %vm247_vm0, %v201_v56  ;;  %1180 = vmatmul.mubr.msk.f32.gmra.mxu1 %vm247_vm0, %v233_v57 }
  0x46   : > { %1134 = vmatprep.mubr.msk.f32.mxu0 %vm247_vm0, %v202_v58  ;;  %1182 = vmatprep.mubr.msk.f32.mxu1 %vm247_vm0, %v234_v59 }
  0x49   : > { %1135 = vmatmul.mubr.msk.f32.gmra.mxu0 %vm247_vm0, %v203_v60  ;;  %1183 = vmatmul.mubr.msk.f32.gmra.mxu1 %vm247_vm0, %v235_v61 }
  0x4a   : > { %1137 = vmatprep.mubr.msk.f32.mxu0 %vm247_vm0, %v204_v62  ;;  %1185 = vmatprep.mubr.msk.f32.mxu1 %vm247_vm0, %v236_v63 }
  0x4d   : > { %1138 = vmatmul.mubr.msk.f32.gmra.mxu0 %vm247_vm0, %v205_v0  ;;  %1186 = vmatmul.mubr.msk.f32.gmra.mxu1 %vm247_vm0, %v237_v1 }
  0xd1   : > { %v1094_v3 = vpop.f32.mrf.mxu0  ;;  %v1142_v4 = vpop.f32.mrf.mxu1 }
  0xd2   : > { %v512_v5 = vadd.f32 %v1094_v3, %v1383_v2  ;;  %v672_v6 = vadd.f32 %v1142_v4, %v1383_v2 }
  0xd3   : > { %v506_v7 = vpop.f32.mrf.mxu0  ;;  %v666_v8 = vpop.f32.mrf.mxu1 }
  0xd4   : > { %827 = vst.msk [vmem:[%s1390_s27 + $0x8] sm:$0xff] %vm825_vm1, %v512_v5  ;;  %859 = vst.msk [vmem:[%s1390_s27 + $0x108] sm:$0xff] %vm825_vm1, %v672_v6  ;;  %v507_v9 = vadd.f32 %v1383_v2, %v506_v7  ;;  %v667_v10 = vadd.f32 %v1383_v2, %v666_v8 }
  0xd5   : > { %v1097_v11 = vpop.f32.mrf.mxu0  ;;  %v1145_v12 = vpop.f32.mrf.mxu1 }
  0xd6   : > { %826 = vst.msk [vmem:[%s1390_s27] sm:$0xff] %vm825_vm1, %v507_v9  ;;  %858 = vst.msk [vmem:[%s1390_s27 + $0x100] sm:$0xff] %vm825_vm1, %v667_v10  ;;  %v522_v13 = vadd.f32 %v1097_v11, %v1383_v2  ;;  %v682_v14 = vadd.f32 %v1145_v12, %v1383_v2 }
  0xd7   : > { %v516_v15 = vpop.f32.mrf.mxu0  ;;  %v676_v16 = vpop.f32.mrf.mxu1 }
  0xd8   : > { %829 = vst.msk [vmem:[%s1390_s27 + $0x18] sm:$0xff] %vm825_vm1, %v522_v13  ;;  %861 = vst.msk [vmem:[%s1390_s27 + $0x118] sm:$0xff] %vm825_vm1, %v682_v14  ;;  %v517_v17 = vadd.f32 %v1383_v2, %v516_v15  ;;  %v677_v18 = vadd.f32 %v1383_v2, %v676_v16 }
  0xd9   : > { %v1100_v19 = vpop.f32.mrf.mxu0  ;;  %v1148_v20 = vpop.f32.mrf.mxu1 }
  0xda   : > { %828 = vst.msk [vmem:[%s1390_s27 + $0x10] sm:$0xff] %vm825_vm1, %v517_v17  ;;  %860 = vst.msk [vmem:[%s1390_s27 + $0x110] sm:$0xff] %vm825_vm1, %v677_v18  ;;  %v532_v21 = vadd.f32 %v1100_v19, %v1383_v2  ;;  %v692_v22 = vadd.f32 %v1148_v20, %v1383_v2 }
  0xdb   : > { %v526_v23 = vpop.f32.mrf.mxu0  ;;  %v686_v24 = vpop.f32.mrf.mxu1 }
  0xdc   : > { %831 = vst.msk [vmem:[%s1390_s27 + $0x28] sm:$0xff] %vm825_vm1, %v532_v21  ;;  %863 = vst.msk [vmem:[%s1390_s27 + $0x128] sm:$0xff] %vm825_vm1, %v692_v22  ;;  %v527_v25 = vadd.f32 %v1383_v2, %v526_v23  ;;  %v687_v26 = vadd.f32 %v1383_v2, %v686_v24 }
  0xdd   : > { %v1103_v27 = vpop.f32.mrf.mxu0  ;;  %v1151_v28 = vpop.f32.mrf.mxu1 }
  0xde   : > { %830 = vst.msk [vmem:[%s1390_s27 + $0x20] sm:$0xff] %vm825_vm1, %v527_v25  ;;  %862 = vst.msk [vmem:[%s1390_s27 + $0x120] sm:$0xff] %vm825_vm1, %v687_v26  ;;  %v542_v29 = vadd.f32 %v1103_v27, %v1383_v2  ;;  %v702_v30 = vadd.f32 %v1151_v28, %v1383_v2 }
  0xdf   : > { %v536_v31 = vpop.f32.mrf.mxu0  ;;  %v696_v32 = vpop.f32.mrf.mxu1 }
  0xe0   : > { %833 = vst.msk [vmem:[%s1390_s27 + $0x38] sm:$0xff] %vm825_vm1, %v542_v29  ;;  %865 = vst.msk [vmem:[%s1390_s27 + $0x138] sm:$0xff] %vm825_vm1, %v702_v30  ;;  %v537_v33 = vadd.f32 %v1383_v2, %v536_v31  ;;  %v697_v34 = vadd.f32 %v1383_v2, %v696_v32 }
  0xe1   : > { %v1106_v35 = vpop.f32.mrf.mxu0  ;;  %v1154_v36 = vpop.f32.mrf.mxu1 }
  0xe2   : > { %832 = vst.msk [vmem:[%s1390_s27 + $0x30] sm:$0xff] %vm825_vm1, %v537_v33  ;;  %864 = vst.msk [vmem:[%s1390_s27 + $0x130] sm:$0xff] %vm825_vm1, %v697_v34  ;;  %v552_v37 = vadd.f32 %v1106_v35, %v1383_v2  ;;  %v712_v38 = vadd.f32 %v1154_v36, %v1383_v2 }
  0xe3   : > { %v546_v39 = vpop.f32.mrf.mxu0  ;;  %v706_v40 = vpop.f32.mrf.mxu1 }
  0xe4   : > { %835 = vst.msk [vmem:[%s1390_s27 + $0x48] sm:$0xff] %vm825_vm1, %v552_v37  ;;  %867 = vst.msk [vmem:[%s1390_s27 + $0x148] sm:$0xff] %vm825_vm1, %v712_v38  ;;  %v547_v41 = vadd.f32 %v1383_v2, %v546_v39  ;;  %v707_v42 = vadd.f32 %v1383_v2, %v706_v40 }
  0xe5   : > { %v1109_v43 = vpop.f32.mrf.mxu0  ;;  %v1157_v44 = vpop.f32.mrf.mxu1 }
  0xe6   : > { %834 = vst.msk [vmem:[%s1390_s27 + $0x40] sm:$0xff] %vm825_vm1, %v547_v41  ;;  %866 = vst.msk [vmem:[%s1390_s27 + $0x140] sm:$0xff] %vm825_vm1, %v707_v42  ;;  %v562_v45 = vadd.f32 %v1109_v43, %v1383_v2  ;;  %v722_v46 = vadd.f32 %v1157_v44, %v1383_v2 }
  0xe7   : > { %v556_v47 = vpop.f32.mrf.mxu0  ;;  %v716_v48 = vpop.f32.mrf.mxu1 }
  0xe8   : > { %837 = vst.msk [vmem:[%s1390_s27 + $0x58] sm:$0xff] %vm825_vm1, %v562_v45  ;;  %869 = vst.msk [vmem:[%s1390_s27 + $0x158] sm:$0xff] %vm825_vm1, %v722_v46  ;;  %v557_v49 = vadd.f32 %v1383_v2, %v556_v47  ;;  %v717_v50 = vadd.f32 %v1383_v2, %v716_v48 }
  0xe9   : > { %v1112_v51 = vpop.f32.mrf.mxu0  ;;  %v1160_v52 = vpop.f32.mrf.mxu1 }
  0xea   : > { %836 = vst.msk [vmem:[%s1390_s27 + $0x50] sm:$0xff] %vm825_vm1, %v557_v49  ;;  %868 = vst.msk [vmem:[%s1390_s27 + $0x150] sm:$0xff] %vm825_vm1, %v717_v50  ;;  %v572_v53 = vadd.f32 %v1112_v51, %v1383_v2  ;;  %v732_v54 = vadd.f32 %v1160_v52, %v1383_v2 }
  0xeb   : > { %v566_v55 = vpop.f32.mrf.mxu0  ;;  %v726_v56 = vpop.f32.mrf.mxu1 }
  0xec   : > { %839 = vst.msk [vmem:[%s1390_s27 + $0x68] sm:$0xff] %vm825_vm1, %v572_v53  ;;  %871 = vst.msk [vmem:[%s1390_s27 + $0x168] sm:$0xff] %vm825_vm1, %v732_v54  ;;  %v567_v57 = vadd.f32 %v1383_v2, %v566_v55  ;;  %v727_v58 = vadd.f32 %v1383_v2, %v726_v56 }
  0xed   : > { %v1115_v59 = vpop.f32.mrf.mxu0  ;;  %v1163_v60 = vpop.f32.mrf.mxu1 }
  0xee   : > { %838 = vst.msk [vmem:[%s1390_s27 + $0x60] sm:$0xff] %vm825_vm1, %v567_v57  ;;  %870 = vst.msk [vmem:[%s1390_s27 + $0x160] sm:$0xff] %vm825_vm1, %v727_v58  ;;  %v582_v61 = vadd.f32 %v1115_v59, %v1383_v2  ;;  %v742_v62 = vadd.f32 %v1163_v60, %v1383_v2 }
  0xef   : > { %v576_v63 = vpop.f32.mrf.mxu0  ;;  %v736_v0 = vpop.f32.mrf.mxu1 }
  0xf0   : > { %841 = vst.msk [vmem:[%s1390_s27 + $0x78] sm:$0xff] %vm825_vm1, %v582_v61  ;;  %873 = vst.msk [vmem:[%s1390_s27 + $0x178] sm:$0xff] %vm825_vm1, %v742_v62  ;;  %v577_v1 = vadd.f32 %v1383_v2, %v576_v63  ;;  %v737_v3 = vadd.f32 %v1383_v2, %v736_v0 }
  0xf1   : > { %v1118_v4 = vpop.f32.mrf.mxu0  ;;  %v1166_v5 = vpop.f32.mrf.mxu1 }
  0xf2   : > { %840 = vst.msk [vmem:[%s1390_s27 + $0x70] sm:$0xff] %vm825_vm1, %v577_v1  ;;  %872 = vst.msk [vmem:[%s1390_s27 + $0x170] sm:$0xff] %vm825_vm1, %v737_v3  ;;  %v592_v6 = vadd.f32 %v1118_v4, %v1383_v2  ;;  %v752_v7 = vadd.f32 %v1166_v5, %v1383_v2 }
  0xf3   : > { %v586_v8 = vpop.f32.mrf.mxu0  ;;  %v746_v9 = vpop.f32.mrf.mxu1 }
  0xf4   : > { %843 = vst.msk [vmem:[%s1390_s27 + $0x88] sm:$0xff] %vm825_vm1, %v592_v6  ;;  %875 = vst.msk [vmem:[%s1390_s27 + $0x188] sm:$0xff] %vm825_vm1, %v752_v7  ;;  %v587_v10 = vadd.f32 %v1383_v2, %v586_v8  ;;  %v747_v11 = vadd.f32 %v1383_v2, %v746_v9 }
  0xf5   : > { %v1121_v12 = vpop.f32.mrf.mxu0  ;;  %v1169_v13 = vpop.f32.mrf.mxu1 }
  0xf6   : > { %842 = vst.msk [vmem:[%s1390_s27 + $0x80] sm:$0xff] %vm825_vm1, %v587_v10  ;;  %874 = vst.msk [vmem:[%s1390_s27 + $0x180] sm:$0xff] %vm825_vm1, %v747_v11  ;;  %v602_v14 = vadd.f32 %v1121_v12, %v1383_v2  ;;  %v762_v15 = vadd.f32 %v1169_v13, %v1383_v2 }
  0xf7   : > { %v596_v16 = vpop.f32.mrf.mxu0  ;;  %v756_v17 = vpop.f32.mrf.mxu1 }
  0xf8   : > { %845 = vst.msk [vmem:[%s1390_s27 + $0x98] sm:$0xff] %vm825_vm1, %v602_v14  ;;  %877 = vst.msk [vmem:[%s1390_s27 + $0x198] sm:$0xff] %vm825_vm1, %v762_v15  ;;  %v597_v18 = vadd.f32 %v1383_v2, %v596_v16  ;;  %v757_v19 = vadd.f32 %v1383_v2, %v756_v17 }
  0xf9   : > { %v1124_v20 = vpop.f32.mrf.mxu0  ;;  %v1172_v21 = vpop.f32.mrf.mxu1 }
  0xfa   : > { %844 = vst.msk [vmem:[%s1390_s27 + $0x90] sm:$0xff] %vm825_vm1, %v597_v18  ;;  %876 = vst.msk [vmem:[%s1390_s27 + $0x190] sm:$0xff] %vm825_vm1, %v757_v19  ;;  %v612_v22 = vadd.f32 %v1124_v20, %v1383_v2  ;;  %v772_v23 = vadd.f32 %v1172_v21, %v1383_v2 }
  0xfb   : > { %v606_v24 = vpop.f32.mrf.mxu0  ;;  %v766_v25 = vpop.f32.mrf.mxu1 }
  0xfc   : > { %847 = vst.msk [vmem:[%s1390_s27 + $0xa8] sm:$0xff] %vm825_vm1, %v612_v22  ;;  %879 = vst.msk [vmem:[%s1390_s27 + $0x1a8] sm:$0xff] %vm825_vm1, %v772_v23  ;;  %v607_v26 = vadd.f32 %v1383_v2, %v606_v24  ;;  %v767_v27 = vadd.f32 %v1383_v2, %v766_v25 }
  0xfd   : > { %v1127_v28 = vpop.f32.mrf.mxu0  ;;  %v1175_v29 = vpop.f32.mrf.mxu1 }
  0xfe   : > { %846 = vst.msk [vmem:[%s1390_s27 + $0xa0] sm:$0xff] %vm825_vm1, %v607_v26  ;;  %878 = vst.msk [vmem:[%s1390_s27 + $0x1a0] sm:$0xff] %vm825_vm1, %v767_v27  ;;  %v622_v30 = vadd.f32 %v1127_v28, %v1383_v2  ;;  %v782_v31 = vadd.f32 %v1175_v29, %v1383_v2 }
  0xff   : > { %v616_v32 = vpop.f32.mrf.mxu0  ;;  %v776_v33 = vpop.f32.mrf.mxu1 }
 0x100   : > { %849 = vst.msk [vmem:[%s1390_s27 + $0xb8] sm:$0xff] %vm825_vm1, %v622_v30  ;;  %881 = vst.msk [vmem:[%s1390_s27 + $0x1b8] sm:$0xff] %vm825_vm1, %v782_v31  ;;  %v617_v34 = vadd.f32 %v1383_v2, %v616_v32  ;;  %v777_v35 = vadd.f32 %v1383_v2, %v776_v33 }
 0x101   : > { %v1130_v36 = vpop.f32.mrf.mxu0  ;;  %v1178_v37 = vpop.f32.mrf.mxu1 }
 0x102   : > { %848 = vst.msk [vmem:[%s1390_s27 + $0xb0] sm:$0xff] %vm825_vm1, %v617_v34  ;;  %880 = vst.msk [vmem:[%s1390_s27 + $0x1b0] sm:$0xff] %vm825_vm1, %v777_v35  ;;  %v632_v38 = vadd.f32 %v1130_v36, %v1383_v2  ;;  %v792_v39 = vadd.f32 %v1178_v37, %v1383_v2 }
 0x103   : > { %v626_v40 = vpop.f32.mrf.mxu0  ;;  %v786_v41 = vpop.f32.mrf.mxu1 }
 0x104   : > { %851 = vst.msk [vmem:[%s1390_s27 + $0xc8] sm:$0xff] %vm825_vm1, %v632_v38  ;;  %883 = vst.msk [vmem:[%s1390_s27 + $0x1c8] sm:$0xff] %vm825_vm1, %v792_v39  ;;  %v627_v42 = vadd.f32 %v1383_v2, %v626_v40  ;;  %v787_v43 = vadd.f32 %v1383_v2, %v786_v41 }
 0x105   : > { %v1133_v44 = vpop.f32.mrf.mxu0  ;;  %v1181_v45 = vpop.f32.mrf.mxu1 }
 0x106   : > { %850 = vst.msk [vmem:[%s1390_s27 + $0xc0] sm:$0xff] %vm825_vm1, %v627_v42  ;;  %882 = vst.msk [vmem:[%s1390_s27 + $0x1c0] sm:$0xff] %vm825_vm1, %v787_v43  ;;  %v642_v46 = vadd.f32 %v1133_v44, %v1383_v2  ;;  %v802_v47 = vadd.f32 %v1181_v45, %v1383_v2 }
 0x107   : > { %v636_v48 = vpop.f32.mrf.mxu0  ;;  %v796_v49 = vpop.f32.mrf.mxu1 }
 0x108   : > { %853 = vst.msk [vmem:[%s1390_s27 + $0xd8] sm:$0xff] %vm825_vm1, %v642_v46  ;;  %885 = vst.msk [vmem:[%s1390_s27 + $0x1d8] sm:$0xff] %vm825_vm1, %v802_v47  ;;  %v637_v50 = vadd.f32 %v1383_v2, %v636_v48  ;;  %v797_v51 = vadd.f32 %v1383_v2, %v796_v49 }
 0x109   : > { %v1136_v52 = vpop.f32.mrf.mxu0  ;;  %v1184_v53 = vpop.f32.mrf.mxu1 }
 0x10a   : > { %852 = vst.msk [vmem:[%s1390_s27 + $0xd0] sm:$0xff] %vm825_vm1, %v637_v50  ;;  %884 = vst.msk [vmem:[%s1390_s27 + $0x1d0] sm:$0xff] %vm825_vm1, %v797_v51  ;;  %v652_v54 = vadd.f32 %v1136_v52, %v1383_v2  ;;  %v812_v55 = vadd.f32 %v1184_v53, %v1383_v2 }
 0x10b   : > { %v646_v56 = vpop.f32.mrf.mxu0  ;;  %v806_v57 = vpop.f32.mrf.mxu1 }
 0x10c   : > { %855 = vst.msk [vmem:[%s1390_s27 + $0xe8] sm:$0xff] %vm825_vm1, %v652_v54  ;;  %887 = vst.msk [vmem:[%s1390_s27 + $0x1e8] sm:$0xff] %vm825_vm1, %v812_v55  ;;  %v647_v58 = vadd.f32 %v1383_v2, %v646_v56  ;;  %v807_v59 = vadd.f32 %v1383_v2, %v806_v57 }
 0x10d   : > { %v1139_v60 = vpop.f32.mrf.mxu0  ;;  %v1187_v61 = vpop.f32.mrf.mxu1 }
 0x10e   : > { %854 = vst.msk [vmem:[%s1390_s27 + $0xe0] sm:$0xff] %vm825_vm1, %v647_v58  ;;  %886 = vst.msk [vmem:[%s1390_s27 + $0x1e0] sm:$0xff] %vm825_vm1, %v807_v59  ;;  %v662_v62 = vadd.f32 %v1139_v60, %v1383_v2  ;;  %v822_v63 = vadd.f32 %v1187_v61, %v1383_v2 }
 0x10f   : > { %v656_v0 = vpop.f32.mrf.mxu0  ;;  %v816_v1 = vpop.f32.mrf.mxu1 }
 0x110   : > { %857 = vst.msk [vmem:[%s1390_s27 + $0xf8] sm:$0xff] %vm825_vm1, %v662_v62  ;;  %889 = vst.msk [vmem:[%s1390_s27 + $0x1f8] sm:$0xff] %vm825_vm1, %v822_v63  ;;  %v657_v3 = vadd.f32 %v1383_v2, %v656_v0  ;;  %v817_v4 = vadd.f32 %v1383_v2, %v816_v1 }
 0x112   : > { %856 = vst.msk [vmem:[%s1390_s27 + $0xf0] sm:$0xff] %vm825_vm1, %v657_v3  ;;  %888 = vst.msk [vmem:[%s1390_s27 + $0x1f0] sm:$0xff] %vm825_vm1, %v817_v4 }
 0x113 PF: > { %s13_s12 = sadd.s32 1, %s1206_s12  }
 0x114   : > { %p10_p4 = scmp.ge.s32.totalorder %s13_s12, 8  }
 0x116   :  { %12 = sbr.rel (!%p10_p4) target bundleno = 1 (0x1), region = 62 }

// kernel: efficient_attention_block.4
= control target key start
LH: loop header
LB: loop body
LE: loop exit
PB: predicated region body
PF: predicated region fallthrough
CT: control target
= control target key end

     0   :  { %s1228_s12 = smov 0   ;;  %s1587_s0 = inlined_call_operand.vmem [shape: f32[3072,16], index: 0, kind: input, shape index: {}]   ;;  %s1588_s1 = inlined_call_operand.vmem [shape: f32[16,24], index: 1, kind: input, shape index: {}]   ;;  %s1589_s2 = inlined_call_operand.vmem [shape: f32[1,24], index: 2, kind: input, shape index: {}]   ;;  %s1590_s3 = inlined_call_operand.vmem [shape: f32[3072,24], index: 3, kind: output, shape index: {}]  }
   0x1 LB: > { %s946_s13 = sadd.s32 4294967295, %s1206_s12   ;;  %p950_p0 = scmp.ge.s32.totalorder %s1206_s12, 1  ;;  %s1206_s12 = sphi %s1228_s12, %s13_s12  }
   0x2   : > { %p138_p1 = scmp.lt.s32.totalorder %s1206_s12, 7 }
   0x4   : > { %p139_p2 = pnand %p950_p0, %p138_p1 }
   0x5   : > { %s951_s18 = sshll.u32 (!%p139_p2), %s946_s13, 6 }
   0x6   : > { %142 = sbr.rel (%p139_p2) target bundleno = 275 (0x113), region = 32  ;;  %p163_p3 = scmp.lt.s32.totalorder (!%p139_p2), %s951_s18, 383 }
   0xb   : > { %v239_v0 = vld [vmem:[%s1588_s1 + $0x8] sm:$0xff]  ;;  %v238_v1 = vld [vmem:[%s1588_s1] sm:$0xff]  ;;  %s1592_s18 = smov (!%p163_p3, %s951_s18), 383  ;;  %vm247_vm0 = vcmask 130048   ;;  %vm825_vm1 = vcmask 195584  }
   0xc   : > { %1088 = vmatprep.subr.mxu0 %v239_v0  ;;  %1188 = vmatprep.subr.mxu1 %v239_v0  ;;  %s952_s19 = sshll.u32 %s1592_s18, 3 }
   0xd   : > { %1089 = vmatpush3.msra.mxu0 %v239_v0  ;;  %1190 = vmatpush3.msra.mxu1 %v239_v0  ;;  %s1250_s22 = scalar_lea.vmem %s1587_s0, %s952_s19  ;;  %s1390_s27 = scalar_lea.vmem %s1590_s3, %s952_s19 }
   0xe   : > { %1090 = vmatprep.subr.mxu0 %v238_v1  ;;  %1189 = vmatprep.subr.mxu1 %v238_v1  ;;  %v174_v2 = vld [vmem:[%s1250_s22] sm:$0xff]  ;;  %v175_v4 = vld [vmem:[%s1250_s22 + $0x8] sm:$0xff]  ;;  %v176_v6 = vld [vmem:[%s1250_s22 + $0x10] sm:$0xff] }
   0xf   : > { %1091 = vmatpush3.msra.mxu0 %v238_v1  ;;  %1191 = vmatpush3.msra.mxu1 %v238_v1  ;;  %v206_v3 = vld [vmem:[%s1250_s22 + $0x100] sm:$0xff]  ;;  %v207_v5 = vld [vmem:[%s1250_s22 + $0x108] sm:$0xff]  ;;  %v208_v7 = vld [vmem:[%s1250_s22 + $0x110] sm:$0xff] }
  0x10   : > { %1092 = vmatprep.mubr.msk.f32.mxu0 %vm247_vm0, %v174_v2  ;;  %1140 = vmatprep.mubr.msk.f32.mxu1 %vm247_vm0, %v206_v3  ;;  %v177_v8 = vld [vmem:[%s1250_s22 + $0x18] sm:$0xff]  ;;  %v178_v10 = vld [vmem:[%s1250_s22 + $0x20] sm:$0xff]  ;;  %v179_v12 = vld [vmem:[%s1250_s22 + $0x28] sm:$0xff] }
  0x11   : > { %1093 = vmatmul.mubr.msk.f32.vlgmr.msra.gmra.mxu0 %vm247_vm0, %v175_v4  ;;  %1141 = vmatmul.mubr.msk.f32.vlgmr.msra.gmra.mxu1 %vm247_vm0, %v207_v5  ;;  %v209_v9 = vld [vmem:[%s1250_s22 + $0x118] sm:$0xff]  ;;  %v210_v11 = vld [vmem:[%s1250_s22 + $0x120] sm:$0xff]  ;;  %v211_v13 = vld [vmem:[%s1250_s22 + $0x128] sm:$0xff] }
  0x12   : > { %1095 = vmatprep.mubr.msk.f32.mxu0 %vm247_vm0, %v176_v6  ;;  %1143 = vmatprep.mubr.msk.f32.mxu1 %vm247_vm0, %v208_v7  ;;  %v180_v14 = vld [vmem:[%s1250_s22 + $0x30] sm:$0xff]  ;;  %v181_v16 = vld [vmem:[%s1250_s22 + $0x38] sm:$0xff]  ;;  %v182_v18 = vld [vmem:[%s1250_s22 + $0x40] sm:$0xff] }
  0x13   : > { %v212_v15 = vld [vmem:[%s1250_s22 + $0x130] sm:$0xff]  ;;  %v213_v17 = vld [vmem:[%s1250_s22 + $0x138] sm:$0xff]  ;;  %v214_v19 = vld [vmem:[%s1250_s22 + $0x140] sm:$0xff] }
  0x14   : > { %v183_v20 = vld [vmem:[%s1250_s22 + $0x48] sm:$0xff]  ;;  %v184_v22 = vld [vmem:[%s1250_s22 + $0x50] sm:$0xff]  ;;  %v185_v24 = vld [vmem:[%s1250_s22 + $0x58] sm:$0xff] }
  0x15   : > { %1096 = vmatmul.mubr.msk.f32.gmra.mxu0 %vm247_vm0, %v177_v8  ;;  %1144 = vmatmul.mubr.msk.f32.gmra.mxu1 %vm247_vm0, %v209_v9  ;;  %v215_v21 = vld [vmem:[%s1250_s22 + $0x148] sm:$0xff]  ;;  %v216_v23 = vld [vmem:[%s1250_s22 + $0x150] sm:$0xff]  ;;  %v217_v25 = vld [vmem:[%s1250_s22 + $0x158] sm:$0xff] }
  0x16   : > { %1098 = vmatprep.mubr.msk.f32.mxu0 %vm247_vm0, %v178_v10  ;;  %1146 = vmatprep.mubr.msk.f32.mxu1 %vm247_vm0, %v210_v11  ;;  %v186_v26 = vld [vmem:[%s1250_s22 + $0x60] sm:$0xff]  ;;  %v187_v28 = vld [vmem:[%s1250_s22 + $0x68] sm:$0xff]  ;;  %v188_v30 = vld [vmem:[%s1250_s22 + $0x70] sm:$0xff] }
  0x17   : > { %v218_v27 = vld [vmem:[%s1250_s22 + $0x160] sm:$0xff]  ;;  %v219_v29 = vld [vmem:[%s1250_s22 + $0x168] sm:$0xff]  ;;  %v220_v31 = vld [vmem:[%s1250_s22 + $0x170] sm:$0xff] }
  0x18   : > { %v189_v32 = vld [vmem:[%s1250_s22 + $0x78] sm:$0xff]  ;;  %v190_v34 = vld [vmem:[%s1250_s22 + $0x80] sm:$0xff]  ;;  %v191_v36 = vld [vmem:[%s1250_s22 + $0x88] sm:$0xff] }
  0x19   : > { %1099 = vmatmul.mubr.msk.f32.gmra.mxu0 %vm247_vm0, %v179_v12  ;;  %1147 = vmatmul.mubr.msk.f32.gmra.mxu1 %vm247_vm0, %v211_v13  ;;  %v221_v33 = vld [vmem:[%s1250_s22 + $0x178] sm:$0xff]  ;;  %v222_v35 = vld [vmem:[%s1250_s22 + $0x180] sm:$0xff]  ;;  %v223_v37 = vld [vmem:[%s1250_s22 + $0x188] sm:$0xff] }
  0x1a   : > { %1101 = vmatprep.mubr.msk.f32.mxu0 %vm247_vm0, %v180_v14  ;;  %1149 = vmatprep.mubr.msk.f32.mxu1 %vm247_vm0, %v212_v15  ;;  %v192_v38 = vld [vmem:[%s1250_s22 + $0x90] sm:$0xff]  ;;  %v193_v40 = vld [vmem:[%s1250_s22 + $0x98] sm:$0xff]  ;;  %v194_v42 = vld [vmem:[%s1250_s22 + $0xa0] sm:$0xff] }
  0x1b   : > { %v224_v39 = vld [vmem:[%s1250_s22 + $0x190] sm:$0xff]  ;;  %v225_v41 = vld [vmem:[%s1250_s22 + $0x198] sm:$0xff]  ;;  %v226_v43 = vld [vmem:[%s1250_s22 + $0x1a0] sm:$0xff] }
  0x1c   : > { %v195_v44 = vld [vmem:[%s1250_s22 + $0xa8] sm:$0xff]  ;;  %v196_v46 = vld [vmem:[%s1250_s22 + $0xb0] sm:$0xff]  ;;  %v197_v48 = vld [vmem:[%s1250_s22 + $0xb8] sm:$0xff] }
  0x1d   : > { %1102 = vmatmul.mubr.msk.f32.gmra.mxu0 %vm247_vm0, %v181_v16  ;;  %1150 = vmatmul.mubr.msk.f32.gmra.mxu1 %vm247_vm0, %v213_v17  ;;  %v227_v45 = vld [vmem:[%s1250_s22 + $0x1a8] sm:$0xff]  ;;  %v228_v47 = vld [vmem:[%s1250_s22 + $0x1b0] sm:$0xff]  ;;  %v229_v49 = vld [vmem:[%s1250_s22 + $0x1b8] sm:$0xff] }
  0x1e   : > { %1104 = vmatprep.mubr.msk.f32.mxu0 %vm247_vm0, %v182_v18  ;;  %1152 = vmatprep.mubr.msk.f32.mxu1 %vm247_vm0, %v214_v19  ;;  %v198_v50 = vld [vmem:[%s1250_s22 + $0xc0] sm:$0xff]  ;;  %v199_v52 = vld [vmem:[%s1250_s22 + $0xc8] sm:$0xff]  ;;  %v200_v54 = vld [vmem:[%s1250_s22 + $0xd0] sm:$0xff] }
  0x1f   : > { %v230_v51 = vld [vmem:[%s1250_s22 + $0x1c0] sm:$0xff]  ;;  %v231_v53 = vld [vmem:[%s1250_s22 + $0x1c8] sm:$0xff]  ;;  %v232_v55 = vld [vmem:[%s1250_s22 + $0x1d0] sm:$0xff] }
  0x20   : > { %v201_v56 = vld [vmem:[%s1250_s22 + $0xd8] sm:$0xff]  ;;  %v202_v58 = vld [vmem:[%s1250_s22 + $0xe0] sm:$0xff]  ;;  %v203_v60 = vld [vmem:[%s1250_s22 + $0xe8] sm:$0xff] }
  0x21   : > { %1105 = vmatmul.mubr.msk.f32.gmra.mxu0 %vm247_vm0, %v183_v20  ;;  %1153 = vmatmul.mubr.msk.f32.gmra.mxu1 %vm247_vm0, %v215_v21  ;;  %v233_v57 = vld [vmem:[%s1250_s22 + $0x1d8] sm:$0xff]  ;;  %v234_v59 = vld [vmem:[%s1250_s22 + $0x1e0] sm:$0xff]  ;;  %v235_v61 = vld [vmem:[%s1250_s22 + $0x1e8] sm:$0xff] }
  0x22   : > { %1107 = vmatprep.mubr.msk.f32.mxu0 %vm247_vm0, %v184_v22  ;;  %1155 = vmatprep.mubr.msk.f32.mxu1 %vm247_vm0, %v216_v23  ;;  %v204_v62 = vld [vmem:[%s1250_s22 + $0xf0] sm:$0xff]  ;;  %v205_v0 = vld [vmem:[%s1250_s22 + $0xf8] sm:$0xff]  ;;  %v1383_v2 = vld [vmem:[%s1589_s2] ss:$0 sm:$0xff] }
  0x23   : > { %v236_v63 = vld [vmem:[%s1250_s22 + $0x1f0] sm:$0xff]  ;;  %v237_v1 = vld [vmem:[%s1250_s22 + $0x1f8] sm:$0xff] }
  0x25   : > { %1108 = vmatmul.mubr.msk.f32.gmra.mxu0 %vm247_vm0, %v185_v24  ;;  %1156 = vmatmul.mubr.msk.f32.gmra.mxu1 %vm247_vm0, %v217_v25 }
  0x26   : > { %1110 = vmatprep.mubr.msk.f32.mxu0 %vm247_vm0, %v186_v26  ;;  %1158 = vmatprep.mubr.msk.f32.mxu1 %vm247_vm0, %v218_v27 }
  0x29   : > { %1111 = vmatmul.mubr.msk.f32.gmra.mxu0 %vm247_vm0, %v187_v28  ;;  %1159 = vmatmul.mubr.msk.f32.gmra.mxu1 %vm247_vm0, %v219_v29 }
  0x2a   : > { %1113 = vmatprep.mubr.msk.f32.mxu0 %vm247_vm0, %v188_v30  ;;  %1161 = vmatprep.mubr.msk.f32.mxu1 %vm247_vm0, %v220_v31 }
  0x2d   : > { %1114 = vmatmul.mubr.msk.f32.gmra.mxu0 %vm247_vm0, %v189_v32  ;;  %1162 = vmatmul.mubr.msk.f32.gmra.mxu1 %vm247_vm0, %v221_v33 }
  0x2e   : > { %1116 = vmatprep.mubr.msk.f32.mxu0 %vm247_vm0, %v190_v34  ;;  %1164 = vmatprep.mubr.msk.f32.mxu1 %vm247_vm0, %v222_v35 }
  0x31   : > { %1117 = vmatmul.mubr.msk.f32.gmra.mxu0 %vm247_vm0, %v191_v36  ;;  %1165 = vmatmul.mubr.msk.f32.gmra.mxu1 %vm247_vm0, %v223_v37 }
  0x32   : > { %1119 = vmatprep.mubr.msk.f32.mxu0 %vm247_vm0, %v192_v38  ;;  %1167 = vmatprep.mubr.msk.f32.mxu1 %vm247_vm0, %v224_v39 }
  0x35   : > { %1120 = vmatmul.mubr.msk.f32.gmra.mxu0 %vm247_vm0, %v193_v40  ;;  %1168 = vmatmul.mubr.msk.f32.gmra.mxu1 %vm247_vm0, %v225_v41 }
  0x36   : > { %1122 = vmatprep.mubr.msk.f32.mxu0 %vm247_vm0, %v194_v42  ;;  %1170 = vmatprep.mubr.msk.f32.mxu1 %vm247_vm0, %v226_v43 }
  0x39   : > { %1123 = vmatmul.mubr.msk.f32.gmra.mxu0 %vm247_vm0, %v195_v44  ;;  %1171 = vmatmul.mubr.msk.f32.gmra.mxu1 %vm247_vm0, %v227_v45 }
  0x3a   : > { %1125 = vmatprep.mubr.msk.f32.mxu0 %vm247_vm0, %v196_v46  ;;  %1173 = vmatprep.mubr.msk.f32.mxu1 %vm247_vm0, %v228_v47 }
  0x3d   : > { %1126 = vmatmul.mubr.msk.f32.gmra.mxu0 %vm247_vm0, %v197_v48  ;;  %1174 = vmatmul.mubr.msk.f32.gmra.mxu1 %vm247_vm0, %v229_v49 }
  0x3e   : > { %1128 = vmatprep.mubr.msk.f32.mxu0 %vm247_vm0, %v198_v50  ;;  %1176 = vmatprep.mubr.msk.f32.mxu1 %vm247_vm0, %v230_v51 }
  0x41   : > { %1129 = vmatmul.mubr.msk.f32.gmra.mxu0 %vm247_vm0, %v199_v52  ;;  %1177 = vmatmul.mubr.msk.f32.gmra.mxu1 %vm247_vm0, %v231_v53 }
  0x42   : > { %1131 = vmatprep.mubr.msk.f32.mxu0 %vm247_vm0, %v200_v54  ;;  %1179 = vmatprep.mubr.msk.f32.mxu1 %vm247_vm0, %v232_v55 }
  0x45   : > { %1132 = vmatmul.mubr.msk.f32.gmra.mxu0 %vm247_vm0, %v201_v56  ;;  %1180 = vmatmul.mubr.msk.f32.gmra.mxu1 %vm247_vm0, %v233_v57 }
  0x46   : > { %1134 = vmatprep.mubr.msk.f32.mxu0 %vm247_vm0, %v202_v58  ;;  %1182 = vmatprep.mubr.msk.f32.mxu1 %vm247_vm0, %v234_v59 }
  0x49   : > { %1135 = vmatmul.mubr.msk.f32.gmra.mxu0 %vm247_vm0, %v203_v60  ;;  %1183 = vmatmul.mubr.msk.f32.gmra.mxu1 %vm247_vm0, %v235_v61 }
  0x4a   : > { %1137 = vmatprep.mubr.msk.f32.mxu0 %vm247_vm0, %v204_v62  ;;  %1185 = vmatprep.mubr.msk.f32.mxu1 %vm247_vm0, %v236_v63 }
  0x4d   : > { %1138 = vmatmul.mubr.msk.f32.gmra.mxu0 %vm247_vm0, %v205_v0  ;;  %1186 = vmatmul.mubr.msk.f32.gmra.mxu1 %vm247_vm0, %v237_v1 }
  0xd1   : > { %v1094_v3 = vpop.f32.mrf.mxu0  ;;  %v1142_v4 = vpop.f32.mrf.mxu1 }
  0xd2   : > { %v512_v5 = vadd.f32 %v1094_v3, %v1383_v2  ;;  %v672_v6 = vadd.f32 %v1142_v4, %v1383_v2 }
  0xd3   : > { %v506_v7 = vpop.f32.mrf.mxu0  ;;  %v666_v8 = vpop.f32.mrf.mxu1 }
  0xd4   : > { %827 = vst.msk [vmem:[%s1390_s27 + $0x8] sm:$0xff] %vm825_vm1, %v512_v5  ;;  %859 = vst.msk [vmem:[%s1390_s27 + $0x108] sm:$0xff] %vm825_vm1, %v672_v6  ;;  %v507_v9 = vadd.f32 %v1383_v2, %v506_v7  ;;  %v667_v10 = vadd.f32 %v1383_v2, %v666_v8 }
  0xd5   : > { %v1097_v11 = vpop.f32.mrf.mxu0  ;;  %v1145_v12 = vpop.f32.mrf.mxu1 }
  0xd6   : > { %826 = vst.msk [vmem:[%s1390_s27] sm:$0xff] %vm825_vm1, %v507_v9  ;;  %858 = vst.msk [vmem:[%s1390_s27 + $0x100] sm:$0xff] %vm825_vm1, %v667_v10  ;;  %v522_v13 = vadd.f32 %v1097_v11, %v1383_v2  ;;  %v682_v14 = vadd.f32 %v1145_v12, %v1383_v2 }
  0xd7   : > { %v516_v15 = vpop.f32.mrf.mxu0  ;;  %v676_v16 = vpop.f32.mrf.mxu1 }
  0xd8   : > { %829 = vst.msk [vmem:[%s1390_s27 + $0x18] sm:$0xff] %vm825_vm1, %v522_v13  ;;  %861 = vst.msk [vmem:[%s1390_s27 + $0x118] sm:$0xff] %vm825_vm1, %v682_v14  ;;  %v517_v17 = vadd.f32 %v1383_v2, %v516_v15  ;;  %v677_v18 = vadd.f32 %v1383_v2, %v676_v16 }
  0xd9   : > { %v1100_v19 = vpop.f32.mrf.mxu0  ;;  %v1148_v20 = vpop.f32.mrf.mxu1 }
  0xda   : > { %828 = vst.msk [vmem:[%s1390_s27 + $0x10] sm:$0xff] %vm825_vm1, %v517_v17  ;;  %860 = vst.msk [vmem:[%s1390_s27 + $0x110] sm:$0xff] %vm825_vm1, %v677_v18  ;;  %v532_v21 = vadd.f32 %v1100_v19, %v1383_v2  ;;  %v692_v22 = vadd.f32 %v1148_v20, %v1383_v2 }
  0xdb   : > { %v526_v23 = vpop.f32.mrf.mxu0  ;;  %v686_v24 = vpop.f32.mrf.mxu1 }
  0xdc   : > { %831 = vst.msk [vmem:[%s1390_s27 + $0x28] sm:$0xff] %vm825_vm1, %v532_v21  ;;  %863 = vst.msk [vmem:[%s1390_s27 + $0x128] sm:$0xff] %vm825_vm1, %v692_v22  ;;  %v527_v25 = vadd.f32 %v1383_v2, %v526_v23  ;;  %v687_v26 = vadd.f32 %v1383_v2, %v686_v24 }
  0xdd   : > { %v1103_v27 = vpop.f32.mrf.mxu0  ;;  %v1151_v28 = vpop.f32.mrf.mxu1 }
  0xde   : > { %830 = vst.msk [vmem:[%s1390_s27 + $0x20] sm:$0xff] %vm825_vm1, %v527_v25  ;;  %862 = vst.msk [vmem:[%s1390_s27 + $0x120] sm:$0xff] %vm825_vm1, %v687_v26  ;;  %v542_v29 = vadd.f32 %v1103_v27, %v1383_v2  ;;  %v702_v30 = vadd.f32 %v1151_v28, %v1383_v2 }
  0xdf   : > { %v536_v31 = vpop.f32.mrf.mxu0  ;;  %v696_v32 = vpop.f32.mrf.mxu1 }
  0xe0   : > { %833 = vst.msk [vmem:[%s1390_s27 + $0x38] sm:$0xff] %vm825_vm1, %v542_v29  ;;  %865 = vst.msk [vmem:[%s1390_s27 + $0x138] sm:$0xff] %vm825_vm1, %v702_v30  ;;  %v537_v33 = vadd.f32 %v1383_v2, %v536_v31  ;;  %v697_v34 = vadd.f32 %v1383_v2, %v696_v32 }
  0xe1   : > { %v1106_v35 = vpop.f32.mrf.mxu0  ;;  %v1154_v36 = vpop.f32.mrf.mxu1 }
  0xe2   : > { %832 = vst.msk [vmem:[%s1390_s27 + $0x30] sm:$0xff] %vm825_vm1, %v537_v33  ;;  %864 = vst.msk [vmem:[%s1390_s27 + $0x130] sm:$0xff] %vm825_vm1, %v697_v34  ;;  %v552_v37 = vadd.f32 %v1106_v35, %v1383_v2  ;;  %v712_v38 = vadd.f32 %v1154_v36, %v1383_v2 }
  0xe3   : > { %v546_v39 = vpop.f32.mrf.mxu0  ;;  %v706_v40 = vpop.f32.mrf.mxu1 }
  0xe4   : > { %835 = vst.msk [vmem:[%s1390_s27 + $0x48] sm:$0xff] %vm825_vm1, %v552_v37  ;;  %867 = vst.msk [vmem:[%s1390_s27 + $0x148] sm:$0xff] %vm825_vm1, %v712_v38  ;;  %v547_v41 = vadd.f32 %v1383_v2, %v546_v39  ;;  %v707_v42 = vadd.f32 %v1383_v2, %v706_v40 }
  0xe5   : > { %v1109_v43 = vpop.f32.mrf.mxu0  ;;  %v1157_v44 = vpop.f32.mrf.mxu1 }
  0xe6   : > { %834 = vst.msk [vmem:[%s1390_s27 + $0x40] sm:$0xff] %vm825_vm1, %v547_v41  ;;  %866 = vst.msk [vmem:[%s1390_s27 + $0x140] sm:$0xff] %vm825_vm1, %v707_v42  ;;  %v562_v45 = vadd.f32 %v1109_v43, %v1383_v2  ;;  %v722_v46 = vadd.f32 %v1157_v44, %v1383_v2 }
  0xe7   : > { %v556_v47 = vpop.f32.mrf.mxu0  ;;  %v716_v48 = vpop.f32.mrf.mxu1 }
  0xe8   : > { %837 = vst.msk [vmem:[%s1390_s27 + $0x58] sm:$0xff] %vm825_vm1, %v562_v45  ;;  %869 = vst.msk [vmem:[%s1390_s27 + $0x158] sm:$0xff] %vm825_vm1, %v722_v46  ;;  %v557_v49 = vadd.f32 %v1383_v2, %v556_v47  ;;  %v717_v50 = vadd.f32 %v1383_v2, %v716_v48 }
  0xe9   : > { %v1112_v51 = vpop.f32.mrf.mxu0  ;;  %v1160_v52 = vpop.f32.mrf.mxu1 }
  0xea   : > { %836 = vst.msk [vmem:[%s1390_s27 + $0x50] sm:$0xff] %vm825_vm1, %v557_v49  ;;  %868 = vst.msk [vmem:[%s1390_s27 + $0x150] sm:$0xff] %vm825_vm1, %v717_v50  ;;  %v572_v53 = vadd.f32 %v1112_v51, %v1383_v2  ;;  %v732_v54 = vadd.f32 %v1160_v52, %v1383_v2 }
  0xeb   : > { %v566_v55 = vpop.f32.mrf.mxu0  ;;  %v726_v56 = vpop.f32.mrf.mxu1 }
  0xec   : > { %839 = vst.msk [vmem:[%s1390_s27 + $0x68] sm:$0xff] %vm825_vm1, %v572_v53  ;;  %871 = vst.msk [vmem:[%s1390_s27 + $0x168] sm:$0xff] %vm825_vm1, %v732_v54  ;;  %v567_v57 = vadd.f32 %v1383_v2, %v566_v55  ;;  %v727_v58 = vadd.f32 %v1383_v2, %v726_v56 }
  0xed   : > { %v1115_v59 = vpop.f32.mrf.mxu0  ;;  %v1163_v60 = vpop.f32.mrf.mxu1 }
  0xee   : > { %838 = vst.msk [vmem:[%s1390_s27 + $0x60] sm:$0xff] %vm825_vm1, %v567_v57  ;;  %870 = vst.msk [vmem:[%s1390_s27 + $0x160] sm:$0xff] %vm825_vm1, %v727_v58  ;;  %v582_v61 = vadd.f32 %v1115_v59, %v1383_v2  ;;  %v742_v62 = vadd.f32 %v1163_v60, %v1383_v2 }
  0xef   : > { %v576_v63 = vpop.f32.mrf.mxu0  ;;  %v736_v0 = vpop.f32.mrf.mxu1 }
  0xf0   : > { %841 = vst.msk [vmem:[%s1390_s27 + $0x78] sm:$0xff] %vm825_vm1, %v582_v61  ;;  %873 = vst.msk [vmem:[%s1390_s27 + $0x178] sm:$0xff] %vm825_vm1, %v742_v62  ;;  %v577_v1 = vadd.f32 %v1383_v2, %v576_v63  ;;  %v737_v3 = vadd.f32 %v1383_v2, %v736_v0 }
  0xf1   : > { %v1118_v4 = vpop.f32.mrf.mxu0  ;;  %v1166_v5 = vpop.f32.mrf.mxu1 }
  0xf2   : > { %840 = vst.msk [vmem:[%s1390_s27 + $0x70] sm:$0xff] %vm825_vm1, %v577_v1  ;;  %872 = vst.msk [vmem:[%s1390_s27 + $0x170] sm:$0xff] %vm825_vm1, %v737_v3  ;;  %v592_v6 = vadd.f32 %v1118_v4, %v1383_v2  ;;  %v752_v7 = vadd.f32 %v1166_v5, %v1383_v2 }
  0xf3   : > { %v586_v8 = vpop.f32.mrf.mxu0  ;;  %v746_v9 = vpop.f32.mrf.mxu1 }
  0xf4   : > { %843 = vst.msk [vmem:[%s1390_s27 + $0x88] sm:$0xff] %vm825_vm1, %v592_v6  ;;  %875 = vst.msk [vmem:[%s1390_s27 + $0x188] sm:$0xff] %vm825_vm1, %v752_v7  ;;  %v587_v10 = vadd.f32 %v1383_v2, %v586_v8  ;;  %v747_v11 = vadd.f32 %v1383_v2, %v746_v9 }
  0xf5   : > { %v1121_v12 = vpop.f32.mrf.mxu0  ;;  %v1169_v13 = vpop.f32.mrf.mxu1 }
  0xf6   : > { %842 = vst.msk [vmem:[%s1390_s27 + $0x80] sm:$0xff] %vm825_vm1, %v587_v10  ;;  %874 = vst.msk [vmem:[%s1390_s27 + $0x180] sm:$0xff] %vm825_vm1, %v747_v11  ;;  %v602_v14 = vadd.f32 %v1121_v12, %v1383_v2  ;;  %v762_v15 = vadd.f32 %v1169_v13, %v1383_v2 }
  0xf7   : > { %v596_v16 = vpop.f32.mrf.mxu0  ;;  %v756_v17 = vpop.f32.mrf.mxu1 }
  0xf8   : > { %845 = vst.msk [vmem:[%s1390_s27 + $0x98] sm:$0xff] %vm825_vm1, %v602_v14  ;;  %877 = vst.msk [vmem:[%s1390_s27 + $0x198] sm:$0xff] %vm825_vm1, %v762_v15  ;;  %v597_v18 = vadd.f32 %v1383_v2, %v596_v16  ;;  %v757_v19 = vadd.f32 %v1383_v2, %v756_v17 }
  0xf9   : > { %v1124_v20 = vpop.f32.mrf.mxu0  ;;  %v1172_v21 = vpop.f32.mrf.mxu1 }
  0xfa   : > { %844 = vst.msk [vmem:[%s1390_s27 + $0x90] sm:$0xff] %vm825_vm1, %v597_v18  ;;  %876 = vst.msk [vmem:[%s1390_s27 + $0x190] sm:$0xff] %vm825_vm1, %v757_v19  ;;  %v612_v22 = vadd.f32 %v1124_v20, %v1383_v2  ;;  %v772_v23 = vadd.f32 %v1172_v21, %v1383_v2 }
  0xfb   : > { %v606_v24 = vpop.f32.mrf.mxu0  ;;  %v766_v25 = vpop.f32.mrf.mxu1 }
  0xfc   : > { %847 = vst.msk [vmem:[%s1390_s27 + $0xa8] sm:$0xff] %vm825_vm1, %v612_v22  ;;  %879 = vst.msk [vmem:[%s1390_s27 + $0x1a8] sm:$0xff] %vm825_vm1, %v772_v23  ;;  %v607_v26 = vadd.f32 %v1383_v2, %v606_v24  ;;  %v767_v27 = vadd.f32 %v1383_v2, %v766_v25 }
  0xfd   : > { %v1127_v28 = vpop.f32.mrf.mxu0  ;;  %v1175_v29 = vpop.f32.mrf.mxu1 }
  0xfe   : > { %846 = vst.msk [vmem:[%s1390_s27 + $0xa0] sm:$0xff] %vm825_vm1, %v607_v26  ;;  %878 = vst.msk [vmem:[%s1390_s27 + $0x1a0] sm:$0xff] %vm825_vm1, %v767_v27  ;;  %v622_v30 = vadd.f32 %v1127_v28, %v1383_v2  ;;  %v782_v31 = vadd.f32 %v1175_v29, %v1383_v2 }
  0xff   : > { %v616_v32 = vpop.f32.mrf.mxu0  ;;  %v776_v33 = vpop.f32.mrf.mxu1 }
 0x100   : > { %849 = vst.msk [vmem:[%s1390_s27 + $0xb8] sm:$0xff] %vm825_vm1, %v622_v30  ;;  %881 = vst.msk [vmem:[%s1390_s27 + $0x1b8] sm:$0xff] %vm825_vm1, %v782_v31  ;;  %v617_v34 = vadd.f32 %v1383_v2, %v616_v32  ;;  %v777_v35 = vadd.f32 %v1383_v2, %v776_v33 }
 0x101   : > { %v1130_v36 = vpop.f32.mrf.mxu0  ;;  %v1178_v37 = vpop.f32.mrf.mxu1 }
 0x102   : > { %848 = vst.msk [vmem:[%s1390_s27 + $0xb0] sm:$0xff] %vm825_vm1, %v617_v34  ;;  %880 = vst.msk [vmem:[%s1390_s27 + $0x1b0] sm:$0xff] %vm825_vm1, %v777_v35  ;;  %v632_v38 = vadd.f32 %v1130_v36, %v1383_v2  ;;  %v792_v39 = vadd.f32 %v1178_v37, %v1383_v2 }
 0x103   : > { %v626_v40 = vpop.f32.mrf.mxu0  ;;  %v786_v41 = vpop.f32.mrf.mxu1 }
 0x104   : > { %851 = vst.msk [vmem:[%s1390_s27 + $0xc8] sm:$0xff] %vm825_vm1, %v632_v38  ;;  %883 = vst.msk [vmem:[%s1390_s27 + $0x1c8] sm:$0xff] %vm825_vm1, %v792_v39  ;;  %v627_v42 = vadd.f32 %v1383_v2, %v626_v40  ;;  %v787_v43 = vadd.f32 %v1383_v2, %v786_v41 }
 0x105   : > { %v1133_v44 = vpop.f32.mrf.mxu0  ;;  %v1181_v45 = vpop.f32.mrf.mxu1 }
 0x106   : > { %850 = vst.msk [vmem:[%s1390_s27 + $0xc0] sm:$0xff] %vm825_vm1, %v627_v42  ;;  %882 = vst.msk [vmem:[%s1390_s27 + $0x1c0] sm:$0xff] %vm825_vm1, %v787_v43  ;;  %v642_v46 = vadd.f32 %v1133_v44, %v1383_v2  ;;  %v802_v47 = vadd.f32 %v1181_v45, %v1383_v2 }
 0x107   : > { %v636_v48 = vpop.f32.mrf.mxu0  ;;  %v796_v49 = vpop.f32.mrf.mxu1 }
 0x108   : > { %853 = vst.msk [vmem:[%s1390_s27 + $0xd8] sm:$0xff] %vm825_vm1, %v642_v46  ;;  %885 = vst.msk [vmem:[%s1390_s27 + $0x1d8] sm:$0xff] %vm825_vm1, %v802_v47  ;;  %v637_v50 = vadd.f32 %v1383_v2, %v636_v48  ;;  %v797_v51 = vadd.f32 %v1383_v2, %v796_v49 }
 0x109   : > { %v1136_v52 = vpop.f32.mrf.mxu0  ;;  %v1184_v53 = vpop.f32.mrf.mxu1 }
 0x10a   : > { %852 = vst.msk [vmem:[%s1390_s27 + $0xd0] sm:$0xff] %vm825_vm1, %v637_v50  ;;  %884 = vst.msk [vmem:[%s1390_s27 + $0x1d0] sm:$0xff] %vm825_vm1, %v797_v51  ;;  %v652_v54 = vadd.f32 %v1136_v52, %v1383_v2  ;;  %v812_v55 = vadd.f32 %v1184_v53, %v1383_v2 }
 0x10b   : > { %v646_v56 = vpop.f32.mrf.mxu0  ;;  %v806_v57 = vpop.f32.mrf.mxu1 }
 0x10c   : > { %855 = vst.msk [vmem:[%s1390_s27 + $0xe8] sm:$0xff] %vm825_vm1, %v652_v54  ;;  %887 = vst.msk [vmem:[%s1390_s27 + $0x1e8] sm:$0xff] %vm825_vm1, %v812_v55  ;;  %v647_v58 = vadd.f32 %v1383_v2, %v646_v56  ;;  %v807_v59 = vadd.f32 %v1383_v2, %v806_v57 }
 0x10d   : > { %v1139_v60 = vpop.f32.mrf.mxu0  ;;  %v1187_v61 = vpop.f32.mrf.mxu1 }
 0x10e   : > { %854 = vst.msk [vmem:[%s1390_s27 + $0xe0] sm:$0xff] %vm825_vm1, %v647_v58  ;;  %886 = vst.msk [vmem:[%s1390_s27 + $0x1e0] sm:$0xff] %vm825_vm1, %v807_v59  ;;  %v662_v62 = vadd.f32 %v1139_v60, %v1383_v2  ;;  %v822_v63 = vadd.f32 %v1187_v61, %v1383_v2 }
 0x10f   : > { %v656_v0 = vpop.f32.mrf.mxu0  ;;  %v816_v1 = vpop.f32.mrf.mxu1 }
 0x110   : > { %857 = vst.msk [vmem:[%s1390_s27 + $0xf8] sm:$0xff] %vm825_vm1, %v662_v62  ;;  %889 = vst.msk [vmem:[%s1390_s27 + $0x1f8] sm:$0xff] %vm825_vm1, %v822_v63  ;;  %v657_v3 = vadd.f32 %v1383_v2, %v656_v0  ;;  %v817_v4 = vadd.f32 %v1383_v2, %v816_v1 }
 0x112   : > { %856 = vst.msk [vmem:[%s1390_s27 + $0xf0] sm:$0xff] %vm825_vm1, %v657_v3  ;;  %888 = vst.msk [vmem:[%s1390_s27 + $0x1f0] sm:$0xff] %vm825_vm1, %v817_v4 }
 0x113 PF: > { %s13_s12 = sadd.s32 1, %s1206_s12  }
 0x114   : > { %p10_p4 = scmp.ge.s32.totalorder %s13_s12, 8  }
 0x116   :  { %12 = sbr.rel (!%p10_p4) target bundleno = 1 (0x1), region = 62 }

// kernel: efficient_attention_block.5
= control target key start
LH: loop header
LB: loop body
LE: loop exit
PB: predicated region body
PF: predicated region fallthrough
CT: control target
= control target key end

     0   :  { %s8272_s12 = smov 0   ;;  %s10384_s0 = inlined_call_operand.vmem [shape: f32[64,64,8], index: 0, kind: input, shape index: {}]   ;;  %s10385_s1 = inlined_call_operand.vmem [shape: f32[64,8,64], index: 1, kind: input, shape index: {}]   ;;  %s10386_s2 = inlined_call_operand.vmem [shape: f32[64,64,16], index: 2, kind: input, shape index: {}]   ;;  %s10387_s3 = inlined_call_operand.vmem [shape: f32[64,64,16], index: 3, kind: output, shape index: {}]  }
   0x1 LB: > { %s6375_s13 = sadd.s32 4294967295, %s8250_s12   ;;  %p6379_p0 = scmp.ge.s32.totalorder %s8250_s12, 1  ;;  %s8250_s12 = sphi %s8272_s12, %s13_s12  }
   0x2   : > { %p162_p1 = scmp.lt.s32.totalorder %s8250_s12, 5 }
   0x4   : > { %p163_p2 = pnand %p6379_p0, %p162_p1 }
   0x6   : > { %166 = sbr.rel (%p163_p2) target bundleno = 881 (0x371), region = 32 }
   0xb   : > { %s6380_s14 = sshll.u32 %s6375_s13, 4  ;;  %vm626_vm0 = vcmask 64512   ;;  %vm2691_vm1 = vcmask 523264   ;;  %vm6164_vm2 = vcmask 130048  }
   0xc   : > { %p200_p3 = scmp.lt.s32.totalorder %s6380_s14, 63 }
   0xe   : > { %s10644_s14 = smov (!%p200_p3, %s6380_s14), 63 }
   0xf   : > { %s8280_s15 = sshll.u32 %s10644_s14, 6  ;;  %s6384_s16 = sshll.u32 %s10644_s14, 3 }
  0x10   : > { %s8286_s19 = scalar_lea.vmem %s10384_s0, %s8280_s15  ;;  %s8291_s22 = scalar_lea.vmem %s10385_s1, %s6384_s16 }
  0x11   : > { %v482_v0 = vld [vmem:[%s8291_s22] sm:$0xff]  ;;  %v483_v1 = vld [vmem:[%s8291_s22 + $0x8] sm:$0xff]  ;;  %v228_v10 = vld [vmem:[%s8286_s19 + $0x10] sm:$0xff]  ;;  %s8611_s25 = scalar_lea.vmem %s10386_s2, %s8280_s15  ;;  %s10017_s28 = scalar_lea.vmem %s10387_s3, %s8280_s15 }
  0x12   : > { %v226_v2 = vld [vmem:[%s8286_s19] sm:$0xff]  ;;  %7052 = vmatprep.subr.mxu0 %v482_v0  ;;  %7066 = vmatprep.subr.mxu1 %v483_v1  ;;  %v227_v5 = vld [vmem:[%s8286_s19 + $0x8] sm:$0xff]  ;;  %v229_v11 = vld [vmem:[%s8286_s19 + $0x18] sm:$0xff]  ;;  %v356_v13 = vmul.f32 0.35355338, %v228_v10 }
  0x13   : > { %v354_v3 = vmul.f32 0.35355338, %v226_v2  ;;  %v234_v4 = vld [vmem:[%s8286_s19 + $0x40] sm:$0xff]  ;;  %v235_v6 = vld [vmem:[%s8286_s19 + $0x48] sm:$0xff]  ;;  %7053 = vmatpush3.msra.mxu0 %v482_v0  ;;  %7067 = vmatpush3.msra.mxu1 %v483_v1  ;;  %v355_v8 = vmul.f32 0.35355338, %v227_v5 }
  0x14   : > { %v362_v7 = vmul.f32 0.35355338, %v234_v4  ;;  %v363_v9 = vmul.f32 0.35355338, %v235_v6  ;;  %v236_v12 = vld [vmem:[%s8286_s19 + $0x50] sm:$0xff]  ;;  %v237_v16 = vld [vmem:[%s8286_s19 + $0x58] sm:$0xff] }
  0x15   : > { %7054 = vmatprep.mubr.msk.f32.mxu0 %vm626_vm0, %v354_v3  ;;  %v357_v14 = vmul.f32 0.35355338, %v229_v11  ;;  %v364_v15 = vmul.f32 0.35355338, %v236_v12  ;;  %v230_v17 = vld [vmem:[%s8286_s19 + $0x20] sm:$0xff]  ;;  %v231_v18 = vld [vmem:[%s8286_s19 + $0x28] sm:$0xff] }
  0x16   : > { %7068 = vmatprep.mubr.msk.f32.mxu1 %vm626_vm0, %v362_v7  ;;  %7055 = vmatmul.mubr.msk.f32.vlgmr.msra.gmra.mxu0 %vm626_vm0, %v355_v8  ;;  %v365_v19 = vmul.f32 0.35355338, %v237_v16  ;;  %v358_v20 = vmul.f32 0.35355338, %v230_v17  ;;  %v484_v21 = vld [vmem:[%s8291_s22 + $0x10] sm:$0xff]  ;;  %v238_v22 = vld [vmem:[%s8286_s19 + $0x60] sm:$0xff] }
  0x17   : > { %7069 = vmatmul.mubr.msk.f32.vlgmr.msra.gmra.mxu1 %vm626_vm0, %v363_v9  ;;  %7057 = vmatprep.mubr.msk.f32.mxu0 %vm626_vm0, %v356_v13  ;;  %v239_v23 = vld [vmem:[%s8286_s19 + $0x68] sm:$0xff]  ;;  %v359_v24 = vmul.f32 0.35355338, %v231_v18  ;;  %v366_v25 = vmul.f32 0.35355338, %v238_v22  ;;  %v485_v26 = vld [vmem:[%s8291_s22 + $0x18] sm:$0xff] }
  0x18   : > { %7071 = vmatprep.mubr.msk.f32.mxu1 %vm626_vm0, %v364_v15  ;;  %7080 = vmatprep.subr.mxu0 %v484_v21  ;;  %v232_v27 = vld [vmem:[%s8286_s19 + $0x30] sm:$0xff]  ;;  %v367_v28 = vmul.f32 0.35355338, %v239_v23  ;;  %v233_v30 = vld [vmem:[%s8286_s19 + $0x38] sm:$0xff]  ;;  %v242_v34 = vld [vmem:[%s8286_s19 + $0x80] sm:$0xff] }
  0x19   : > { %v360_v29 = vmul.f32 0.35355338, %v232_v27  ;;  %v240_v31 = vld [vmem:[%s8286_s19 + $0x70] sm:$0xff]  ;;  %7081 = vmatpush3.msra.mxu0 %v484_v21  ;;  %v241_v33 = vld [vmem:[%s8286_s19 + $0x78] sm:$0xff]  ;;  %7094 = vmatprep.subr.mxu1 %v485_v26  ;;  %v250_v35 = vld [vmem:[%s8286_s19 + $0xc0] sm:$0xff] }
  0x1a   : > { %7058 = vmatmul.mubr.msk.f32.gmra.mxu0 %vm626_vm0, %v357_v14  ;;  %v368_v32 = vmul.f32 0.35355338, %v240_v31  ;;  %7095 = vmatpush3.msra.mxu1 %v485_v26  ;;  %v361_v36 = vmul.f32 0.35355338, %v233_v30  ;;  %v369_v37 = vmul.f32 0.35355338, %v241_v33 }
  0x1b   : > { %7072 = vmatmul.mubr.msk.f32.gmra.mxu1 %vm626_vm0, %v365_v19  ;;  %7060 = vmatprep.mubr.msk.f32.mxu0 %vm626_vm0, %v358_v20  ;;  %v370_v38 = vmul.f32 0.35355338, %v242_v34  ;;  %v243_v39 = vld [vmem:[%s8286_s19 + $0x88] sm:$0xff]  ;;  %v378_v40 = vmul.f32 0.35355338, %v250_v35  ;;  %v244_v42 = vld [vmem:[%s8286_s19 + $0x90] sm:$0xff] }
  0x1c   : > { %7074 = vmatprep.mubr.msk.f32.mxu1 %vm626_vm0, %v366_v25  ;;  %v251_v41 = vld [vmem:[%s8286_s19 + $0xc8] sm:$0xff]  ;;  %v252_v43 = vld [vmem:[%s8286_s19 + $0xd0] sm:$0xff]  ;;  %v371_v44 = vmul.f32 0.35355338, %v243_v39  ;;  %v372_v46 = vmul.f32 0.35355338, %v244_v42 }
  0x1d   : > { %v379_v45 = vmul.f32 0.35355338, %v251_v41  ;;  %v245_v47 = vld [vmem:[%s8286_s19 + $0x98] sm:$0xff]  ;;  %v486_v48 = vld [vmem:[%s8291_s22 + $0x20] sm:$0xff]  ;;  %v380_v49 = vmul.f32 0.35355338, %v252_v43 }
  0x1e   : > { %7061 = vmatmul.mubr.msk.f32.gmra.mxu0 %vm626_vm0, %v359_v24  ;;  %v253_v50 = vld [vmem:[%s8286_s19 + $0xd8] sm:$0xff]  ;;  %v246_v51 = vld [vmem:[%s8286_s19 + $0xa0] sm:$0xff]  ;;  %7108 = vmatprep.subr.mxu0 %v486_v48  ;;  %v487_v52 = vld [vmem:[%s8291_s22 + $0x28] sm:$0xff]  ;;  %v373_v54 = vmul.f32 0.35355338, %v245_v47 }
  0x1f   : > { %7075 = vmatmul.mubr.msk.f32.gmra.mxu1 %vm626_vm0, %v367_v28  ;;  %7063 = vmatprep.mubr.msk.f32.mxu0 %vm626_vm0, %v360_v29  ;;  %v254_v53 = vld [vmem:[%s8286_s19 + $0xe0] sm:$0xff]  ;;  %v381_v55 = vmul.f32 0.35355338, %v253_v50  ;;  %v374_v56 = vmul.f32 0.35355338, %v246_v51  ;;  %v247_v57 = vld [vmem:[%s8286_s19 + $0xa8] sm:$0xff] }
  0x20   : > { %7077 = vmatprep.mubr.msk.f32.mxu1 %vm626_vm0, %v368_v32  ;;  %7122 = vmatprep.subr.mxu1 %v487_v52  ;;  %v382_v58 = vmul.f32 0.35355338, %v254_v53  ;;  %v255_v59 = vld [vmem:[%s8286_s19 + $0xe8] sm:$0xff]  ;;  %v248_v60 = vld [vmem:[%s8286_s19 + $0xb0] sm:$0xff]  ;;  %v375_v62 = vmul.f32 0.35355338, %v247_v57 }
  0x21   : > { %v256_v61 = vld [vmem:[%s8286_s19 + $0xf0] sm:$0xff]  ;;  %v383_v63 = vmul.f32 0.35355338, %v255_v59  ;;  %v376_v0 = vmul.f32 0.35355338, %v248_v60  ;;  %v249_v1 = vld [vmem:[%s8286_s19 + $0xb8] sm:$0xff] }
  0x22   : > { %7064 = vmatmul.mubr.msk.f32.gmra.mxu0 %vm626_vm0, %v361_v36  ;;  %v384_v2 = vmul.f32 0.35355338, %v256_v61  ;;  %v257_v3 = vld [vmem:[%s8286_s19 + $0xf8] sm:$0xff]  ;;  %v258_v4 = vld [vmem:[%s8286_s19 + $0x100] sm:$0xff]  ;;  %v488_v6 = vld [vmem:[%s8291_s22 + $0x30] sm:$0xff] }
  0x23   : > { %7078 = vmatmul.mubr.msk.f32.gmra.mxu1 %vm626_vm0, %v369_v37  ;;  %7082 = vmatprep.mubr.msk.f32.mxu0 %vm626_vm0, %v370_v38  ;;  %v266_v5 = vld [vmem:[%s8286_s19 + $0x140] sm:$0xff]  ;;  %v377_v7 = vmul.f32 0.35355338, %v249_v1  ;;  %v385_v8 = vmul.f32 0.35355338, %v257_v3  ;;  %v259_v10 = vld [vmem:[%s8286_s19 + $0x108] sm:$0xff] }
  0x24   : > { %7096 = vmatprep.mubr.msk.f32.mxu1 %vm626_vm0, %v378_v40  ;;  %v386_v9 = vmul.f32 0.35355338, %v258_v4  ;;  %v489_v11 = vld [vmem:[%s8291_s22 + $0x38] sm:$0xff]  ;;  %v394_v12 = vmul.f32 0.35355338, %v266_v5  ;;  %v267_v13 = vld [vmem:[%s8286_s19 + $0x148] sm:$0xff] }
  0x25   : > { %v260_v14 = vld [vmem:[%s8286_s19 + $0x110] sm:$0xff]  ;;  %v387_v16 = vmul.f32 0.35355338, %v259_v10  ;;  %v395_v17 = vmul.f32 0.35355338, %v267_v13  ;;  %v261_v19 = vld [vmem:[%s8286_s19 + $0x118] sm:$0xff] }
  0x26   : > { %7083 = vmatmul.mubr.msk.f32.vlgmr.msra.gmra.mxu0 %vm626_vm0, %v371_v44  ;;  %v268_v15 = vld [vmem:[%s8286_s19 + $0x150] sm:$0xff]  ;;  %v388_v18 = vmul.f32 0.35355338, %v260_v14  ;;  %v269_v21 = vld [vmem:[%s8286_s19 + $0x158] sm:$0xff]  ;;  %v262_v22 = vld [vmem:[%s8286_s19 + $0x120] sm:$0xff] }
  0x27   : > { %7097 = vmatmul.mubr.msk.f32.vlgmr.msra.gmra.mxu1 %vm626_vm0, %v379_v45  ;;  %7085 = vmatprep.mubr.msk.f32.mxu0 %vm626_vm0, %v372_v46  ;;  %v396_v20 = vmul.f32 0.35355338, %v268_v15  ;;  %v270_v23 = vld [vmem:[%s8286_s19 + $0x160] sm:$0xff]  ;;  %v389_v24 = vmul.f32 0.35355338, %v261_v19  ;;  %v263_v27 = vld [vmem:[%s8286_s19 + $0x128] sm:$0xff] }
  0x28   : > { %7099 = vmatprep.mubr.msk.f32.mxu1 %vm626_vm0, %v380_v49  ;;  %7109 = vmatpush3.msra.mxu0 %v486_v48  ;;  %v397_v25 = vmul.f32 0.35355338, %v269_v21  ;;  %v390_v26 = vmul.f32 0.35355338, %v262_v22  ;;  %v398_v28 = vmul.f32 0.35355338, %v270_v23 }
  0x29   : > { %7123 = vmatpush3.msra.mxu1 %v487_v52  ;;  %7136 = vmatprep.subr.mxu0 %v488_v6  ;;  %v271_v29 = vld [vmem:[%s8286_s19 + $0x168] sm:$0xff]  ;;  %v264_v30 = vld [vmem:[%s8286_s19 + $0x130] sm:$0xff]  ;;  %v490_v31 = vld [vmem:[%s8291_s22 + $0x40] sm:$0xff]  ;;  %v391_v34 = vmul.f32 0.35355338, %v263_v27 }
  0x2a   : > { %7086 = vmatmul.mubr.msk.f32.gmra.mxu0 %vm626_vm0, %v373_v54  ;;  %7150 = vmatprep.subr.mxu1 %v489_v11  ;;  %v272_v32 = vld [vmem:[%s8286_s19 + $0x170] sm:$0xff]  ;;  %v491_v33 = vld [vmem:[%s8291_s22 + $0x48] sm:$0xff]  ;;  %v399_v35 = vmul.f32 0.35355338, %v271_v29  ;;  %v392_v36 = vmul.f32 0.35355338, %v264_v30 }
  0x2b   : > { %7100 = vmatmul.mubr.msk.f32.gmra.mxu1 %vm626_vm0, %v381_v55  ;;  %7088 = vmatprep.mubr.msk.f32.mxu0 %vm626_vm0, %v374_v56  ;;  %v265_v37 = vld [vmem:[%s8286_s19 + $0x138] sm:$0xff]  ;;  %v400_v38 = vmul.f32 0.35355338, %v272_v32  ;;  %v274_v40 = vld [vmem:[%s8286_s19 + $0x180] sm:$0xff]  ;;  %v275_v45 = vld [vmem:[%s8286_s19 + $0x188] sm:$0xff] }
  0x2c   : > { %7102 = vmatprep.mubr.msk.f32.mxu1 %vm626_vm0, %v382_v58  ;;  %v273_v39 = vld [vmem:[%s8286_s19 + $0x178] sm:$0xff]  ;;  %v282_v41 = vld [vmem:[%s8286_s19 + $0x1c0] sm:$0xff]  ;;  %v393_v42 = vmul.f32 0.35355338, %v265_v37  ;;  %v402_v44 = vmul.f32 0.35355338, %v274_v40 }
  0x2d   : > { %v401_v43 = vmul.f32 0.35355338, %v273_v39  ;;  %v410_v46 = vmul.f32 0.35355338, %v282_v41  ;;  %v283_v47 = vld [vmem:[%s8286_s19 + $0x1c8] sm:$0xff]  ;;  %v276_v48 = vld [vmem:[%s8286_s19 + $0x190] sm:$0xff] }
  0x2e   : > { %7089 = vmatmul.mubr.msk.f32.gmra.mxu0 %vm626_vm0, %v375_v62  ;;  %v284_v49 = vld [vmem:[%s8286_s19 + $0x1d0] sm:$0xff]  ;;  %v403_v50 = vmul.f32 0.35355338, %v275_v45  ;;  %v411_v51 = vmul.f32 0.35355338, %v283_v47  ;;  %v277_v53 = vld [vmem:[%s8286_s19 + $0x198] sm:$0xff] }
  0x2f   : > { %7103 = vmatmul.mubr.msk.f32.gmra.mxu1 %vm626_vm0, %v383_v63  ;;  %7091 = vmatprep.mubr.msk.f32.mxu0 %vm626_vm0, %v376_v0  ;;  %v404_v52 = vmul.f32 0.35355338, %v276_v48  ;;  %v412_v54 = vmul.f32 0.35355338, %v284_v49  ;;  %v285_v55 = vld [vmem:[%s8286_s19 + $0x1d8] sm:$0xff]  ;;  %v278_v56 = vld [vmem:[%s8286_s19 + $0x1a0] sm:$0xff] }
  0x30   : > { %7105 = vmatprep.mubr.msk.f32.mxu1 %vm626_vm0, %v384_v2  ;;  %v286_v57 = vld [vmem:[%s8286_s19 + $0x1e0] sm:$0xff]  ;;  %v405_v58 = vmul.f32 0.35355338, %v277_v53  ;;  %v492_v59 = vld [vmem:[%s8291_s22 + $0x50] sm:$0xff]  ;;  %v413_v60 = vmul.f32 0.35355338, %v285_v55 }
  0x31   : > { %v406_v61 = vmul.f32 0.35355338, %v278_v56  ;;  %v279_v62 = vld [vmem:[%s8286_s19 + $0x1a8] sm:$0xff]  ;;  %v493_v63 = vld [vmem:[%s8291_s22 + $0x58] sm:$0xff]  ;;  %v414_v0 = vmul.f32 0.35355338, %v286_v57 }
  0x32   : > { %7092 = vmatmul.mubr.msk.f32.gmra.mxu0 %vm626_vm0, %v377_v7  ;;  %v287_v1 = vld [vmem:[%s8286_s19 + $0x1e8] sm:$0xff]  ;;  %v280_v2 = vld [vmem:[%s8286_s19 + $0x1b0] sm:$0xff]  ;;  %v407_v4 = vmul.f32 0.35355338, %v279_v62  ;;  %v281_v7 = vld [vmem:[%s8286_s19 + $0x1b8] sm:$0xff] }
  0x33   : > { %7106 = vmatmul.mubr.msk.f32.gmra.mxu1 %vm626_vm0, %v385_v8  ;;  %7110 = vmatprep.mubr.msk.f32.mxu0 %vm626_vm0, %v386_v9  ;;  %v288_v3 = vld [vmem:[%s8286_s19 + $0x1f0] sm:$0xff]  ;;  %v415_v5 = vmul.f32 0.35355338, %v287_v1  ;;  %v289_v9 = vld [vmem:[%s8286_s19 + $0x1f8] sm:$0xff]  ;;  %v290_v10 = vld [vmem:[%s8286_s19 + $0x200] sm:$0xff] }
  0x34   : > { %7124 = vmatprep.mubr.msk.f32.mxu1 %vm626_vm0, %v394_v12  ;;  %v416_v8 = vmul.f32 0.35355338, %v288_v3  ;;  %v409_v12 = vmul.f32 0.35355338, %v281_v7  ;;  %v417_v13 = vmul.f32 0.35355338, %v289_v9 }
  0x35   : > { %v418_v14 = vmul.f32 0.35355338, %v290_v10  ;;  %v291_v15 = vld [vmem:[%s8286_s19 + $0x208] sm:$0xff]  ;;  %v300_v19 = vld [vmem:[%s8286_s19 + $0x250] sm:$0xff]  ;;  %v293_v23 = vld [vmem:[%s8286_s19 + $0x218] sm:$0xff] }
  0x36   : > { %7111 = vmatmul.mubr.msk.f32.vlgmr.msra.gmra.mxu0 %vm626_vm0, %v387_v16  ;;  %v302_v27 = vld [vmem:[%s8286_s19 + $0x260] sm:$0xff]  ;;  %v295_v32 = vld [vmem:[%s8286_s19 + $0x228] sm:$0xff]  ;;  %v304_v37 = vld [vmem:[%s8286_s19 + $0x270] sm:$0xff] }
  0x37   : > { %7125 = vmatmul.mubr.msk.f32.vlgmr.msra.gmra.mxu1 %vm626_vm0, %v395_v17  ;;  %7113 = vmatprep.mubr.msk.f32.mxu0 %vm626_vm0, %v388_v18  ;;  %v299_v17 = vld [vmem:[%s8286_s19 + $0x248] sm:$0xff]  ;;  %v292_v18 = vld [vmem:[%s8286_s19 + $0x210] sm:$0xff]  ;;  %v8447_v29 = vld [vmem:[%s8291_s22 + $0x60] sm:$0xff] }
  0x38   : > { %7127 = vmatprep.mubr.msk.f32.mxu1 %vm626_vm0, %v396_v20  ;;  %7137 = vmatpush3.msra.mxu0 %v488_v6  ;;  %v408_v6 = vmul.f32 0.35355338, %v280_v2  ;;  %v419_v20 = vmul.f32 0.35355338, %v291_v15  ;;  %v427_v21 = vmul.f32 0.35355338, %v299_v17 }
  0x39   : > { %7151 = vmatpush3.msra.mxu1 %v489_v11  ;;  %7164 = vmatprep.subr.mxu0 %v490_v31  ;;  %v298_v11 = vld [vmem:[%s8286_s19 + $0x240] sm:$0xff]  ;;  %v420_v22 = vmul.f32 0.35355338, %v292_v18  ;;  %v297_v41 = vld [vmem:[%s8286_s19 + $0x238] sm:$0xff]  ;;  %v307_v49 = vld [vmem:[%s8286_s19 + $0x288] sm:$0xff] }
  0x3a   : > { %7114 = vmatmul.mubr.msk.f32.gmra.mxu0 %vm626_vm0, %v389_v24  ;;  %7178 = vmatprep.subr.mxu1 %v491_v33  ;;  %v426_v16 = vmul.f32 0.35355338, %v298_v11  ;;  %v428_v24 = vmul.f32 0.35355338, %v300_v19  ;;  %v314_v45 = vld [vmem:[%s8286_s19 + $0x2c0] sm:$0xff]  ;;  %v316_v53 = vld [vmem:[%s8286_s19 + $0x2d0] sm:$0xff] }
  0x3b   : > { %7128 = vmatmul.mubr.msk.f32.gmra.mxu1 %vm626_vm0, %v397_v25  ;;  %7116 = vmatprep.mubr.msk.f32.mxu0 %vm626_vm0, %v390_v26  ;;  %v301_v25 = vld [vmem:[%s8286_s19 + $0x258] sm:$0xff]  ;;  %v294_v26 = vld [vmem:[%s8286_s19 + $0x220] sm:$0xff]  ;;  %v311_v2 = vld [vmem:[%s8286_s19 + $0x2a8] sm:$0xff] }
  0x3c   : > { %7130 = vmatprep.mubr.msk.f32.mxu1 %vm626_vm0, %v398_v28  ;;  %v421_v28 = vmul.f32 0.35355338, %v293_v23  ;;  %v429_v30 = vmul.f32 0.35355338, %v301_v25  ;;  %v309_v57 = vld [vmem:[%s8286_s19 + $0x298] sm:$0xff]  ;;  %v320_v7 = vld [vmem:[%s8286_s19 + $0x2f0] sm:$0xff] }
  0x3d   : > { %v437_v62 = vmul.f32 0.35355338, %v309_v57  ;;  %v497_v3 = vld [vmem:[%s8291_s22 + $0x78] sm:$0xff]  ;;  %v330_v15 = vld [vmem:[%s8286_s19 + $0x340] sm:$0xff]  ;;  %v323_v19 = vld [vmem:[%s8286_s19 + $0x308] sm:$0xff] }
  0x3e   : > { %7117 = vmatmul.mubr.msk.f32.gmra.mxu0 %vm626_vm0, %v391_v34  ;;  %v430_v34 = vmul.f32 0.35355338, %v302_v27  ;;  %v313_v11 = vld [vmem:[%s8286_s19 + $0x2b8] sm:$0xff]  ;;  %v332_v23 = vld [vmem:[%s8286_s19 + $0x350] sm:$0xff] }
  0x3f   : > { %7131 = vmatmul.mubr.msk.f32.gmra.mxu1 %vm626_vm0, %v399_v35  ;;  %7119 = vmatprep.mubr.msk.f32.mxu0 %vm626_vm0, %v392_v36  ;;  %v303_v35 = vld [vmem:[%s8286_s19 + $0x268] sm:$0xff]  ;;  %v296_v36 = vld [vmem:[%s8286_s19 + $0x230] sm:$0xff]  ;;  %v325_v27 = vld [vmem:[%s8286_s19 + $0x318] sm:$0xff] }
  0x40   : > { %7133 = vmatprep.mubr.msk.f32.mxu1 %vm626_vm0, %v400_v38  ;;  %v423_v38 = vmul.f32 0.35355338, %v295_v32  ;;  %v431_v39 = vmul.f32 0.35355338, %v303_v35  ;;  %v424_v40 = vmul.f32 0.35355338, %v296_v36 }
  0x41   : > { %v453_v32 = vmul.f32 0.35355338, %v325_v27  ;;  %v327_v35 = vld [vmem:[%s8286_s19 + $0x328] sm:$0xff] }
  0x42   : > { %7120 = vmatmul.mubr.msk.f32.gmra.mxu0 %vm626_vm0, %v393_v42  ;;  %v432_v42 = vmul.f32 0.35355338, %v304_v37  ;;  %v335_v37 = vld [vmem:[%s8286_s19 + $0x368] sm:$0xff] }
  0x43   : > { %7134 = vmatmul.mubr.msk.f32.gmra.mxu1 %vm626_vm0, %v401_v43  ;;  %7138 = vmatprep.mubr.msk.f32.mxu0 %vm626_vm0, %v402_v44  ;;  %v305_v43 = vld [vmem:[%s8286_s19 + $0x278] sm:$0xff]  ;;  %v306_v44 = vld [vmem:[%s8286_s19 + $0x280] sm:$0xff] }
  0x44   : > { %7152 = vmatprep.mubr.msk.f32.mxu1 %vm626_vm0, %v410_v46  ;;  %v425_v46 = vmul.f32 0.35355338, %v297_v41  ;;  %v433_v47 = vmul.f32 0.35355338, %v305_v43  ;;  %v434_v48 = vmul.f32 0.35355338, %v306_v44 }
  0x45   : > { %v463_v41 = vmul.f32 0.35355338, %v335_v37  ;;  %v329_v43 = vld [vmem:[%s8286_s19 + $0x338] sm:$0xff] }
  0x46   : > { %7139 = vmatmul.mubr.msk.f32.vlgmr.msra.gmra.mxu0 %vm626_vm0, %v403_v50  ;;  %v442_v50 = vmul.f32 0.35355338, %v314_v45  ;;  %v337_v45 = vld [vmem:[%s8286_s19 + $0x378] sm:$0xff] }
  0x47   : > { %7153 = vmatmul.mubr.msk.f32.vlgmr.msra.gmra.mxu1 %vm626_vm0, %v411_v51  ;;  %7141 = vmatprep.mubr.msk.f32.mxu0 %vm626_vm0, %v404_v52  ;;  %v315_v51 = vld [vmem:[%s8286_s19 + $0x2c8] sm:$0xff]  ;;  %v308_v52 = vld [vmem:[%s8286_s19 + $0x290] sm:$0xff] }
  0x48   : > { %7155 = vmatprep.mubr.msk.f32.mxu1 %vm626_vm0, %v412_v54  ;;  %7165 = vmatpush3.msra.mxu0 %v490_v31  ;;  %v422_v31 = vmul.f32 0.35355338, %v294_v26  ;;  %v435_v54 = vmul.f32 0.35355338, %v307_v49  ;;  %v443_v55 = vmul.f32 0.35355338, %v315_v51 }
  0x49   : > { %7179 = vmatpush3.msra.mxu1 %v491_v33  ;;  %7192 = vmatprep.subr.mxu0 %v492_v59  ;;  %v495_v33 = vld [vmem:[%s8291_s22 + $0x68] sm:$0xff]  ;;  %v436_v56 = vmul.f32 0.35355338, %v308_v52  ;;  %v465_v49 = vmul.f32 0.35355338, %v337_v45 }
  0x4a   : > { %7142 = vmatmul.mubr.msk.f32.gmra.mxu0 %vm626_vm0, %v405_v58  ;;  %7206 = vmatprep.subr.mxu1 %v493_v63  ;;  %v444_v58 = vmul.f32 0.35355338, %v316_v53  ;;  %v339_v51 = vld [vmem:[%s8286_s19 + $0x388] sm:$0xff] }
  0x4b   : > { %7156 = vmatmul.mubr.msk.f32.gmra.mxu1 %vm626_vm0, %v413_v60  ;;  %7144 = vmatprep.mubr.msk.f32.mxu0 %vm626_vm0, %v406_v61  ;;  %v310_v60 = vld [vmem:[%s8286_s19 + $0x2a0] sm:$0xff]  ;;  %v347_v53 = vld [vmem:[%s8286_s19 + $0x3c8] sm:$0xff] }
  0x4c   : > { %7158 = vmatprep.mubr.msk.f32.mxu1 %vm626_vm0, %v414_v0  ;;  %v318_v61 = vld [vmem:[%s8286_s19 + $0x2e0] sm:$0xff]  ;;  %v438_v1 = vmul.f32 0.35355338, %v310_v60  ;;  %v475_v57 = vmul.f32 0.35355338, %v347_v53  ;;  %v503_v45 = vld [vmem:[%s8611_s25 + $0x28] sm:$0xff] }
  0x4d   : > { %v501_v53 = vld [vmem:[%s8611_s25 + $0x18] sm:$0xff] }
  0x4e   : > { %7145 = vmatmul.mubr.msk.f32.gmra.mxu0 %vm626_vm0, %v407_v4  ;;  %v446_v4 = vmul.f32 0.35355338, %v318_v61  ;;  %v349_v61 = vld [vmem:[%s8286_s19 + $0x3d8] sm:$0xff] }
  0x4f   : > { %7159 = vmatmul.mubr.msk.f32.gmra.mxu1 %vm626_vm0, %v415_v5  ;;  %7147 = vmatprep.mubr.msk.f32.mxu0 %vm626_vm0, %v408_v6  ;;  %v319_v5 = vld [vmem:[%s8286_s19 + $0x2e8] sm:$0xff]  ;;  %v312_v6 = vld [vmem:[%s8286_s19 + $0x2b0] sm:$0xff] }
  0x50   : > { %7161 = vmatprep.mubr.msk.f32.mxu1 %vm626_vm0, %v416_v8  ;;  %v439_v8 = vmul.f32 0.35355338, %v311_v2  ;;  %v447_v9 = vmul.f32 0.35355338, %v319_v5  ;;  %v440_v10 = vmul.f32 0.35355338, %v312_v6 }
  0x51   : > { %v351_v5 = vld [vmem:[%s8286_s19 + $0x3e8] sm:$0xff]  ;;  %v344_v6 = vld [vmem:[%s8286_s19 + $0x3b0] sm:$0xff] }
  0x52   : > { %7148 = vmatmul.mubr.msk.f32.gmra.mxu0 %vm626_vm0, %v409_v12  ;;  %v448_v12 = vmul.f32 0.35355338, %v320_v7  ;;  %v352_v7 = vld [vmem:[%s8286_s19 + $0x3f0] sm:$0xff] }
  0x53   : > { %7162 = vmatmul.mubr.msk.f32.gmra.mxu1 %vm626_vm0, %v417_v13  ;;  %7166 = vmatprep.mubr.msk.f32.mxu0 %vm626_vm0, %v418_v14  ;;  %v321_v13 = vld [vmem:[%s8286_s19 + $0x2f8] sm:$0xff]  ;;  %v322_v14 = vld [vmem:[%s8286_s19 + $0x300] sm:$0xff] }
  0x54   : > { %7180 = vmatprep.mubr.msk.f32.mxu1 %vm626_vm0, %v426_v16  ;;  %v441_v16 = vmul.f32 0.35355338, %v313_v11  ;;  %v449_v17 = vmul.f32 0.35355338, %v321_v13  ;;  %v450_v18 = vmul.f32 0.35355338, %v322_v14 }
  0x55   : > { %v345_v11 = vld [vmem:[%s8286_s19 + $0x3b8] sm:$0xff] }
  0x56   : > { %7167 = vmatmul.mubr.msk.f32.vlgmr.msra.gmra.mxu0 %vm626_vm0, %v419_v20  ;;  %v458_v20 = vmul.f32 0.35355338, %v330_v15  ;;  %v353_v13 = vld [vmem:[%s8286_s19 + $0x3f8] sm:$0xff]  ;;  %v473_v14 = vmul.f32 0.35355338, %v345_v11 }
  0x57   : > { %7181 = vmatmul.mubr.msk.f32.vlgmr.msra.gmra.mxu1 %vm626_vm0, %v427_v21  ;;  %7169 = vmatprep.mubr.msk.f32.mxu0 %vm626_vm0, %v420_v22  ;;  %v331_v21 = vld [vmem:[%s8286_s19 + $0x348] sm:$0xff]  ;;  %v324_v22 = vld [vmem:[%s8286_s19 + $0x310] sm:$0xff]  ;;  %v481_v15 = vmul.f32 0.35355338, %v353_v13 }
  0x58   : > { %7183 = vmatprep.mubr.msk.f32.mxu1 %vm626_vm0, %v428_v24  ;;  %7193 = vmatpush3.msra.mxu0 %v492_v59  ;;  %v317_v59 = vld [vmem:[%s8286_s19 + $0x2d8] sm:$0xff]  ;;  %v451_v24 = vmul.f32 0.35355338, %v323_v19  ;;  %v459_v25 = vmul.f32 0.35355338, %v331_v21 }
  0x59   : > { %7207 = vmatpush3.msra.mxu1 %v493_v63  ;;  %7220 = vmatprep.subr.mxu0 %v8447_v29  ;;  %v496_v63 = vld [vmem:[%s8291_s22 + $0x70] sm:$0xff]  ;;  %v445_v0 = vmul.f32 0.35355338, %v317_v59  ;;  %v452_v26 = vmul.f32 0.35355338, %v324_v22  ;;  %v341_v59 = vld [vmem:[%s8286_s19 + $0x398] sm:$0xff] }
  0x5a   : > { %7170 = vmatmul.mubr.msk.f32.gmra.mxu0 %vm626_vm0, %v421_v28  ;;  %7234 = vmatprep.subr.mxu1 %v495_v33  ;;  %v460_v28 = vmul.f32 0.35355338, %v332_v23 }
  0x5b   : > { %7184 = vmatmul.mubr.msk.f32.gmra.mxu1 %vm626_vm0, %v429_v30  ;;  %7172 = vmatprep.mubr.msk.f32.mxu0 %vm626_vm0, %v422_v31  ;;  %v326_v30 = vld [vmem:[%s8286_s19 + $0x320] sm:$0xff] }
  0x5c   : > { %7186 = vmatprep.mubr.msk.f32.mxu1 %vm626_vm0, %v430_v34  ;;  %v334_v31 = vld [vmem:[%s8286_s19 + $0x360] sm:$0xff]  ;;  %v454_v34 = vmul.f32 0.35355338, %v326_v30 }
  0x5d   : > { %v462_v36 = vmul.f32 0.35355338, %v334_v31 }
  0x5e   : > { %7173 = vmatmul.mubr.msk.f32.gmra.mxu0 %vm626_vm0, %v423_v38  ;;  %v328_v38 = vld [vmem:[%s8286_s19 + $0x330] sm:$0xff] }
  0x5f   : > { %7187 = vmatmul.mubr.msk.f32.gmra.mxu1 %vm626_vm0, %v431_v39  ;;  %7175 = vmatprep.mubr.msk.f32.mxu0 %vm626_vm0, %v424_v40  ;;  %v336_v39 = vld [vmem:[%s8286_s19 + $0x370] sm:$0xff]  ;;  %v455_v40 = vmul.f32 0.35355338, %v327_v35 }
  0x60   : > { %7189 = vmatprep.mubr.msk.f32.mxu1 %vm626_vm0, %v432_v42  ;;  %v456_v42 = vmul.f32 0.35355338, %v328_v38  ;;  %v464_v44 = vmul.f32 0.35355338, %v336_v39  ;;  %v505_v39 = vld [vmem:[%s8611_s25 + $0x38] sm:$0xff] }
  0x62   : > { %7176 = vmatmul.mubr.msk.f32.gmra.mxu0 %vm626_vm0, %v425_v46  ;;  %v338_v46 = vld [vmem:[%s8286_s19 + $0x380] sm:$0xff] }
  0x63   : > { %7190 = vmatmul.mubr.msk.f32.gmra.mxu1 %vm626_vm0, %v433_v47  ;;  %7194 = vmatprep.mubr.msk.f32.mxu0 %vm626_vm0, %v434_v48  ;;  %v346_v47 = vld [vmem:[%s8286_s19 + $0x3c0] sm:$0xff]  ;;  %v457_v48 = vmul.f32 0.35355338, %v329_v43 }
  0x64   : > { %7208 = vmatprep.mubr.msk.f32.mxu1 %vm626_vm0, %v442_v50  ;;  %v466_v50 = vmul.f32 0.35355338, %v338_v46  ;;  %v474_v52 = vmul.f32 0.35355338, %v346_v47  ;;  %v513_v46 = vld [vmem:[%s8611_s25 + $0x78] sm:$0xff] }
  0x66   : > { %7195 = vmatmul.mubr.msk.f32.vlgmr.msra.gmra.mxu0 %vm626_vm0, %v435_v54  ;;  %v340_v54 = vld [vmem:[%s8286_s19 + $0x390] sm:$0xff] }
  0x67   : > { %7209 = vmatmul.mubr.msk.f32.vlgmr.msra.gmra.mxu1 %vm626_vm0, %v443_v55  ;;  %7197 = vmatprep.mubr.msk.f32.mxu0 %vm626_vm0, %v436_v56  ;;  %v348_v55 = vld [vmem:[%s8286_s19 + $0x3d0] sm:$0xff]  ;;  %v467_v56 = vmul.f32 0.35355338, %v339_v51 }
  0x68   : > { %7211 = vmatprep.mubr.msk.f32.mxu1 %vm626_vm0, %v444_v58  ;;  %7221 = vmatpush3.msra.mxu0 %v8447_v29  ;;  %v333_v29 = vld [vmem:[%s8286_s19 + $0x358] sm:$0xff]  ;;  %v468_v58 = vmul.f32 0.35355338, %v340_v54  ;;  %v476_v60 = vmul.f32 0.35355338, %v348_v55  ;;  %v511_v54 = vld [vmem:[%s8611_s25 + $0x68] sm:$0xff] }
  0x69   : > { %7235 = vmatpush3.msra.mxu1 %v495_v33  ;;  %7248 = vmatprep.subr.mxu0 %v496_v63  ;;  %v461_v33 = vmul.f32 0.35355338, %v333_v29 }
  0x6a   : > { %7198 = vmatmul.mubr.msk.f32.gmra.mxu0 %vm626_vm0, %v437_v62  ;;  %7262 = vmatprep.subr.mxu1 %v497_v3  ;;  %v342_v62 = vld [vmem:[%s8286_s19 + $0x3a0] sm:$0xff] }
  0x6b   : > { %7212 = vmatmul.mubr.msk.f32.gmra.mxu1 %vm626_vm0, %v445_v0  ;;  %7200 = vmatprep.mubr.msk.f32.mxu0 %vm626_vm0, %v438_v1  ;;  %v469_v0 = vmul.f32 0.35355338, %v341_v59  ;;  %v477_v1 = vmul.f32 0.35355338, %v349_v61  ;;  %v470_v2 = vmul.f32 0.35355338, %v342_v62 }
  0x6c   : > { %7214 = vmatprep.mubr.msk.f32.mxu1 %vm626_vm0, %v446_v4  ;;  %v499_v61 = vld [vmem:[%s8611_s25 + $0x8] sm:$0xff]  ;;  %v509_v62 = vld [vmem:[%s8611_s25 + $0x58] sm:$0xff] }
  0x6e   : > { %7201 = vmatmul.mubr.msk.f32.gmra.mxu0 %vm626_vm0, %v439_v8 }
  0x6f   : > { %7215 = vmatmul.mubr.msk.f32.gmra.mxu1 %vm626_vm0, %v447_v9  ;;  %7203 = vmatprep.mubr.msk.f32.mxu0 %vm626_vm0, %v440_v10  ;;  %v479_v9 = vmul.f32 0.35355338, %v351_v5  ;;  %v472_v10 = vmul.f32 0.35355338, %v344_v6  ;;  %v507_v6 = vld [vmem:[%s8611_s25 + $0x48] sm:$0xff] }
  0x70   : > { %7217 = vmatprep.mubr.msk.f32.mxu1 %vm626_vm0, %v448_v12  ;;  %v480_v12 = vmul.f32 0.35355338, %v352_v7 }
  0x72   : > { %7204 = vmatmul.mubr.msk.f32.gmra.mxu0 %vm626_vm0, %v441_v16 }
  0x73   : > { %7218 = vmatmul.mubr.msk.f32.gmra.mxu1 %vm626_vm0, %v449_v17  ;;  %7222 = vmatprep.mubr.msk.f32.mxu0 %vm626_vm0, %v450_v18 }
  0x74   : > { %7236 = vmatprep.mubr.msk.f32.mxu1 %vm626_vm0, %v458_v20 }
  0x76   : > { %7223 = vmatmul.mubr.msk.f32.vlgmr.msra.gmra.mxu0 %vm626_vm0, %v451_v24 }
  0x77   : > { %7237 = vmatmul.mubr.msk.f32.vlgmr.msra.gmra.mxu1 %vm626_vm0, %v459_v25  ;;  %7225 = vmatprep.mubr.msk.f32.mxu0 %vm626_vm0, %v452_v26 }
  0x78   : > { %7239 = vmatprep.mubr.msk.f32.mxu1 %vm626_vm0, %v460_v28  ;;  %7249 = vmatpush3.msra.mxu0 %v496_v63  ;;  %v350_v63 = vld [vmem:[%s8286_s19 + $0x3e0] sm:$0xff] }
  0x79   : > { %7263 = vmatpush3.msra.mxu1 %v497_v3  ;;  %v343_v3 = vld [vmem:[%s8286_s19 + $0x3a8] sm:$0xff]  ;;  %v478_v4 = vmul.f32 0.35355338, %v350_v63  ;;  %7276 = vmatprep.subr.mxu0 %v505_v39 }
  0x7a   : > { %7226 = vmatmul.mubr.msk.f32.gmra.mxu0 %vm626_vm0, %v453_v32  ;;  %v471_v8 = vmul.f32 0.35355338, %v343_v3  ;;  %7304 = vmatprep.subr.mxu1 %v513_v46  ;;  %v498_v3 = vld [vmem:[%s8611_s25] sm:$0xff] }
  0x7b   : > { %7240 = vmatmul.mubr.msk.f32.gmra.mxu1 %vm626_vm0, %v461_v33  ;;  %7228 = vmatprep.mubr.msk.f32.mxu0 %vm626_vm0, %v454_v34 }
  0x7c   : > { %7242 = vmatprep.mubr.msk.f32.mxu1 %vm626_vm0, %v462_v36 }
  0x7e   : > { %7229 = vmatmul.mubr.msk.f32.gmra.mxu0 %vm626_vm0, %v455_v40 }
  0x7f   : > { %7243 = vmatmul.mubr.msk.f32.gmra.mxu1 %vm626_vm0, %v463_v41  ;;  %7231 = vmatprep.mubr.msk.f32.mxu0 %vm626_vm0, %v456_v42  ;;  %v504_v41 = vld [vmem:[%s8611_s25 + $0x30] sm:$0xff] }
  0x80   : > { %7245 = vmatprep.mubr.msk.f32.mxu1 %vm626_vm0, %v464_v44 }
  0x82   : > { %7232 = vmatmul.mubr.msk.f32.gmra.mxu0 %vm626_vm0, %v457_v48  ;;  %v502_v48 = vld [vmem:[%s8611_s25 + $0x20] sm:$0xff] }
  0x83   : > { %7246 = vmatmul.mubr.msk.f32.gmra.mxu1 %vm626_vm0, %v465_v49  ;;  %7250 = vmatprep.mubr.msk.f32.mxu0 %vm626_vm0, %v466_v50  ;;  %v512_v49 = vld [vmem:[%s8611_s25 + $0x70] sm:$0xff] }
  0x84   : > { %7264 = vmatprep.mubr.msk.f32.mxu1 %vm626_vm0, %v474_v52 }
  0x86   : > { %7251 = vmatmul.mubr.msk.f32.vlgmr.msra.gmra.mxu0 %vm626_vm0, %v467_v56  ;;  %v500_v56 = vld [vmem:[%s8611_s25 + $0x10] sm:$0xff] }
  0x87   : > { %7265 = vmatmul.mubr.msk.f32.vlgmr.msra.gmra.mxu1 %vm626_vm0, %v475_v57  ;;  %7253 = vmatprep.mubr.msk.f32.mxu0 %vm626_vm0, %v468_v58  ;;  %v510_v57 = vld [vmem:[%s8611_s25 + $0x60] sm:$0xff] }
  0x88   : > { %7267 = vmatprep.mubr.msk.f32.mxu1 %vm626_vm0, %v476_v60  ;;  %7277 = vmatpush3.msra.mxu0 %v505_v39 }
  0x89   : > { %7278 = vmatprep.subr.mxu0 %v504_v41  ;;  %7305 = vmatpush3.msra.mxu1 %v513_v46 }
  0x8a   : > { %7254 = vmatmul.mubr.msk.f32.gmra.mxu0 %vm626_vm0, %v469_v0  ;;  %7306 = vmatprep.subr.mxu1 %v512_v49 }
  0x8b   : > { %7268 = vmatmul.mubr.msk.f32.gmra.mxu1 %vm626_vm0, %v477_v1  ;;  %7256 = vmatprep.mubr.msk.f32.mxu0 %vm626_vm0, %v470_v2 }
  0x8c   : > { %7270 = vmatprep.mubr.msk.f32.mxu1 %vm626_vm0, %v478_v4  ;;  %7279 = vmatpush3.msra.mxu0 %v504_v41  ;;  %v508_v4 = vld [vmem:[%s8611_s25 + $0x50] sm:$0xff] }
  0x8d   : > { %7280 = vmatprep.subr.mxu0 %v503_v45  ;;  %7307 = vmatpush3.msra.mxu1 %v512_v49 }
  0x8e   : > { %7257 = vmatmul.mubr.msk.f32.gmra.mxu0 %vm626_vm0, %v471_v8  ;;  %7308 = vmatprep.subr.mxu1 %v511_v54 }
  0x8f   : > { %7271 = vmatmul.mubr.msk.f32.gmra.mxu1 %vm626_vm0, %v479_v9  ;;  %7259 = vmatprep.mubr.msk.f32.mxu0 %vm626_vm0, %v472_v10  ;;  %v506_v10 = vld [vmem:[%s8611_s25 + $0x40] sm:$0xff] }
  0x90   : > { %7273 = vmatprep.mubr.msk.f32.mxu1 %vm626_vm0, %v480_v12  ;;  %7281 = vmatpush3.msra.mxu0 %v503_v45 }
  0x91   : > { %7282 = vmatprep.subr.mxu0 %v502_v48  ;;  %7309 = vmatpush3.msra.mxu1 %v511_v54 }
  0x92   : > { %7260 = vmatmul.mubr.msk.f32.gmra.mxu0 %vm626_vm0, %v473_v14  ;;  %7310 = vmatprep.subr.mxu1 %v510_v57 }
  0x93   : > { %7274 = vmatmul.mubr.msk.f32.gmra.mxu1 %vm626_vm0, %v481_v15  ;;  %7283 = vmatpush3.msra.mxu0 %v502_v48 }
  0x94   : > { %7284 = vmatprep.subr.mxu0 %v501_v53  ;;  %7311 = vmatpush3.msra.mxu1 %v510_v57 }
  0x95   : > { %7285 = vmatpush3.msra.mxu0 %v501_v53  ;;  %7312 = vmatprep.subr.mxu1 %v509_v62 }
  0x96   : > { %7286 = vmatprep.subr.mxu0 %v500_v56  ;;  %7313 = vmatpush3.msra.mxu1 %v509_v62 }
  0x97   : > { %7287 = vmatpush3.msra.mxu0 %v500_v56  ;;  %7314 = vmatprep.subr.mxu1 %v508_v4 }
  0x98   : > { %7288 = vmatprep.subr.mxu0 %v499_v61  ;;  %7315 = vmatpush3.msra.mxu1 %v508_v4 }
  0x99   : > { %7289 = vmatpush3.msra.mxu0 %v499_v61  ;;  %7316 = vmatprep.subr.mxu1 %v507_v6 }
  0x9a   : > { %7290 = vmatprep.subr.mxu0 %v498_v3  ;;  %7317 = vmatpush3.msra.mxu1 %v507_v6 }
  0x9b   : > { %7291 = vmatpush3.msra.mxu0 %v498_v3  ;;  %7318 = vmatprep.subr.mxu1 %v506_v10 }
  0x9c   : > { %7319 = vmatpush3.msra.mxu1 %v506_v10 }
  0xd6   : > { %v8569_v16 = vpop.f32.mrf.mxu0 }
  0xd7   : > { %v8571_v17 = vpop.f32.mrf.mxu1  ;;  %v2695_v18 = vsel %vm2691_vm1, %v8569_v16, -inf }
  0xd8   : > { %v2719_v19 = vsel %vm2691_vm1, %v8571_v17, -inf  ;;  %2696 = vmax.xlane.f32.xlu0 %v2695_v18  ;;  %v8577_v20 = vpop.f32.mrf.mxu0 }
  0xd9   : > { %2720 = vmax.xlane.f32.xlu1 %v2719_v19  ;;  %v8579_v21 = vpop.f32.mrf.mxu1  ;;  %v2692_v23 = vsel %vm2691_vm1, %v8577_v20, -inf }
  0xda   : > { %v8581_v22 = vpop.f32.mrf.mxu0  ;;  %v2716_v28 = vsel %vm2691_vm1, %v8579_v21, -inf }
  0xdb   : > { %v2701_v24 = vsel %vm2691_vm1, %v8581_v22, -inf  ;;  %v8587_v25 = vpop.f32.mrf.mxu1 }
  0xdc   : > { %2693 = vmax.xlane.f32.xlu0 %v2692_v23  ;;  %v8589_v26 = vpop.f32.mrf.mxu0  ;;  %v2725_v27 = vsel %vm2691_vm1, %v8587_v25, -inf }
  0xdd   : > { %2702 = vmax.xlane.f32.xlu1 %v2701_v24  ;;  %v8595_v29 = vpop.f32.mrf.mxu1  ;;  %v2698_v32 = vsel %vm2691_vm1, %v8589_v26, -inf  ;;  %v8694_v24 = vld [vmem:[%s8611_s25 + $0xb8] sm:$0xff] }
  0xde   : > { %v8597_v30 = vpop.f32.mrf.mxu0  ;;  %v2722_v31 = vsel %vm2691_vm1, %v8595_v29, -inf  ;;  %7332 = vmatprep.subr.mxu0 %v8694_v24 }
  0xdf   : > { %v8605_v34 = vpop.f32.mrf.mxu1  ;;  %v2707_v37 = vsel %vm2691_vm1, %v8597_v30, -inf }
  0xe0   : > { %2717 = vmax.xlane.f32.xlu0 %v2716_v28  ;;  %v8603_v33 = vpop.f32.mrf.mxu0  ;;  %v2731_v42 = vsel %vm2691_vm1, %v8605_v34, -inf }
  0xe1   : > { %2726 = vmax.xlane.f32.xlu1 %v2725_v27  ;;  %v2704_v35 = vsel %vm2691_vm1, %v8603_v33, -inf  ;;  %v8615_v36 = vpop.f32.mrf.mxu1 }
  0xe2   : > { %v8619_v38 = vpop.f32.mrf.mxu0  ;;  %v2728_v40 = vsel %vm2691_vm1, %v8615_v36, -inf }
  0xe3   : > { %v8629_v44 = vpop.f32.mrf.mxu1  ;;  %v2713_v51 = vsel %vm2691_vm1, %v8619_v38, -inf }
  0xe4   : > { %2723 = vmax.xlane.f32.xlu0 %v2722_v31  ;;  %v8627_v43 = vpop.f32.mrf.mxu0  ;;  %v2737_v58 = vsel %vm2691_vm1, %v8629_v44, -inf }
  0xe5   : > { %2699 = vmax.xlane.f32.xlu1 %v2698_v32  ;;  %v2710_v47 = vsel %vm2691_vm1, %v8627_v43, -inf  ;;  %v8637_v50 = vpop.f32.mrf.mxu1 }
  0xe6   : > { %v8641_v52 = vpop.f32.mrf.mxu0  ;;  %v2734_v55 = vsel %vm2691_vm1, %v8637_v50, -inf }
  0xe7   : > { %v8653_v60 = vpop.f32.mrf.mxu1  ;;  %v2743_v1 = vsel %vm2691_vm1, %v8641_v52, -inf }
  0xe8   : > { %2705 = vmax.xlane.f32.xlu0 %v2704_v35  ;;  %v8651_v59 = vpop.f32.mrf.mxu0  ;;  %v2767_v7 = vsel %vm2691_vm1, %v8653_v60, -inf  ;;  %v8706_v35 = vld [vmem:[%s8611_s25 + $0xf8] sm:$0xff] }
  0xe9   : > { %2708 = vmax.xlane.f32.xlu1 %v2707_v37  ;;  %v2740_v63 = vsel %vm2691_vm1, %v8651_v59, -inf  ;;  %v8659_v0 = vpop.f32.mrf.mxu1  ;;  %7360 = vmatprep.subr.mxu1 %v8706_v35 }
  0xea   : > { %v8663_v2 = vpop.f32.mrf.mxu0  ;;  %v2764_v5 = vsel %vm2691_vm1, %v8659_v0, -inf }
  0xeb   : > { %v8674_v9 = vpop.f32.mrf.mxu1  ;;  %v2749_v13 = vsel %vm2691_vm1, %v8663_v2, -inf }
  0xec   : > { %2729 = vmax.xlane.f32.xlu0 %v2728_v40  ;;  %v8672_v8 = vpop.f32.mrf.mxu0  ;;  %v2773_v18 = vsel %vm2691_vm1, %v8674_v9, -inf }
  0xed   : > { %2732 = vmax.xlane.f32.xlu1 %v2731_v42  ;;  %v2746_v11 = vsel %vm2691_vm1, %v8672_v8, -inf  ;;  %v8679_v12 = vpop.f32.mrf.mxu1 }
  0xee   : > { %v8683_v14 = vpop.f32.mrf.mxu0  ;;  %v2770_v15 = vsel %vm2691_vm1, %v8679_v12, -inf }
  0xef   : > { %v8691_v23 = vpop.f32.mrf.mxu1  ;;  %v2755_v31 = vsel %vm2691_vm1, %v8683_v14, -inf }
  0xf0   : > { %2711 = vmax.xlane.f32.xlu0 %v2710_v47  ;;  %v8689_v19 = vpop.f32.mrf.mxu0  ;;  %v2779_v39 = vsel %vm2691_vm1, %v8691_v23, -inf }
  0xf1   : > { %2714 = vmax.xlane.f32.xlu1 %v2713_v51  ;;  %v2752_v27 = vsel %vm2691_vm1, %v8689_v19, -inf  ;;  %v8699_v28 = vpop.f32.mrf.mxu1 }
  0xf2   : > { %v8703_v32 = vpop.f32.mrf.mxu0  ;;  %v2776_v37 = vsel %vm2691_vm1, %v8699_v28, -inf }
  0xf3   : > { %v8715_v41 = vpop.f32.mrf.mxu1  ;;  %v2761_v46 = vsel %vm2691_vm1, %v8703_v32, -inf }
  0xf4   : > { %2735 = vmax.xlane.f32.xlu0 %v2734_v55  ;;  %v8713_v40 = vpop.f32.mrf.mxu0  ;;  %v2785_v49 = vsel %vm2691_vm1, %v8715_v41, -inf }
  0xf5   : > { %2738 = vmax.xlane.f32.xlu1 %v2737_v58  ;;  %v2758_v42 = vsel %vm2691_vm1, %v8713_v40, -inf  ;;  %v8719_v45 = vpop.f32.mrf.mxu1 }
  0xf6   : > { %v8723_v47 = vpop.f32.mrf.mxu0  ;;  %v2782_v48 = vsel %vm2691_vm1, %v8719_v45, -inf }
  0xf7   : > { %v8731_v53 = vpop.f32.mrf.mxu1  ;;  %v2791_v56 = vsel %vm2691_vm1, %v8723_v47, -inf }
  0xf8   : > { %2741 = vmax.xlane.f32.xlu0 %v2740_v63  ;;  %v8729_v51 = vpop.f32.mrf.mxu0  ;;  %v2815_v61 = vsel %vm2691_vm1, %v8731_v53, -inf }
  0xf9   : > { %2744 = vmax.xlane.f32.xlu1 %v2743_v1  ;;  %v2788_v54 = vsel %vm2691_vm1, %v8729_v51, -inf  ;;  %v8735_v55 = vpop.f32.mrf.mxu1 }
  0xfa   : > { %v8739_v57 = vpop.f32.mrf.mxu0  ;;  %v2812_v58 = vsel %vm2691_vm1, %v8735_v55, -inf }
  0xfb   : > { %v8747_v63 = vpop.f32.mrf.mxu1  ;;  %v2797_v4 = vsel %vm2691_vm1, %v8739_v57, -inf }
  0xfc   : > { %2765 = vmax.xlane.f32.xlu0 %v2764_v5  ;;  %v8745_v62 = vpop.f32.mrf.mxu0 }
  0xfd   : > { %2768 = vmax.xlane.f32.xlu1 %v2767_v7  ;;  %v2794_v1 = vsel %vm2691_vm1, %v8745_v62, -inf  ;;  %v8751_v3 = vpop.f32.mrf.mxu1  ;;  %v2821_v7 = vsel %vm2691_vm1, %v8747_v63, -inf }
  0xfe   : > { %v8755_v5 = vpop.f32.mrf.mxu0  ;;  %v2818_v6 = vsel %vm2691_vm1, %v8751_v3, -inf }
 0x100   : > { %2747 = vmax.xlane.f32.xlu0 %v2746_v11  ;;  %v8761_v10 = vpop.f32.mrf.mxu0  ;;  %v8763_v11 = vpop.f32.mrf.mxu1 }
 0x101   : > { %2750 = vmax.xlane.f32.xlu1 %v2749_v13  ;;  %v2800_v13 = vsel %vm2691_vm1, %v8761_v10, -inf }
 0x104   : > { %2771 = vmax.xlane.f32.xlu0 %v2770_v15  ;;  %v8767_v15 = vpop.f32.mrf.mxu1 }
 0x105   : > { %2774 = vmax.xlane.f32.xlu1 %v2773_v18  ;;  %v2803_v18 = vsel %vm2691_vm1, %v8755_v5, -inf }
 0x108   : > { %2753 = vmax.xlane.f32.xlu0 %v2752_v27  ;;  %v8771_v27 = vpop.f32.mrf.mxu0 }
 0x109   : > { %2756 = vmax.xlane.f32.xlu1 %v2755_v31  ;;  %v2824_v31 = vsel %vm2691_vm1, %v8767_v15, -inf }
 0x10c   : > { %2777 = vmax.xlane.f32.xlu0 %v2776_v37  ;;  %v2827_v37 = vsel %vm2691_vm1, %v8763_v11, -inf }
 0x10d   : > { %2780 = vmax.xlane.f32.xlu1 %v2779_v39  ;;  %v8777_v39 = vpop.f32.mrf.mxu0 }
 0x110   : > { %2759 = vmax.xlane.f32.xlu0 %v2758_v42  ;;  %v8779_v42 = vpop.f32.mrf.mxu1 }
 0x111   : > { %2762 = vmax.xlane.f32.xlu1 %v2761_v46  ;;  %10473 = vst [vmem:[#allocation2_spill] sm:$0xff] %v8779_v42  ;;  %v2806_v46 = vsel %vm2691_vm1, %v8777_v39, -inf }
 0x114   : > { %2783 = vmax.xlane.f32.xlu0 %v2782_v48  ;;  %v8783_v48 = vpop.f32.mrf.mxu1 }
 0x115   : > { %2786 = vmax.xlane.f32.xlu1 %v2785_v49  ;;  %v2809_v49 = vsel %vm2691_vm1, %v8771_v27, -inf }
 0x118   : > { %2789 = vmax.xlane.f32.xlu0 %v2788_v54  ;;  %v8787_v54 = vpop.f32.mrf.mxu0 }
 0x119   : > { %2792 = vmax.xlane.f32.xlu1 %v2791_v56  ;;  %10474 = vst [vmem:[#allocation3_spill] sm:$0xff] %v8787_v54  ;;  %v2830_v56 = vsel %vm2691_vm1, %v8783_v48, -inf }
 0x11c   : > { %2813 = vmax.xlane.f32.xlu0 %v2812_v58  ;;  %v2833_v58 = vsel %vm2691_vm1, %v8779_v42, -inf }
 0x11d   : > { %2816 = vmax.xlane.f32.xlu1 %v2815_v61  ;;  %v8793_v61 = vpop.f32.mrf.mxu0 }
 0x11e   : > { %10475 = vst [vmem:[#allocation4_spill] sm:$0xff] %v8793_v61 }
 0x120   : > { %2795 = vmax.xlane.f32.xlu0 %v2794_v1  ;;  %v8795_v1 = vpop.f32.mrf.mxu1 }
 0x121   : > { %2798 = vmax.xlane.f32.xlu1 %v2797_v4  ;;  %10476 = vst [vmem:[#allocation5_spill] sm:$0xff] %v8795_v1  ;;  %v2836_v4 = vsel %vm2691_vm1, %v8793_v61, -inf }
 0x124   : > { %2819 = vmax.xlane.f32.xlu0 %v2818_v6  ;;  %v8799_v6 = vpop.f32.mrf.mxu1 }
 0x125   : > { %2822 = vmax.xlane.f32.xlu1 %v2821_v7  ;;  %10477 = vst [vmem:[#allocation6_spill] sm:$0xff] %v8799_v6  ;;  %v2839_v7 = vsel %vm2691_vm1, %v8787_v54, -inf }
 0x128   : > { %2801 = vmax.xlane.f32.xlu0 %v2800_v13  ;;  %v8803_v13 = vpop.f32.mrf.mxu0 }
 0x129   : > { %2804 = vmax.xlane.f32.xlu1 %v2803_v18  ;;  %10478 = vst [vmem:[#allocation7_spill] sm:$0xff] %v8803_v13  ;;  %v2860_v18 = vsel %vm2691_vm1, %v8799_v6, -inf }
 0x12c   : > { %2825 = vmax.xlane.f32.xlu0 %v2824_v31  ;;  %v2863_v31 = vsel %vm2691_vm1, %v8795_v1, -inf }
 0x12d   : > { %2828 = vmax.xlane.f32.xlu1 %v2827_v37  ;;  %v8809_v37 = vpop.f32.mrf.mxu0 }
 0x12e   : > { %10479 = vst [vmem:[#allocation8_spill] sm:$0xff] %v8809_v37 }
 0x130   : > { %2807 = vmax.xlane.f32.xlu0 %v2806_v46  ;;  %v8811_v46 = vpop.f32.mrf.mxu1 }
 0x131   : > { %2810 = vmax.xlane.f32.xlu1 %v2809_v49  ;;  %10480 = vst [vmem:[#allocation9_spill] sm:$0xff] %v8811_v46  ;;  %v2842_v49 = vsel %vm2691_vm1, %v8809_v37, -inf }
 0x134   : > { %2831 = vmax.xlane.f32.xlu0 %v2830_v56  ;;  %v8815_v56 = vpop.f32.mrf.mxu1 }
 0x135   : > { %2834 = vmax.xlane.f32.xlu1 %v2833_v58  ;;  %10481 = vst [vmem:[#allocation10_spill] sm:$0xff] %v8815_v56  ;;  %v2845_v58 = vsel %vm2691_vm1, %v8803_v13, -inf }
 0x136   : > { %v8827_v1 = vpop.f32.mrf.mxu1 }
 0x137   : > { %10484 = vst [vmem:[#allocation13_spill] sm:$0xff] %v8827_v1 }
 0x138   : > { %2837 = vmax.xlane.f32.xlu0 %v2836_v4  ;;  %v8819_v4 = vpop.f32.mrf.mxu0  ;;  %v8831_v13 = vpop.f32.mrf.mxu1 }
 0x139   : > { %2840 = vmax.xlane.f32.xlu1 %v2839_v7  ;;  %10482 = vst [vmem:[#allocation11_spill] sm:$0xff] %v8819_v4  ;;  %v2866_v7 = vsel %vm2691_vm1, %v8815_v56, -inf  ;;  %10485 = vst [vmem:[#allocation14_spill] sm:$0xff] %v8831_v13 }
 0x13a   : > { %v8843_v56 = vpop.f32.mrf.mxu1 }
 0x13b   : > { %10488 = vst [vmem:[#allocation17_spill] sm:$0xff] %v8843_v56 }
 0x13c   : > { %2861 = vmax.xlane.f32.xlu0 %v2860_v18  ;;  %v2869_v18 = vsel %vm2691_vm1, %v8811_v46, -inf  ;;  %v2875_v46 = vsel %vm2691_vm1, %v8827_v1, -inf  ;;  %v2881_v1 = vsel %vm2691_vm1, %v8843_v56, -inf }
 0x13d   : > { %2864 = vmax.xlane.f32.xlu1 %v2863_v31  ;;  %v8825_v31 = vpop.f32.mrf.mxu0 }
 0x13e   : > { %10483 = vst [vmem:[#allocation12_spill] sm:$0xff] %v8825_v31  ;;  %v2848_v37 = vsel %vm2691_vm1, %v8825_v31, -inf }
 0x140   : > { %2843 = vmax.xlane.f32.xlu0 %v2842_v49  ;;  %v2851_v49 = vsel %vm2691_vm1, %v8819_v4, -inf  ;;  %v8847_v4 = vpop.f32.mrf.mxu1 }
 0x141   : > { %2846 = vmax.xlane.f32.xlu1 %v2845_v58  ;;  %v8835_v58 = vpop.f32.mrf.mxu0  ;;  %10489 = vst [vmem:[#allocation18_spill] sm:$0xff] %v8847_v4 }
 0x142   : > { %10486 = vst [vmem:[#allocation15_spill] sm:$0xff] %v8835_v58 }
 0x144   : > { %2867 = vmax.xlane.f32.xlu0 %v2866_v7  ;;  %v2872_v7 = vsel %vm2691_vm1, %v8831_v13, -inf  ;;  %v8859_v13 = vpop.f32.mrf.mxu1 }
 0x145   : > { %2870 = vmax.xlane.f32.xlu1 %v2869_v18  ;;  %v8841_v18 = vpop.f32.mrf.mxu0  ;;  %10492 = vst [vmem:[#allocation21_spill] sm:$0xff] %v8859_v13  ;;  %v2911_v56 = vsel %vm2691_vm1, %v8859_v13, -inf }
 0x146   : > { %10487 = vst [vmem:[#allocation16_spill] sm:$0xff] %v8841_v18  ;;  %v2854_v31 = vsel %vm2691_vm1, %v8841_v18, -inf }
 0x148   : > { %2849 = vmax.xlane.f32.xlu0 %v2848_v37  ;;  %v2857_v37 = vsel %vm2691_vm1, %v8835_v58, -inf  ;;  %v8863_v58 = vpop.f32.mrf.mxu1 }
 0x149   : > { %2852 = vmax.xlane.f32.xlu1 %v2851_v49  ;;  %v8851_v49 = vpop.f32.mrf.mxu0  ;;  %10493 = vst [vmem:[#allocation22_spill] sm:$0xff] %v8863_v58 }
 0x14a   : > { %10490 = vst [vmem:[#allocation19_spill] sm:$0xff] %v8851_v49 }
 0x14c   : > { %2873 = vmax.xlane.f32.xlu0 %v2872_v7  ;;  %v2878_v7 = vsel %vm2691_vm1, %v8847_v4, -inf  ;;  %v8875_v4 = vpop.f32.mrf.mxu1 }
 0x14d   : > { %2876 = vmax.xlane.f32.xlu1 %v2875_v46  ;;  %v8857_v46 = vpop.f32.mrf.mxu0  ;;  %10496 = vst [vmem:[#allocation25_spill] sm:$0xff] %v8875_v4 }
 0x14e   : > { %10491 = vst [vmem:[#allocation20_spill] sm:$0xff] %v8857_v46  ;;  %v2884_v18 = vsel %vm2691_vm1, %v8857_v46, -inf }
 0x150   : > { %2855 = vmax.xlane.f32.xlu0 %v2854_v31  ;;  %v2887_v31 = vsel %vm2691_vm1, %v8851_v49, -inf  ;;  %v8879_v49 = vpop.f32.mrf.mxu1 }
 0x151   : > { %2858 = vmax.xlane.f32.xlu1 %v2857_v37  ;;  %v8867_v37 = vpop.f32.mrf.mxu0  ;;  %10497 = vst [vmem:[#allocation26_spill] sm:$0xff] %v8879_v49  ;;  %v2914_v6 = vsel %vm2691_vm1, %v8879_v49, -inf }
 0x152   : > { %10494 = vst [vmem:[#allocation23_spill] sm:$0xff] %v8867_v37  ;;  %v8892_v54 = vpop.f32.mrf.mxu1 }
 0x154   : > { %2879 = vmax.xlane.f32.xlu0 %v2878_v7  ;;  %v2908_v7 = vsel %vm2691_vm1, %v8863_v58, -inf  ;;  %v8898_v49 = vpop.f32.mrf.mxu1 }
 0x155   : > { %2882 = vmax.xlane.f32.xlu1 %v2881_v1  ;;  %v8873_v1 = vpop.f32.mrf.mxu0 }
 0x156   : > { %10495 = vst [vmem:[#allocation24_spill] sm:$0xff] %v8873_v1  ;;  %v2890_v46 = vsel %vm2691_vm1, %v8873_v1, -inf }
 0x158   : > { %2885 = vmax.xlane.f32.xlu0 %v2884_v18  ;;  %v2893_v18 = vsel %vm2691_vm1, %v8867_v37, -inf }
 0x159   : > { %2888 = vmax.xlane.f32.xlu1 %v2887_v31  ;;  %v8883_v31 = vpop.f32.mrf.mxu0 }
 0x15a   : > { %10498 = vst [vmem:[#allocation27_spill] sm:$0xff] %v8883_v31 }
 0x15b   : > { %v8890_v1 = vpop.f32.mrf.mxu0 }
 0x15c   : > { %2909 = vmax.xlane.f32.xlu0 %v2908_v7  ;;  %10499 = vst [vmem:[#allocation28_spill] sm:$0xff] %v8890_v1 }
 0x15d   : > { %2912 = vmax.xlane.f32.xlu1 %v2911_v56  ;;  %v2917_v56 = vsel %vm2691_vm1, %v8875_v4, -inf  ;;  %v8902_v4 = vpop.f32.mrf.mxu0 }
 0x160   : > { %2891 = vmax.xlane.f32.xlu0 %v2890_v46 }
 0x161   : > { %2894 = vmax.xlane.f32.xlu1 %v2893_v18  ;;  %v2697_v58 = vpop.xlane.xlu0 %2696 }
 0x162   : > { %v2721_v13 = vpop.xlane.xlu1 %2720  ;;  %v3077_v7 = vsub.f32 %v8569_v16, %v2697_v58  ;;  %v2896_v16 = vsel %vm2691_vm1, %v8890_v1, -inf }
 0x163   : > { %v3085_v61 = vsub.f32 %v8571_v17, %v2721_v13 }
 0x164   : > { %2915 = vmax.xlane.f32.xlu0 %v2914_v6  ;;  %v3206_v42 = vmul.f32 1.442695, %v3077_v7  ;;  %v2899_v6 = vsel %vm2691_vm1, %v8883_v31, -inf  ;;  %v8911_v31 = vpop.f32.mrf.mxu0 }
 0x165   : > { %2918 = vmax.xlane.f32.xlu1 %v2917_v56  ;;  %v2694_v46 = vpop.xlane.xlu0 %2693  ;;  %v3222_v7 = vmul.f32 1.442695, %v3085_v61 }
 0x166   : > { %v3076_v37 = vsub.f32 %v8577_v20, %v2694_v46  ;;  %v2703_v18 = vpop.xlane.xlu1 %2702 }
 0x167   : > { %v3079_v56 = vsub.f32 %v8581_v22, %v2703_v18  ;;  %v8913_v22 = vpop.f32.mrf.mxu1 }
 0x168   : > { %v3204_v58 = vmul.f32 1.442695, %v3076_v37  ;;  %2897 = vmax.xlane.f32.xlu0 %v2896_v16  ;;  %v2920_v37 = vsel %vm2691_vm1, %v8898_v49, -inf  ;;  %v2923_v16 = vsel %vm2691_vm1, %v8892_v54, -inf }
 0x169   : > { %2900 = vmax.xlane.f32.xlu1 %v2899_v6  ;;  %v2718_v20 = vpop.xlane.xlu0 %2717  ;;  %v3210_v18 = vmul.f32 1.442695, %v3079_v56  ;;  %v8923_v56 = vpop.f32.mrf.mxu0 }
 0x16a   : > { %7732 = vpow2.f32 %v3204_v58  ;;  %v3084_v17 = vsub.f32 %v8579_v21, %v2718_v20  ;;  %v2727_v13 = vpop.xlane.xlu1 %2726 }
 0x16b   : > { %7734 = vpow2.f32 %v3206_v42  ;;  %v3087_v1 = vsub.f32 %v8587_v25, %v2727_v13  ;;  %v2902_v25 = vsel %vm2691_vm1, %v8911_v31, -inf  ;;  %v2905_v13 = vsel %vm2691_vm1, %v8902_v4, -inf }
 0x16c   : > { %v3220_v46 = vmul.f32 1.442695, %v3084_v17  ;;  %2921 = vmax.xlane.f32.xlu0 %v2920_v37  ;;  %v8919_v17 = vpop.f32.mrf.mxu1 }
 0x16d   : > { %2924 = vmax.xlane.f32.xlu1 %v2923_v16  ;;  %v2724_v21 = vpop.xlane.xlu0 %2723  ;;  %v3226_v6 = vmul.f32 1.442695, %v3087_v1 }
 0x16e   : > { %7736 = vpow2.f32 %v3220_v46  ;;  %v3086_v42 = vsub.f32 %v8595_v29, %v2724_v21  ;;  %v2700_v61 = vpop.xlane.xlu1 %2699  ;;  %v2926_v46 = vsel %vm2691_vm1, %v8919_v17, -inf  ;;  %v2929_v21 = vsel %vm2691_vm1, %v8913_v22, -inf }
 0x16f   : > { %7738 = vpow2.f32 %v3222_v7  ;;  %v3078_v58 = vsub.f32 %v8589_v26, %v2700_v61 }
 0x170   : > { %v3224_v20 = vmul.f32 1.442695, %v3086_v42  ;;  %2903 = vmax.xlane.f32.xlu0 %v2902_v25  ;;  %7740 = vpow2.f32 %v3210_v18  ;;  %v8931_v18 = vpop.f32.mrf.mxu0  ;;  %v8933_v42 = vpop.f32.mrf.mxu1 }
 0x171   : > { %v3208_v37 = vmul.f32 1.442695, %v3078_v58  ;;  %2906 = vmax.xlane.f32.xlu1 %v2905_v13  ;;  %v2706_v29 = vpop.xlane.xlu0 %2705  ;;  %10500 = vst [vmem:[#allocation29_spill] sm:$0xff] %v8933_v42 }
 0x172   : > { %7742 = vpow2.f32 %v3224_v20  ;;  %v2709_v7 = vpop.xlane.xlu1 %2708  ;;  %v3080_v26 = vsub.f32 %v8603_v33, %v2706_v29  ;;  %v2932_v20 = vsel %vm2691_vm1, %v8931_v18, -inf  ;;  %v8943_v29 = vpop.f32.mrf.mxu1 }
 0x173   : > { %7744 = vpow2.f32 %v3208_v37  ;;  %v3081_v1 = vsub.f32 %v8597_v30, %v2709_v7  ;;  %10501 = vst [vmem:[#allocation30_spill] sm:$0xff] %v8943_v29  ;;  %v2935_v7 = vsel %vm2691_vm1, %v8923_v56, -inf }
 0x174   : > { %7746 = vpow2.f32 %v3226_v6  ;;  %v3212_v16 = vmul.f32 1.442695, %v3080_v26  ;;  %2927 = vmax.xlane.f32.xlu0 %v2926_v46  ;;  %v520_v26 = vld [vmem:[%s8611_s25 + $0xb0] sm:$0xff] }
 0x175   : > { %v3214_v61 = vmul.f32 1.442695, %v3081_v1  ;;  %2930 = vmax.xlane.f32.xlu1 %v2929_v21  ;;  %v2730_v33 = vpop.xlane.xlu0 %2729 }
 0x176   : > { %7748 = vpow2.f32 %v3212_v16  ;;  %v2733_v58 = vpop.xlane.xlu1 %2732  ;;  %v3088_v30 = vsub.f32 %v8615_v36, %v2730_v33  ;;  %v8949_v36 = vpop.f32.mrf.mxu0  ;;  %v2956_v33 = vsel %vm2691_vm1, %v8943_v29, -inf }
 0x177   : > { %v8936_v25 = vpop.eup %7732  ;;  %7750 = vpow2.f32 %v3214_v61  ;;  %v3089_v6 = vsub.f32 %v8605_v34, %v2733_v58  ;;  %10502 = vst [vmem:[#allocation31_spill] sm:$0xff] %v8949_v36 }
 0x178   : > { %v8941_v13 = vpop.eup %7734  ;;  %v3228_v37 = vmul.f32 1.442695, %v3088_v30  ;;  %7292 = vmatprep.mubr.msk.f32.mxu0 %vm2691_vm1, %v8936_v25  ;;  %2933 = vmax.xlane.f32.xlu0 %v2932_v20  ;;  %v519_v20 = vld [vmem:[%s8611_s25 + $0xa8] sm:$0xff] }
 0x179   : > { %v3230_v1 = vmul.f32 1.442695, %v3089_v6  ;;  %2936 = vmax.xlane.f32.xlu1 %v2935_v7  ;;  %7293 = vmatmul.mubr.msk.f32.vlgmr.msra.gmra.mxu0 %vm2691_vm1, %v8941_v13  ;;  %v2712_v34 = vpop.xlane.xlu0 %2711  ;;  %v8969_v6 = vpop.f32.mrf.mxu1 }
 0x17a   : > { %7752 = vpow2.f32 %v3228_v37  ;;  %v2715_v46 = vpop.xlane.xlu1 %2714  ;;  %v3082_v16 = vsub.f32 %v8627_v43, %v2712_v34  ;;  %7333 = vmatpush3.msra.mxu0 %v8694_v24  ;;  %v2959_v43 = vsel %vm2691_vm1, %v8933_v42, -inf  ;;  %v8967_v24 = vpop.f32.mrf.mxu0  ;;  %10504 = vst [vmem:[#allocation33_spill] sm:$0xff] %v8969_v6 }
 0x17b   : > { %v8956_v21 = vpop.eup %7736  ;;  %7754 = vpow2.f32 %v3230_v1  ;;  %v3083_v61 = vsub.f32 %v8619_v38, %v2715_v46  ;;  %7334 = vmatprep.subr.mxu0 %v520_v26  ;;  %10503 = vst [vmem:[#allocation32_spill] sm:$0xff] %v8967_v24  ;;  %v528_v38 = vld [vmem:[%s8611_s25 + $0xf0] sm:$0xff] }
 0x17c   : > { %v8961_v58 = vpop.eup %7738  ;;  %v3216_v30 = vmul.f32 1.442695, %v3082_v16  ;;  %7320 = vmatprep.mubr.msk.f32.mxu1 %vm2691_vm1, %v8956_v21  ;;  %2957 = vmax.xlane.f32.xlu0 %v2956_v33 }
 0x17d   : > { %v3218_v37 = vmul.f32 1.442695, %v3083_v61  ;;  %2960 = vmax.xlane.f32.xlu1 %v2959_v43  ;;  %7321 = vmatmul.mubr.msk.f32.vlgmr.msra.gmra.mxu1 %vm2691_vm1, %v8961_v58  ;;  %v2736_v7 = vpop.xlane.xlu0 %2735  ;;  %v8975_v1 = vpop.eup %7740  ;;  %v2938_v61 = vsel %vm2691_vm1, %v8967_v24, -inf }
 0x17e   : > { %7756 = vpow2.f32 %v3216_v30  ;;  %v2739_v34 = vpop.xlane.xlu1 %2738  ;;  %v3090_v46 = vsub.f32 %v8637_v50, %v2736_v7  ;;  %7335 = vmatpush3.msra.mxu0 %v520_v26  ;;  %7361 = vmatpush3.msra.mxu1 %v8706_v35  ;;  %v8986_v30 = vpop.f32.mrf.mxu1  ;;  %v2941_v50 = vsel %vm2691_vm1, %v8949_v36, -inf }
 0x17f   : > { %v8979_v16 = vpop.eup %7742  ;;  %7758 = vpow2.f32 %v3218_v37  ;;  %v3091_v33 = vsub.f32 %v8629_v44, %v2739_v34  ;;  %7336 = vmatprep.subr.mxu0 %v519_v20  ;;  %7362 = vmatprep.subr.mxu1 %v528_v38  ;;  %10505 = vst [vmem:[#allocation34_spill] sm:$0xff] %v8986_v30  ;;  %v8992_v35 = vpop.f32.mrf.mxu0 }
 0x180   : > { %v8984_v43 = vpop.eup %7744  ;;  %v3232_v42 = vmul.f32 1.442695, %v3090_v46  ;;  %7323 = vmatprep.mubr.msk.f32.mxu1 %vm2691_vm1, %v8979_v16  ;;  %2939 = vmax.xlane.f32.xlu0 %v2938_v61  ;;  %10506 = vst [vmem:[#allocation35_spill] sm:$0xff] %v8992_v35  ;;  %v518_v46 = vld [vmem:[%s8611_s25 + $0xa0] sm:$0xff] }
 0x181   : > { %v8994_v44 = vpop.eup %7746  ;;  %v3234_v26 = vmul.f32 1.442695, %v3091_v33  ;;  %7295 = vmatprep.mubr.msk.f32.mxu0 %vm2691_vm1, %v8984_v43  ;;  %2942 = vmax.xlane.f32.xlu1 %v2941_v50  ;;  %v2742_v37 = vpop.xlane.xlu0 %2741  ;;  %v2962_v50 = vsel %vm2691_vm1, %v8986_v30, -inf }
 0x182   : > { %7760 = vpow2.f32 %v3232_v42  ;;  %7296 = vmatmul.mubr.msk.f32.gmra.mxu0 %vm2691_vm1, %v8975_v1  ;;  %7324 = vmatmul.mubr.msk.f32.gmra.mxu1 %vm2691_vm1, %v8994_v44  ;;  %v2745_v7 = vpop.xlane.xlu1 %2744  ;;  %v3092_v34 = vsub.f32 %v8651_v59, %v2742_v37  ;;  %v527_v42 = vld [vmem:[%s8611_s25 + $0xe8] sm:$0xff]  ;;  %v2965_v59 = vsel %vm2691_vm1, %v8969_v6, -inf  ;;  %v9016_v37 = vpop.f32.mrf.mxu0  ;;  %v526_v6 = vld [vmem:[%s8611_s25 + $0xe0] sm:$0xff] }
 0x183   : > { %v9004_v61 = vpop.eup %7748  ;;  %7762 = vpow2.f32 %v3234_v26  ;;  %v3093_v33 = vsub.f32 %v8641_v52, %v2745_v7  ;;  %7337 = vmatpush3.msra.mxu0 %v519_v20  ;;  %7363 = vmatpush3.msra.mxu1 %v528_v38  ;;  %v9018_v52 = vpop.f32.mrf.mxu1 }
 0x184   : > { %v9010_v36 = vpop.eup %7750  ;;  %v3236_v24 = vmul.f32 1.442695, %v3092_v34  ;;  %7298 = vmatprep.mubr.msk.f32.mxu0 %vm2691_vm1, %v9004_v61  ;;  %2963 = vmax.xlane.f32.xlu0 %v2962_v50  ;;  %10507 = vst [vmem:[#allocation36_spill] sm:$0xff] %v9018_v52 }
 0x185   : > { %v3238_v26 = vmul.f32 1.442695, %v3093_v33  ;;  %2966 = vmax.xlane.f32.xlu1 %v2965_v59  ;;  %v2766_v20 = vpop.xlane.xlu0 %2765  ;;  %7338 = vmatprep.subr.mxu0 %v518_v46  ;;  %v2944_v33 = vsel %vm2691_vm1, %v9016_v37, -inf  ;;  %v517_v59 = vld [vmem:[%s8611_s25 + $0x98] sm:$0xff]  ;;  %v9032_v29 = vpop.f32.mrf.mxu1 }
 0x186   : > { %7764 = vpow2.f32 %v3236_v24  ;;  %7299 = vmatmul.mubr.msk.f32.gmra.mxu0 %vm2691_vm1, %v9010_v36  ;;  %v2769_v38 = vpop.xlane.xlu1 %2768  ;;  %v3100_v7 = vsub.f32 %v8659_v0, %v2766_v20  ;;  %7364 = vmatprep.subr.mxu1 %v527_v42  ;;  %10508 = vst [vmem:[#allocation37_spill] sm:$0xff] %v9032_v29  ;;  %v2947_v0 = vsel %vm2691_vm1, %v8992_v35, -inf }
 0x187   : > { %v9023_v34 = vpop.eup %7752  ;;  %7766 = vpow2.f32 %v3238_v26  ;;  %v3101_v50 = vsub.f32 %v8653_v60, %v2769_v38  ;;  %7339 = vmatpush3.msra.mxu0 %v518_v46  ;;  %7365 = vmatpush3.msra.mxu1 %v527_v42  ;;  %v9038_v60 = vpop.f32.mrf.mxu0 }
 0x188   : > { %v9030_v24 = vpop.eup %7754  ;;  %v3252_v30 = vmul.f32 1.442695, %v3100_v7  ;;  %7326 = vmatprep.mubr.msk.f32.mxu1 %vm2691_vm1, %v9023_v34  ;;  %2945 = vmax.xlane.f32.xlu0 %v2944_v33  ;;  %10509 = vst [vmem:[#allocation38_spill] sm:$0xff] %v9038_v60  ;;  %v516_v33 = vld [vmem:[%s8611_s25 + $0x90] sm:$0xff] }
 0x189   : > { %v3254_v26 = vmul.f32 1.442695, %v3101_v50  ;;  %2948 = vmax.xlane.f32.xlu1 %v2947_v0  ;;  %7327 = vmatmul.mubr.msk.f32.gmra.mxu1 %vm2691_vm1, %v9030_v24  ;;  %v2748_v46 = vpop.xlane.xlu0 %2747  ;;  %v2968_v50 = vsel %vm2691_vm1, %v9032_v29, -inf  ;;  %v525_v0 = vld [vmem:[%s8611_s25 + $0xd8] sm:$0xff] }
 0x18a   : > { %7768 = vpow2.f32 %v3252_v30  ;;  %v2751_v42 = vpop.xlane.xlu1 %2750  ;;  %v3094_v20 = vsub.f32 %v8672_v8, %v2748_v46  ;;  %7340 = vmatprep.subr.mxu0 %v517_v59  ;;  %7366 = vmatprep.subr.mxu1 %v526_v6  ;;  %v2971_v8 = vsel %vm2691_vm1, %v9018_v52, -inf }
 0x18b   : > { %v9043_v38 = vpop.eup %7756  ;;  %7770 = vpow2.f32 %v3254_v26  ;;  %v3095_v7 = vsub.f32 %v8663_v2, %v2751_v42  ;;  %7341 = vmatpush3.msra.mxu0 %v517_v59  ;;  %7367 = vmatpush3.msra.mxu1 %v526_v6  ;;  %v9056_v26 = vpop.f32.mrf.mxu0 }
 0x18c   : > { %v9050_v35 = vpop.eup %7758  ;;  %v3240_v30 = vmul.f32 1.442695, %v3094_v20  ;;  %7301 = vmatprep.mubr.msk.f32.mxu0 %vm2691_vm1, %v9043_v38  ;;  %2969 = vmax.xlane.f32.xlu0 %v2968_v50  ;;  %10510 = vst [vmem:[#allocation39_spill] sm:$0xff] %v9056_v26  ;;  %v9061_v42 = vpop.f32.mrf.mxu1  ;;  %v2950_v50 = vsel %vm2691_vm1, %v9056_v26, -inf }
 0x18d   : > { %v3242_v2 = vmul.f32 1.442695, %v3095_v7  ;;  %2972 = vmax.xlane.f32.xlu1 %v2971_v8  ;;  %7302 = vmatmul.mubr.msk.f32.gmra.mxu0 %vm2691_vm1, %v9050_v35  ;;  %v2772_v6 = vpop.xlane.xlu0 %2771  ;;  %10511 = vst [vmem:[#allocation40_spill] sm:$0xff] %v9061_v42  ;;  %v515_v8 = vld [vmem:[%s8611_s25 + $0x88] sm:$0xff] }
 0x18e   : > { %7772 = vpow2.f32 %v3240_v30  ;;  %v2775_v59 = vpop.xlane.xlu1 %2774  ;;  %v3102_v46 = vsub.f32 %v8679_v12, %v2772_v6  ;;  %7342 = vmatprep.subr.mxu0 %v516_v33  ;;  %7368 = vmatprep.subr.mxu1 %v525_v0  ;;  %v524_v30 = vld [vmem:[%s8611_s25 + $0xd0] sm:$0xff]  ;;  %v2953_v6 = vsel %vm2691_vm1, %v9038_v60, -inf  ;;  %v537_v60 = vld [vmem:[%s8611_s25 + $0x138] sm:$0xff] }
 0x18f   : > { %v9063_v20 = vpop.eup %7760  ;;  %7774 = vpow2.f32 %v3242_v2  ;;  %v3103_v7 = vsub.f32 %v8674_v9, %v2775_v59  ;;  %7343 = vmatpush3.msra.mxu0 %v516_v33  ;;  %7369 = vmatpush3.msra.mxu1 %v525_v0  ;;  %v514_v33 = vld [vmem:[%s8611_s25 + $0x80] sm:$0xff]  ;;  %v9079_v0 = vpop.f32.mrf.mxu1 }
 0x190   : > { %v9070_v52 = vpop.eup %7762  ;;  %v3256_v12 = vmul.f32 1.442695, %v3102_v46  ;;  %7329 = vmatprep.mubr.msk.f32.mxu1 %vm2691_vm1, %v9063_v20  ;;  %2951 = vmax.xlane.f32.xlu0 %v2950_v50 }
 0x191   : > { %v3258_v2 = vmul.f32 1.442695, %v3103_v7  ;;  %2954 = vmax.xlane.f32.xlu1 %v2953_v6  ;;  %7330 = vmatmul.mubr.msk.f32.gmra.mxu1 %vm2691_vm1, %v9070_v52  ;;  %v2754_v9 = vpop.xlane.xlu0 %2753  ;;  %v9095_v29 = vpop.f32.mrf.mxu1 }
 0x192   : > { %7776 = vpow2.f32 %v3256_v12  ;;  %7344 = vmatprep.subr.mxu0 %v515_v8  ;;  %v2757_v59 = vpop.xlane.xlu1 %2756  ;;  %v3096_v46 = vsub.f32 %v8689_v19, %v2754_v9  ;;  %7370 = vmatprep.subr.mxu1 %v524_v30  ;;  %v2977_v12 = vsel %vm2691_vm1, %v9061_v42, -inf  ;;  %v9091_v19 = vpop.f32.mrf.mxu0  ;;  %v523_v9 = vld [vmem:[%s8611_s25 + $0xc8] sm:$0xff]  ;;  %10513 = vst [vmem:[#allocation42_spill] sm:$0xff] %v9095_v29 }
 0x193   : > { %v9082_v26 = vpop.eup %7764  ;;  %7778 = vpow2.f32 %v3258_v2  ;;  %v3097_v7 = vsub.f32 %v8683_v14, %v2757_v59  ;;  %7345 = vmatpush3.msra.mxu0 %v515_v8  ;;  %7371 = vmatpush3.msra.mxu1 %v524_v30  ;;  %10512 = vst [vmem:[#allocation41_spill] sm:$0xff] %v9091_v19  ;;  %v2974_v14 = vsel %vm2691_vm1, %v9079_v0, -inf }
 0x194   : > { %v9085_v50 = vpop.eup %7766  ;;  %v3244_v6 = vmul.f32 1.442695, %v3096_v46  ;;  %7346 = vmatprep.subr.mxu0 %v514_v33  ;;  %7348 = vmatprep.mubr.msk.f32.mxu0 %vm2691_vm1, %v9082_v26  ;;  %v522_v46 = vld [vmem:[%s8611_s25 + $0xc0] sm:$0xff] }
 0x195   : > { %v3246_v2 = vmul.f32 1.442695, %v3097_v7  ;;  %7347 = vmatpush3.msra.mxu0 %v514_v33  ;;  %2978 = vmax.xlane.f32.xlu1 %v2977_v12  ;;  %v2778_v8 = vpop.xlane.xlu0 %2777  ;;  %v2983_v7 = vsel %vm2691_vm1, %v9091_v19, -inf  ;;  %v536_v19 = vld [vmem:[%s8611_s25 + $0x130] sm:$0xff] }
 0x196   : > { %7780 = vpow2.f32 %v3244_v6  ;;  %2975 = vmax.xlane.f32.xlu0 %v2974_v14  ;;  %7349 = vmatmul.mubr.msk.f32.vlgmr.msra.gmra.mxu0 %vm2691_vm1, %v9085_v50  ;;  %v2781_v30 = vpop.xlane.xlu1 %2780  ;;  %v3104_v59 = vsub.f32 %v8699_v28, %v2778_v8  ;;  %v3007_v6 = vsel %vm2691_vm1, %v9095_v29, -inf  ;;  %v9114_v8 = vpop.f32.mrf.mxu1 }
 0x197   : > { %v9105_v42 = vpop.eup %7768  ;;  %7782 = vpow2.f32 %v3246_v2  ;;  %7372 = vmatprep.subr.mxu1 %v523_v9  ;;  %v3105_v33 = vsub.f32 %v8691_v23, %v2781_v30  ;;  %7388 = vmatprep.subr.mxu0 %v537_v60  ;;  %10514 = vst [vmem:[#allocation43_spill] sm:$0xff] %v9114_v8  ;;  %v9117_v23 = vpop.f32.mrf.mxu0 }
 0x198   : > { %v9110_v12 = vpop.eup %7770  ;;  %v3260_v14 = vmul.f32 1.442695, %v3104_v59  ;;  %7373 = vmatpush3.msra.mxu1 %v523_v9  ;;  %7376 = vmatprep.mubr.msk.f32.mxu1 %vm2691_vm1, %v9105_v42  ;;  %10515 = vst [vmem:[#allocation44_spill] sm:$0xff] %v9117_v23 }
 0x199   : > { %v3262_v28 = vmul.f32 1.442695, %v3105_v33  ;;  %7374 = vmatprep.subr.mxu1 %v522_v46  ;;  %2984 = vmax.xlane.f32.xlu1 %v2983_v7  ;;  %v2760_v2 = vpop.xlane.xlu0 %2759 }
 0x19a   : > { %7784 = vpow2.f32 %v3260_v14  ;;  %7375 = vmatpush3.msra.mxu1 %v522_v46  ;;  %3008 = vmax.xlane.f32.xlu0 %v3007_v6  ;;  %v2763_v30 = vpop.xlane.xlu1 %2762  ;;  %v3098_v9 = vsub.f32 %v8713_v40, %v2760_v2  ;;  %v3004_v46 = vsel %vm2691_vm1, %v9114_v8, -inf  ;;  %v535_v40 = vld [vmem:[%s8611_s25 + $0x128] sm:$0xff]  ;;  %v545_v6 = vld [vmem:[%s8611_s25 + $0x178] sm:$0xff] }
 0x19b   : > { %v9120_v59 = vpop.eup %7772  ;;  %7786 = vpow2.f32 %v3262_v28  ;;  %7377 = vmatmul.mubr.msk.f32.vlgmr.msra.gmra.mxu1 %vm2691_vm1, %v9110_v12  ;;  %v3099_v7 = vsub.f32 %v8703_v32, %v2763_v30  ;;  %7389 = vmatpush3.msra.mxu0 %v537_v60  ;;  %v9133_v28 = vpop.f32.mrf.mxu1  ;;  %v2980_v32 = vsel %vm2691_vm1, %v9117_v23, -inf }
 0x19c   : > { %v9125_v33 = vpop.eup %7774  ;;  %v3248_v14 = vmul.f32 1.442695, %v3098_v9  ;;  %7351 = vmatprep.mubr.msk.f32.mxu0 %vm2691_vm1, %v9120_v59  ;;  %7390 = vmatprep.subr.mxu0 %v536_v19  ;;  %10516 = vst [vmem:[#allocation45_spill] sm:$0xff] %v9133_v28  ;;  %v9139_v30 = vpop.f32.mrf.mxu0 }
 0x19d   : > { %v3250_v2 = vmul.f32 1.442695, %v3099_v7  ;;  %3005 = vmax.xlane.f32.xlu1 %v3004_v46  ;;  %7352 = vmatmul.mubr.msk.f32.gmra.mxu0 %vm2691_vm1, %v9125_v33  ;;  %v2784_v60 = vpop.xlane.xlu0 %2783  ;;  %10517 = vst [vmem:[#allocation46_spill] sm:$0xff] %v9139_v30  ;;  %v3013_v7 = vsel %vm2691_vm1, %v9133_v28, -inf  ;;  %v9155_v28 = vpop.f32.mrf.mxu1 }
 0x19e   : > { %7788 = vpow2.f32 %v3248_v14  ;;  %2981 = vmax.xlane.f32.xlu0 %v2980_v32  ;;  %v2787_v9 = vpop.xlane.xlu1 %2786  ;;  %v3106_v8 = vsub.f32 %v8719_v45, %v2784_v60  ;;  %7391 = vmatpush3.msra.mxu0 %v536_v19  ;;  %v2989_v14 = vsel %vm2691_vm1, %v9139_v30, -inf  ;;  %v534_v45 = vld [vmem:[%s8611_s25 + $0x120] sm:$0xff]  ;;  %v544_v60 = vld [vmem:[%s8611_s25 + $0x170] sm:$0xff]  ;;  %10518 = vst [vmem:[#allocation47_spill] sm:$0xff] %v9155_v28 }
 0x19f   : > { %v9144_v46 = vpop.eup %7776  ;;  %7790 = vpow2.f32 %v3250_v2  ;;  %v3107_v23 = vsub.f32 %v8715_v41, %v2787_v9  ;;  %7392 = vmatprep.subr.mxu0 %v535_v40  ;;  %7416 = vmatprep.subr.mxu1 %v545_v6  ;;  %v9159_v2 = vpop.f32.mrf.mxu0 }
 0x1a0   : > { %v9149_v32 = vpop.eup %7778  ;;  %v3264_v29 = vmul.f32 1.442695, %v3106_v8  ;;  %7379 = vmatprep.mubr.msk.f32.mxu1 %vm2691_vm1, %v9144_v46  ;;  %7393 = vmatpush3.msra.mxu0 %v535_v40  ;;  %10519 = vst [vmem:[#allocation48_spill] sm:$0xff] %v9159_v2 }
 0x1a1   : > { %v3266_v19 = vmul.f32 1.442695, %v3107_v23  ;;  %3014 = vmax.xlane.f32.xlu1 %v3013_v7  ;;  %7380 = vmatmul.mubr.msk.f32.gmra.mxu1 %vm2691_vm1, %v9149_v32  ;;  %v2790_v41 = vpop.xlane.xlu0 %2789 }
 0x1a2   : > { %7792 = vpow2.f32 %v3264_v29  ;;  %2990 = vmax.xlane.f32.xlu0 %v2989_v14  ;;  %v2793_v8 = vpop.xlane.xlu1 %2792  ;;  %v3108_v9 = vsub.f32 %v8729_v51, %v2790_v41  ;;  %7417 = vmatpush3.msra.mxu1 %v545_v6  ;;  %v3010_v29 = vsel %vm2691_vm1, %v9155_v28, -inf  ;;  %v533_v14 = vld [vmem:[%s8611_s25 + $0x118] sm:$0xff]  ;;  %v543_v51 = vld [vmem:[%s8611_s25 + $0x168] sm:$0xff]  ;;  %v9173_v41 = vpop.f32.mrf.mxu1 }
 0x1a3   : > { %v9162_v40 = vpop.eup %7780  ;;  %7794 = vpow2.f32 %v3266_v19  ;;  %v3109_v23 = vsub.f32 %v8723_v47, %v2793_v8  ;;  %7394 = vmatprep.subr.mxu0 %v534_v45  ;;  %7418 = vmatprep.subr.mxu1 %v544_v60  ;;  %10520 = vst [vmem:[#allocation49_spill] sm:$0xff] %v9173_v41  ;;  %v2986_v47 = vsel %vm2691_vm1, %v9159_v2, -inf  ;;  %v9179_v8 = vpop.f32.mrf.mxu0 }
 0x1a4   : > { %v9165_v7 = vpop.eup %7782  ;;  %v3268_v30 = vmul.f32 1.442695, %v3108_v9  ;;  %7354 = vmatprep.mubr.msk.f32.mxu0 %vm2691_vm1, %v9162_v40  ;;  %7395 = vmatpush3.msra.mxu0 %v534_v45  ;;  %10521 = vst [vmem:[#allocation50_spill] sm:$0xff] %v9179_v8 }
 0x1a5   : > { %v3270_v6 = vmul.f32 1.442695, %v3109_v23  ;;  %3011 = vmax.xlane.f32.xlu1 %v3010_v29  ;;  %7355 = vmatmul.mubr.msk.f32.gmra.mxu0 %vm2691_vm1, %v9165_v7  ;;  %v2814_v19 = vpop.xlane.xlu0 %2813  ;;  %v3019_v23 = vsel %vm2691_vm1, %v9173_v41, -inf  ;;  %v9195_v41 = vpop.f32.mrf.mxu1 }
 0x1a6   : > { %7796 = vpow2.f32 %v3268_v30  ;;  %2987 = vmax.xlane.f32.xlu0 %v2986_v47  ;;  %v2817_v45 = vpop.xlane.xlu1 %2816  ;;  %v3116_v9 = vsub.f32 %v8735_v55, %v2814_v19  ;;  %7419 = vmatpush3.msra.mxu1 %v544_v60  ;;  %v2995_v30 = vsel %vm2691_vm1, %v9179_v8, -inf  ;;  %v532_v55 = vld [vmem:[%s8611_s25 + $0x110] sm:$0xff]  ;;  %v542_v19 = vld [vmem:[%s8611_s25 + $0x160] sm:$0xff]  ;;  %10522 = vst [vmem:[#allocation51_spill] sm:$0xff] %v9195_v41 }
 0x1a7   : > { %v9184_v29 = vpop.eup %7784  ;;  %7798 = vpow2.f32 %v3270_v6  ;;  %v3117_v2 = vsub.f32 %v8731_v53, %v2817_v45  ;;  %7396 = vmatprep.subr.mxu0 %v533_v14  ;;  %7420 = vmatprep.subr.mxu1 %v543_v51  ;;  %v9199_v6 = vpop.f32.mrf.mxu0 }
 0x1a8   : > { %v9189_v47 = vpop.eup %7786  ;;  %v3284_v28 = vmul.f32 1.442695, %v3116_v9  ;;  %7382 = vmatprep.mubr.msk.f32.mxu1 %vm2691_vm1, %v9184_v29  ;;  %7397 = vmatpush3.msra.mxu0 %v533_v14  ;;  %10523 = vst [vmem:[#allocation52_spill] sm:$0xff] %v9199_v6 }
 0x1a9   : > { %v3286_v60 = vmul.f32 1.442695, %v3117_v2  ;;  %3020 = vmax.xlane.f32.xlu1 %v3019_v23  ;;  %7383 = vmatmul.mubr.msk.f32.gmra.mxu1 %vm2691_vm1, %v9189_v47  ;;  %v2796_v53 = vpop.xlane.xlu0 %2795 }
 0x1aa   : > { %7800 = vpow2.f32 %v3284_v28  ;;  %2996 = vmax.xlane.f32.xlu0 %v2995_v30  ;;  %v2799_v45 = vpop.xlane.xlu1 %2798  ;;  %v3110_v9 = vsub.f32 %v8745_v62, %v2796_v53  ;;  %7421 = vmatpush3.msra.mxu1 %v543_v51  ;;  %v3016_v28 = vsel %vm2691_vm1, %v9195_v41, -inf  ;;  %v531_v30 = vld [vmem:[%s8611_s25 + $0x108] sm:$0xff]  ;;  %v541_v62 = vld [vmem:[%s8611_s25 + $0x158] sm:$0xff]  ;;  %v9213_v53 = vpop.f32.mrf.mxu1 }
 0x1ab   : > { %v9202_v14 = vpop.eup %7788  ;;  %7802 = vpow2.f32 %v3286_v60  ;;  %v3111_v2 = vsub.f32 %v8739_v57, %v2799_v45  ;;  %7398 = vmatprep.subr.mxu0 %v532_v55  ;;  %7422 = vmatprep.subr.mxu1 %v542_v19  ;;  %10524 = vst [vmem:[#allocation53_spill] sm:$0xff] %v9213_v53  ;;  %v2992_v57 = vsel %vm2691_vm1, %v9199_v6, -inf  ;;  %v9219_v45 = vpop.f32.mrf.mxu0 }
 0x1ac   : > { %v9205_v23 = vpop.eup %7790  ;;  %v3272_v8 = vmul.f32 1.442695, %v3110_v9  ;;  %7357 = vmatprep.mubr.msk.f32.mxu0 %vm2691_vm1, %v9202_v14  ;;  %7399 = vmatpush3.msra.mxu0 %v532_v55  ;;  %10525 = vst [vmem:[#allocation54_spill] sm:$0xff] %v9219_v45 }
 0x1ad   : > { %v3274_v51 = vmul.f32 1.442695, %v3111_v2  ;;  %3017 = vmax.xlane.f32.xlu1 %v3016_v28  ;;  %7358 = vmatmul.mubr.msk.f32.gmra.mxu0 %vm2691_vm1, %v9205_v23  ;;  %v2820_v60 = vpop.xlane.xlu0 %2819  ;;  %v3025_v2 = vsel %vm2691_vm1, %v9213_v53, -inf  ;;  %v9235_v53 = vpop.f32.mrf.mxu1 }
 0x1ae   : > { %7804 = vpow2.f32 %v3272_v8  ;;  %2993 = vmax.xlane.f32.xlu0 %v2992_v57  ;;  %v2823_v55 = vpop.xlane.xlu1 %2822  ;;  %v3118_v9 = vsub.f32 %v8751_v3, %v2820_v60  ;;  %7423 = vmatpush3.msra.mxu1 %v542_v19  ;;  %v3001_v8 = vsel %vm2691_vm1, %v9219_v45, -inf  ;;  %v530_v3 = vld [vmem:[%s8611_s25 + $0x100] sm:$0xff]  ;;  %v540_v19 = vld [vmem:[%s8611_s25 + $0x150] sm:$0xff]  ;;  %10526 = vst [vmem:[#allocation55_spill] sm:$0xff] %v9235_v53 }
 0x1af   : > { %v9224_v28 = vpop.eup %7792  ;;  %7806 = vpow2.f32 %v3274_v51  ;;  %v3119_v6 = vsub.f32 %v8747_v63, %v2823_v55  ;;  %7400 = vmatprep.subr.mxu0 %v531_v30  ;;  %7424 = vmatprep.subr.mxu1 %v541_v62  ;;  %v9239_v51 = vpop.f32.mrf.mxu0 }
 0x1b0   : > { %v9229_v57 = vpop.eup %7794  ;;  %v3288_v41 = vmul.f32 1.442695, %v3118_v9  ;;  %7385 = vmatprep.mubr.msk.f32.mxu1 %vm2691_vm1, %v9224_v28  ;;  %7401 = vmatpush3.msra.mxu0 %v531_v30  ;;  %10527 = vst [vmem:[#allocation56_spill] sm:$0xff] %v9239_v51 }
 0x1b1   : > { %v3290_v60 = vmul.f32 1.442695, %v3119_v6  ;;  %3026 = vmax.xlane.f32.xlu1 %v3025_v2  ;;  %7386 = vmatmul.mubr.msk.f32.gmra.mxu1 %vm2691_vm1, %v9229_v57  ;;  %v2802_v63 = vpop.xlane.xlu0 %2801 }
 0x1b2   : > { %7808 = vpow2.f32 %v3288_v41  ;;  %3002 = vmax.xlane.f32.xlu0 %v3001_v8  ;;  %v2805_v55 = vpop.xlane.xlu1 %2804  ;;  %v3112_v9 = vsub.f32 %v8761_v10, %v2802_v63  ;;  %7425 = vmatpush3.msra.mxu1 %v541_v62  ;;  %v3022_v41 = vsel %vm2691_vm1, %v9235_v53, -inf  ;;  %v539_v10 = vld [vmem:[%s8611_s25 + $0x148] sm:$0xff]  ;;  %v553_v62 = vld [vmem:[%s8611_s25 + $0x1b8] sm:$0xff]  ;;  %v9253_v63 = vpop.f32.mrf.mxu1  ;;  %v538_v53 = vld [vmem:[%s8611_s25 + $0x140] sm:$0xff] }
 0x1b3   : > { %v9242_v30 = vpop.eup %7796  ;;  %7810 = vpow2.f32 %v3290_v60  ;;  %v3113_v6 = vsub.f32 %v8755_v5, %v2805_v55  ;;  %7402 = vmatprep.subr.mxu0 %v530_v3  ;;  %7426 = vmatprep.subr.mxu1 %v540_v19  ;;  %10528 = vst [vmem:[#allocation57_spill] sm:$0xff] %v9253_v63  ;;  %v2998_v5 = vsel %vm2691_vm1, %v9239_v51, -inf }
 0x1b4   : > { %v9245_v2 = vpop.eup %7798  ;;  %v3276_v45 = vmul.f32 1.442695, %v3112_v9  ;;  %7403 = vmatpush3.msra.mxu0 %v530_v3  ;;  %7404 = vmatprep.mubr.msk.f32.mxu0 %vm2691_vm1, %v9242_v30  ;;  %v9257_v3 = vpop.f32.mrf.mxu0 }
 0x1b5   : > { %v3278_v8 = vmul.f32 1.442695, %v3113_v6  ;;  %7427 = vmatpush3.msra.mxu1 %v540_v19  ;;  %3023 = vmax.xlane.f32.xlu1 %v3022_v41  ;;  %v2826_v60 = vpop.xlane.xlu0 %2825  ;;  %10529 = vst [vmem:[#allocation58_spill] sm:$0xff] %v9257_v3  ;;  %v3055_v6 = vsel %vm2691_vm1, %v9253_v63, -inf  ;;  %v3031_v41 = vsel %vm2691_vm1, %v9257_v3, -inf  ;;  %v552_v63 = vld [vmem:[%s8611_s25 + $0x1b0] sm:$0xff] }
 0x1b6   : > { %7812 = vpow2.f32 %v3276_v45  ;;  %2999 = vmax.xlane.f32.xlu0 %v2998_v5  ;;  %7405 = vmatmul.mubr.msk.f32.vlgmr.msra.gmra.mxu0 %vm2691_vm1, %v9245_v2  ;;  %v2829_v55 = vpop.xlane.xlu1 %2828  ;;  %v3120_v9 = vsub.f32 %v8767_v15, %v2826_v60  ;;  %v9274_v60 = vpop.f32.mrf.mxu1 }
 0x1b7   : > { %v9265_v19 = vpop.eup %7800  ;;  %7814 = vpow2.f32 %v3278_v8  ;;  %7428 = vmatprep.subr.mxu1 %v539_v10  ;;  %v3121_v45 = vsub.f32 %v8763_v11, %v2829_v55  ;;  %7444 = vmatprep.subr.mxu0 %v553_v62  ;;  %10530 = vst [vmem:[#allocation59_spill] sm:$0xff] %v9274_v60  ;;  %v9277_v11 = vpop.f32.mrf.mxu0 }
 0x1b8   : > { %v9270_v5 = vpop.eup %7802  ;;  %v3292_v51 = vmul.f32 1.442695, %v3120_v9  ;;  %7429 = vmatpush3.msra.mxu1 %v539_v10  ;;  %7432 = vmatprep.mubr.msk.f32.mxu1 %vm2691_vm1, %v9265_v19  ;;  %10531 = vst [vmem:[#allocation60_spill] sm:$0xff] %v9277_v11 }
 0x1b9   : > { %v3294_v15 = vmul.f32 1.442695, %v3121_v45  ;;  %7430 = vmatprep.subr.mxu1 %v538_v53  ;;  %3056 = vmax.xlane.f32.xlu1 %v3055_v6  ;;  %v2808_v8 = vpop.xlane.xlu0 %2807 }
 0x1ba   : > { %7816 = vpow2.f32 %v3292_v51  ;;  %7431 = vmatpush3.msra.mxu1 %v538_v53  ;;  %3032 = vmax.xlane.f32.xlu0 %v3031_v41  ;;  %v2811_v55 = vpop.xlane.xlu1 %2810  ;;  %v3114_v10 = vsub.f32 %v8777_v39, %v2808_v8  ;;  %v3052_v53 = vsel %vm2691_vm1, %v9274_v60, -inf  ;;  %v551_v39 = vld [vmem:[%s8611_s25 + $0x1a8] sm:$0xff]  ;;  %v561_v41 = vld [vmem:[%s8611_s25 + $0x1f8] sm:$0xff] }
 0x1bb   : > { %v9280_v9 = vpop.eup %7804  ;;  %7818 = vpow2.f32 %v3294_v15  ;;  %7433 = vmatmul.mubr.msk.f32.vlgmr.msra.gmra.mxu1 %vm2691_vm1, %v9270_v5  ;;  %v3115_v6 = vsub.f32 %v8771_v27, %v2811_v55  ;;  %7445 = vmatpush3.msra.mxu0 %v553_v62  ;;  %v9293_v15 = vpop.f32.mrf.mxu1  ;;  %v3028_v27 = vsel %vm2691_vm1, %v9277_v11, -inf  ;;  %v10536_v11 = vld [vmem:[#allocation2_spill] sm:$0xff] }
 0x1bc   : > { %10532 = vst [vmem:[#allocation61_spill] sm:$0xff] %v9280_v9  ;;  %v9285_v45 = vpop.eup %7806  ;;  %v3280_v51 = vmul.f32 1.442695, %v3114_v10  ;;  %7407 = vmatprep.mubr.msk.f32.mxu0 %vm2691_vm1, %v9280_v9  ;;  %7446 = vmatprep.subr.mxu0 %v552_v63  ;;  %10533 = vst [vmem:[#allocation62_spill] sm:$0xff] %v9293_v15  ;;  %v9299_v55 = vpop.f32.mrf.mxu0 }
 0x1bd   : > { %v3282_v8 = vmul.f32 1.442695, %v3115_v6  ;;  %3053 = vmax.xlane.f32.xlu1 %v3052_v53  ;;  %7408 = vmatmul.mubr.msk.f32.gmra.mxu0 %vm2691_vm1, %v9285_v45  ;;  %v2832_v62 = vpop.xlane.xlu0 %2831  ;;  %10534 = vst [vmem:[#allocation63_spill] sm:$0xff] %v9299_v55  ;;  %v3061_v6 = vsel %vm2691_vm1, %v9293_v15, -inf  ;;  %v9315_v15 = vpop.f32.mrf.mxu1 }
 0x1be   : > { %7820 = vpow2.f32 %v3280_v51  ;;  %3029 = vmax.xlane.f32.xlu0 %v3028_v27  ;;  %v2835_v10 = vpop.xlane.xlu1 %2834  ;;  %v3122_v60 = vsub.f32 %v8783_v48, %v2832_v62  ;;  %7447 = vmatpush3.msra.mxu0 %v552_v63  ;;  %v3037_v51 = vsel %vm2691_vm1, %v9299_v55, -inf  ;;  %v550_v48 = vld [vmem:[%s8611_s25 + $0x1a0] sm:$0xff]  ;;  %v560_v62 = vld [vmem:[%s8611_s25 + $0x1f0] sm:$0xff]  ;;  %10538 = vst [vmem:[#allocation65_spill] sm:$0xff] %v9315_v15 }
 0x1bf   : > { %v9304_v53 = vpop.eup %7808  ;;  %7822 = vpow2.f32 %v3282_v8  ;;  %v3123_v3 = vsub.f32 %v10536_v11, %v2835_v10  ;;  %7448 = vmatprep.subr.mxu0 %v551_v39  ;;  %7472 = vmatprep.subr.mxu1 %v561_v41  ;;  %v9319_v8 = vpop.f32.mrf.mxu0  ;;  %v10540_v10 = vld [vmem:[#allocation4_spill] sm:$0xff] }
 0x1c0   : > { %10535 = vst [vmem:[#allocation64_spill] sm:$0xff] %v9304_v53  ;;  %v9309_v27 = vpop.eup %7810  ;;  %v3296_v9 = vmul.f32 1.442695, %v3122_v60  ;;  %7435 = vmatprep.mubr.msk.f32.mxu1 %vm2691_vm1, %v9304_v53  ;;  %7449 = vmatpush3.msra.mxu0 %v551_v39  ;;  %10539 = vst [vmem:[#allocation66_spill] sm:$0xff] %v9319_v8 }
 0x1c1   : > { %10537 = vst [vmem:[#allocation2_spill] sm:$0xff] %v9309_v27  ;;  %v3298_v63 = vmul.f32 1.442695, %v3123_v3  ;;  %3062 = vmax.xlane.f32.xlu1 %v3061_v6  ;;  %7436 = vmatmul.mubr.msk.f32.gmra.mxu1 %vm2691_vm1, %v9309_v27  ;;  %v2838_v11 = vpop.xlane.xlu0 %2837  ;;  %v10542_v3 = vld [vmem:[#allocation3_spill] sm:$0xff] }
 0x1c2   : > { %7824 = vpow2.f32 %v3296_v9  ;;  %3038 = vmax.xlane.f32.xlu0 %v3037_v51  ;;  %v2841_v60 = vpop.xlane.xlu1 %2840  ;;  %v3124_v55 = vsub.f32 %v10540_v10, %v2838_v11  ;;  %7473 = vmatpush3.msra.mxu1 %v561_v41  ;;  %v3058_v9 = vsel %vm2691_vm1, %v9315_v15, -inf  ;;  %v549_v51 = vld [vmem:[%s8611_s25 + $0x198] sm:$0xff]  ;;  %v559_v11 = vld [vmem:[%s8611_s25 + $0x1e8] sm:$0xff]  ;;  %v9333_v10 = vpop.f32.mrf.mxu1 }
 0x1c3   : > { %v9322_v39 = vpop.eup %7812  ;;  %7826 = vpow2.f32 %v3298_v63  ;;  %v3125_v53 = vsub.f32 %v10542_v3, %v2841_v60  ;;  %7450 = vmatprep.subr.mxu0 %v550_v48  ;;  %7474 = vmatprep.subr.mxu1 %v560_v62  ;;  %10544 = vst [vmem:[#allocation67_spill] sm:$0xff] %v9333_v10  ;;  %v3034_v63 = vsel %vm2691_vm1, %v9319_v8, -inf  ;;  %v9339_v60 = vpop.f32.mrf.mxu0  ;;  %v10546_v3 = vld [vmem:[#allocation6_spill] sm:$0xff]  ;;  %v10548_v8 = vld [vmem:[#allocation5_spill] sm:$0xff] }
 0x1c4   : > { %10541 = vst [vmem:[#allocation4_spill] sm:$0xff] %v9322_v39  ;;  %v9325_v6 = vpop.eup %7814  ;;  %v3300_v27 = vmul.f32 1.442695, %v3124_v55  ;;  %7410 = vmatprep.mubr.msk.f32.mxu0 %vm2691_vm1, %v9322_v39  ;;  %7451 = vmatpush3.msra.mxu0 %v550_v48  ;;  %10545 = vst [vmem:[#allocation68_spill] sm:$0xff] %v9339_v60 }
 0x1c5   : > { %10543 = vst [vmem:[#allocation3_spill] sm:$0xff] %v9325_v6  ;;  %v3302_v41 = vmul.f32 1.442695, %v3125_v53  ;;  %3059 = vmax.xlane.f32.xlu1 %v3058_v9  ;;  %7411 = vmatmul.mubr.msk.f32.gmra.mxu0 %vm2691_vm1, %v9325_v6  ;;  %v2862_v55 = vpop.xlane.xlu0 %2861  ;;  %v3067_v53 = vsel %vm2691_vm1, %v9333_v10, -inf  ;;  %v9355_v10 = vpop.f32.mrf.mxu1 }
 0x1c6   : > { %7828 = vpow2.f32 %v3300_v27  ;;  %3035 = vmax.xlane.f32.xlu0 %v3034_v63  ;;  %v2865_v48 = vpop.xlane.xlu1 %2864  ;;  %v3132_v15 = vsub.f32 %v10546_v3, %v2862_v55  ;;  %7475 = vmatpush3.msra.mxu1 %v560_v62  ;;  %v3043_v27 = vsel %vm2691_vm1, %v9339_v60, -inf  ;;  %v548_v55 = vld [vmem:[%s8611_s25 + $0x190] sm:$0xff]  ;;  %v558_v3 = vld [vmem:[%s8611_s25 + $0x1e0] sm:$0xff]  ;;  %10550 = vst [vmem:[#allocation69_spill] sm:$0xff] %v9355_v10 }
 0x1c7   : > { %v9344_v9 = vpop.eup %7816  ;;  %7830 = vpow2.f32 %v3302_v41  ;;  %v3133_v39 = vsub.f32 %v10548_v8, %v2865_v48  ;;  %7452 = vmatprep.subr.mxu0 %v549_v51  ;;  %7476 = vmatprep.subr.mxu1 %v559_v11  ;;  %v9359_v41 = vpop.f32.mrf.mxu0  ;;  %v10552_v48 = vld [vmem:[#allocation8_spill] sm:$0xff] }
 0x1c8   : > { %10547 = vst [vmem:[#allocation6_spill] sm:$0xff] %v9344_v9  ;;  %v9349_v63 = vpop.eup %7818  ;;  %v3316_v6 = vmul.f32 1.442695, %v3132_v15  ;;  %7438 = vmatprep.mubr.msk.f32.mxu1 %vm2691_vm1, %v9344_v9  ;;  %7453 = vmatpush3.msra.mxu0 %v549_v51  ;;  %10551 = vst [vmem:[#allocation70_spill] sm:$0xff] %v9359_v41 }
 0x1c9   : > { %10549 = vst [vmem:[#allocation5_spill] sm:$0xff] %v9349_v63  ;;  %v3318_v62 = vmul.f32 1.442695, %v3133_v39  ;;  %3068 = vmax.xlane.f32.xlu1 %v3067_v53  ;;  %7439 = vmatmul.mubr.msk.f32.gmra.mxu1 %vm2691_vm1, %v9349_v63  ;;  %v2844_v8 = vpop.xlane.xlu0 %2843  ;;  %v10554_v39 = vld [vmem:[#allocation7_spill] sm:$0xff] }
 0x1ca   : > { %7832 = vpow2.f32 %v3316_v6  ;;  %3044 = vmax.xlane.f32.xlu0 %v3043_v27  ;;  %v2847_v15 = vpop.xlane.xlu1 %2846  ;;  %v3126_v60 = vsub.f32 %v10552_v48, %v2844_v8  ;;  %7477 = vmatpush3.msra.mxu1 %v559_v11  ;;  %v3064_v6 = vsel %vm2691_vm1, %v9355_v10, -inf  ;;  %v547_v27 = vld [vmem:[%s8611_s25 + $0x188] sm:$0xff]  ;;  %v557_v8 = vld [vmem:[%s8611_s25 + $0x1d8] sm:$0xff]  ;;  %v9373_v48 = vpop.f32.mrf.mxu1 }
 0x1cb   : > { %v9362_v51 = vpop.eup %7820  ;;  %7834 = vpow2.f32 %v3318_v62  ;;  %v3127_v9 = vsub.f32 %v10554_v39, %v2847_v15  ;;  %7454 = vmatprep.subr.mxu0 %v548_v55  ;;  %7478 = vmatprep.subr.mxu1 %v558_v3  ;;  %10556 = vst [vmem:[#allocation71_spill] sm:$0xff] %v9373_v48  ;;  %v3040_v62 = vsel %vm2691_vm1, %v9359_v41, -inf  ;;  %v9379_v15 = vpop.f32.mrf.mxu0  ;;  %v10558_v39 = vld [vmem:[#allocation10_spill] sm:$0xff]  ;;  %v10560_v41 = vld [vmem:[#allocation9_spill] sm:$0xff] }
 0x1cc   : > { %10553 = vst [vmem:[#allocation8_spill] sm:$0xff] %v9362_v51  ;;  %v9365_v53 = vpop.eup %7822  ;;  %v3304_v63 = vmul.f32 1.442695, %v3126_v60  ;;  %7413 = vmatprep.mubr.msk.f32.mxu0 %vm2691_vm1, %v9362_v51  ;;  %7455 = vmatpush3.msra.mxu0 %v548_v55  ;;  %10557 = vst [vmem:[#allocation72_spill] sm:$0xff] %v9379_v15 }
 0x1cd   : > { %10555 = vst [vmem:[#allocation7_spill] sm:$0xff] %v9365_v53  ;;  %v3306_v11 = vmul.f32 1.442695, %v3127_v9  ;;  %3065 = vmax.xlane.f32.xlu1 %v3064_v6  ;;  %7414 = vmatmul.mubr.msk.f32.gmra.mxu0 %vm2691_vm1, %v9365_v53  ;;  %v2868_v60 = vpop.xlane.xlu0 %2867  ;;  %v3073_v9 = vsel %vm2691_vm1, %v9373_v48, -inf  ;;  %v9395_v48 = vpop.f32.mrf.mxu1 }
 0x1ce   : > { %7836 = vpow2.f32 %v3304_v63  ;;  %3041 = vmax.xlane.f32.xlu0 %v3040_v62  ;;  %v2871_v55 = vpop.xlane.xlu1 %2870  ;;  %v3134_v10 = vsub.f32 %v10558_v39, %v2868_v60  ;;  %7479 = vmatpush3.msra.mxu1 %v558_v3  ;;  %v3049_v63 = vsel %vm2691_vm1, %v9379_v15, -inf  ;;  %v546_v3 = vld [vmem:[%s8611_s25 + $0x180] sm:$0xff]  ;;  %v556_v60 = vld [vmem:[%s8611_s25 + $0x1d0] sm:$0xff]  ;;  %10562 = vst [vmem:[#allocation73_spill] sm:$0xff] %v9395_v48 }
 0x1cf   : > { %v9384_v6 = vpop.eup %7824  ;;  %7838 = vpow2.f32 %v3306_v11  ;;  %v3135_v51 = vsub.f32 %v10560_v41, %v2871_v55  ;;  %7456 = vmatprep.subr.mxu0 %v547_v27  ;;  %7480 = vmatprep.subr.mxu1 %v557_v8  ;;  %v9399_v11 = vpop.f32.mrf.mxu0  ;;  %v10564_v55 = vld [vmem:[#allocation12_spill] sm:$0xff] }
 0x1d0   : > { %10559 = vst [vmem:[#allocation10_spill] sm:$0xff] %v9384_v6  ;;  %v9389_v62 = vpop.eup %7826  ;;  %v3320_v53 = vmul.f32 1.442695, %v3134_v10  ;;  %7441 = vmatprep.mubr.msk.f32.mxu1 %vm2691_vm1, %v9384_v6  ;;  %7457 = vmatpush3.msra.mxu0 %v547_v27  ;;  %10563 = vst [vmem:[#allocation74_spill] sm:$0xff] %v9399_v11 }
 0x1d1   : > { %10561 = vst [vmem:[#allocation9_spill] sm:$0xff] %v9389_v62  ;;  %v3322_v39 = vmul.f32 1.442695, %v3135_v51  ;;  %3074 = vmax.xlane.f32.xlu1 %v3073_v9  ;;  %7442 = vmatmul.mubr.msk.f32.gmra.mxu1 %vm2691_vm1, %v9389_v62  ;;  %v2850_v41 = vpop.xlane.xlu0 %2849  ;;  %v10565_v51 = vld [vmem:[#allocation11_spill] sm:$0xff] }
 0x1d2   : > { %7840 = vpow2.f32 %v3320_v53  ;;  %3050 = vmax.xlane.f32.xlu0 %v3049_v63  ;;  %v2853_v10 = vpop.xlane.xlu1 %2852  ;;  %v3128_v15 = vsub.f32 %v10564_v55, %v2850_v41  ;;  %7481 = vmatpush3.msra.mxu1 %v557_v8  ;;  %v3070_v53 = vsel %vm2691_vm1, %v9395_v48, -inf  ;;  %v555_v63 = vld [vmem:[%s8611_s25 + $0x1c8] sm:$0xff]  ;;  %v569_v8 = vld [vmem:[%s8611_s25 + $0x238] sm:$0xff] }
 0x1d3   : > { %v9402_v27 = vpop.eup %7828  ;;  %7842 = vpow2.f32 %v3322_v39  ;;  %v3129_v6 = vsub.f32 %v10565_v51, %v2853_v10  ;;  %7458 = vmatprep.subr.mxu0 %v546_v3  ;;  %7482 = vmatprep.subr.mxu1 %v556_v60  ;;  %v3046_v39 = vsel %vm2691_vm1, %v9399_v11, -inf  ;;  %v554_v51 = vld [vmem:[%s8611_s25 + $0x1c0] sm:$0xff] }
 0x1d4   : > { %v9405_v9 = vpop.eup %7830  ;;  %v3308_v62 = vmul.f32 1.442695, %v3128_v15  ;;  %7459 = vmatpush3.msra.mxu0 %v546_v3  ;;  %7460 = vmatprep.mubr.msk.f32.mxu0 %vm2691_vm1, %v9402_v27  ;;  %v10566_v3 = vld [vmem:[#allocation14_spill] sm:$0xff] }
 0x1d5   : > { %v3310_v41 = vmul.f32 1.442695, %v3129_v6  ;;  %7483 = vmatpush3.msra.mxu1 %v556_v60  ;;  %3071 = vmax.xlane.f32.xlu1 %v3070_v53  ;;  %v2874_v10 = vpop.xlane.xlu0 %2873  ;;  %v10567_v6 = vld [vmem:[#allocation13_spill] sm:$0xff] }
 0x1d6   : > { %7844 = vpow2.f32 %v3308_v62  ;;  %3047 = vmax.xlane.f32.xlu0 %v3046_v39  ;;  %7461 = vmatmul.mubr.msk.f32.vlgmr.msra.gmra.mxu0 %vm2691_vm1, %v9405_v9  ;;  %v2877_v15 = vpop.xlane.xlu1 %2876  ;;  %v3136_v55 = vsub.f32 %v10566_v3, %v2874_v10  ;;  %v3463_v62 = vsel %vm2691_vm1, %v8941_v13, 0.0  ;;  %v568_v3 = vld [vmem:[%s8611_s25 + $0x230] sm:$0xff]  ;;  %v10569_v13 = vld [vmem:[#allocation15_spill] sm:$0xff] }
 0x1d7   : > { %v9419_v48 = vpop.eup %7832  ;;  %7846 = vpow2.f32 %v3310_v41  ;;  %7484 = vmatprep.subr.mxu1 %v555_v63  ;;  %v3137_v60 = vsub.f32 %v10567_v6, %v2877_v15  ;;  %7500 = vmatprep.subr.mxu0 %v569_v8  ;;  %v3460_v41 = vsel %vm2691_vm1, %v8936_v25, 0.0  ;;  %v10568_v15 = vld [vmem:[#allocation16_spill] sm:$0xff] }
 0x1d8   : > { %v9422_v53 = vpop.eup %7834  ;;  %v3324_v11 = vmul.f32 1.442695, %v3136_v55  ;;  %7485 = vmatpush3.msra.mxu1 %v555_v63  ;;  %7488 = vmatprep.mubr.msk.f32.mxu1 %vm2691_vm1, %v9419_v48 }
 0x1d9   : > { %v3326_v39 = vmul.f32 1.442695, %v3137_v60  ;;  %7486 = vmatprep.subr.mxu1 %v554_v51  ;;  %3464 = vadd.xlane.f32.xlu1 %v3463_v62  ;;  %v2856_v10 = vpop.xlane.xlu0 %2855 }
 0x1da   : > { %7848 = vpow2.f32 %v3324_v11  ;;  %7487 = vmatpush3.msra.mxu1 %v554_v51  ;;  %3461 = vadd.xlane.f32.xlu0 %v3460_v41  ;;  %v2859_v63 = vpop.xlane.xlu1 %2858  ;;  %v3130_v55 = vsub.f32 %v10568_v15, %v2856_v10  ;;  %v3487_v11 = vsel %vm2691_vm1, %v8961_v58, 0.0  ;;  %v567_v51 = vld [vmem:[%s8611_s25 + $0x228] sm:$0xff]  ;;  %v577_v41 = vld [vmem:[%s8611_s25 + $0x278] sm:$0xff]  ;;  %v10570_v15 = vld [vmem:[#allocation18_spill] sm:$0xff] }
 0x1db   : > { %v9432_v6 = vpop.eup %7836  ;;  %7850 = vpow2.f32 %v3326_v39  ;;  %7489 = vmatmul.mubr.msk.f32.vlgmr.msra.gmra.mxu1 %vm2691_vm1, %v9422_v53  ;;  %v3131_v60 = vsub.f32 %v10569_v13, %v2859_v63  ;;  %7501 = vmatpush3.msra.mxu0 %v569_v8  ;;  %v3484_v39 = vsel %vm2691_vm1, %v8956_v21, 0.0  ;;  %v10571_v13 = vld [vmem:[#allocation17_spill] sm:$0xff] }
 0x1dc   : > { %v9437_v25 = vpop.eup %7838  ;;  %v3312_v62 = vmul.f32 1.442695, %v3130_v55  ;;  %7463 = vmatprep.mubr.msk.f32.mxu0 %vm2691_vm1, %v9432_v6  ;;  %7502 = vmatprep.subr.mxu0 %v568_v3 }
 0x1dd   : > { %v3314_v10 = vmul.f32 1.442695, %v3131_v60  ;;  %3488 = vadd.xlane.f32.xlu1 %v3487_v11  ;;  %7464 = vmatmul.mubr.msk.f32.gmra.mxu0 %vm2691_vm1, %v9437_v25  ;;  %v2880_v8 = vpop.xlane.xlu0 %2879 }
 0x1de   : > { %7852 = vpow2.f32 %v3312_v62  ;;  %3485 = vadd.xlane.f32.xlu0 %v3484_v39  ;;  %v2883_v63 = vpop.xlane.xlu1 %2882  ;;  %v3138_v55 = vsub.f32 %v10570_v15, %v2880_v8  ;;  %7503 = vmatpush3.msra.mxu0 %v568_v3  ;;  %v3469_v62 = vsel %vm2691_vm1, %v8975_v1, 0.0  ;;  %v566_v39 = vld [vmem:[%s8611_s25 + $0x220] sm:$0xff]  ;;  %v576_v8 = vld [vmem:[%s8611_s25 + $0x270] sm:$0xff] }
 0x1df   : > { %v9450_v58 = vpop.eup %7840  ;;  %7854 = vpow2.f32 %v3314_v10  ;;  %v3139_v60 = vsub.f32 %v10571_v13, %v2883_v63  ;;  %7504 = vmatprep.subr.mxu0 %v567_v51  ;;  %7528 = vmatprep.subr.mxu1 %v577_v41  ;;  %v3466_v10 = vsel %vm2691_vm1, %v8984_v43, 0.0 }
 0x1e0   : > { %v9453_v21 = vpop.eup %7842  ;;  %v3328_v11 = vmul.f32 1.442695, %v3138_v55  ;;  %7491 = vmatprep.mubr.msk.f32.mxu1 %vm2691_vm1, %v9450_v58  ;;  %7505 = vmatpush3.msra.mxu0 %v567_v51  ;;  %v10572_v55 = vld [vmem:[#allocation20_spill] sm:$0xff]  ;;  %v10573_v51 = vld [vmem:[#allocation19_spill] sm:$0xff] }
 0x1e1   : > { %v3330_v3 = vmul.f32 1.442695, %v3139_v60  ;;  %3470 = vadd.xlane.f32.xlu1 %v3469_v62  ;;  %7492 = vmatmul.mubr.msk.f32.gmra.mxu1 %vm2691_vm1, %v9453_v21  ;;  %v2886_v63 = vpop.xlane.xlu0 %2885 }
 0x1e2   : > { %7856 = vpow2.f32 %v3328_v11  ;;  %3467 = vadd.xlane.f32.xlu0 %v3466_v10  ;;  %v2889_v15 = vpop.xlane.xlu1 %2888  ;;  %v3140_v13 = vsub.f32 %v10572_v55, %v2886_v63  ;;  %7529 = vmatpush3.msra.mxu1 %v577_v41  ;;  %v3493_v11 = vsel %vm2691_vm1, %v8994_v44, 0.0  ;;  %v565_v10 = vld [vmem:[%s8611_s25 + $0x218] sm:$0xff]  ;;  %v575_v63 = vld [vmem:[%s8611_s25 + $0x268] sm:$0xff] }
 0x1e3   : > { %v9466_v1 = vpop.eup %7844  ;;  %7858 = vpow2.f32 %v3330_v3  ;;  %v3141_v60 = vsub.f32 %v10573_v51, %v2889_v15  ;;  %7506 = vmatprep.subr.mxu0 %v566_v39  ;;  %7530 = vmatprep.subr.mxu1 %v576_v8  ;;  %v3490_v3 = vsel %vm2691_vm1, %v8979_v16, 0.0 }
 0x1e4   : > { %v9469_v43 = vpop.eup %7846  ;;  %v3332_v62 = vmul.f32 1.442695, %v3140_v13  ;;  %7466 = vmatprep.mubr.msk.f32.mxu0 %vm2691_vm1, %v9466_v1  ;;  %7507 = vmatpush3.msra.mxu0 %v566_v39  ;;  %v10574_v13 = vld [vmem:[#allocation22_spill] sm:$0xff]  ;;  %v10575_v39 = vld [vmem:[#allocation21_spill] sm:$0xff] }
 0x1e5   : > { %v3334_v41 = vmul.f32 1.442695, %v3141_v60  ;;  %3494 = vadd.xlane.f32.xlu1 %v3493_v11  ;;  %7467 = vmatmul.mubr.msk.f32.gmra.mxu0 %vm2691_vm1, %v9469_v43  ;;  %v2910_v15 = vpop.xlane.xlu0 %2909 }
 0x1e6   : > { %7860 = vpow2.f32 %v3332_v62  ;;  %3491 = vadd.xlane.f32.xlu0 %v3490_v3  ;;  %v2913_v55 = vpop.xlane.xlu1 %2912  ;;  %v3148_v51 = vsub.f32 %v10574_v13, %v2910_v15  ;;  %7531 = vmatpush3.msra.mxu1 %v576_v8  ;;  %v3475_v62 = vsel %vm2691_vm1, %v9010_v36, 0.0  ;;  %v564_v3 = vld [vmem:[%s8611_s25 + $0x210] sm:$0xff]  ;;  %v574_v15 = vld [vmem:[%s8611_s25 + $0x260] sm:$0xff] }
 0x1e7   : > { %v9482_v44 = vpop.eup %7848  ;;  %7862 = vpow2.f32 %v3334_v41  ;;  %v3149_v60 = vsub.f32 %v10575_v39, %v2913_v55  ;;  %7508 = vmatprep.subr.mxu0 %v565_v10  ;;  %7532 = vmatprep.subr.mxu1 %v575_v63  ;;  %v3472_v41 = vsel %vm2691_vm1, %v9004_v61, 0.0 }
 0x1e8   : > { %v9485_v16 = vpop.eup %7850  ;;  %v3348_v11 = vmul.f32 1.442695, %v3148_v51  ;;  %7494 = vmatprep.mubr.msk.f32.mxu1 %vm2691_vm1, %v9482_v44  ;;  %7509 = vmatpush3.msra.mxu0 %v565_v10  ;;  %v10576_v51 = vld [vmem:[#allocation24_spill] sm:$0xff]  ;;  %v10577_v10 = vld [vmem:[#allocation23_spill] sm:$0xff] }
 0x1e9   : > { %v3350_v8 = vmul.f32 1.442695, %v3149_v60  ;;  %3476 = vadd.xlane.f32.xlu1 %v3475_v62  ;;  %7495 = vmatmul.mubr.msk.f32.gmra.mxu1 %vm2691_vm1, %v9485_v16  ;;  %v2892_v55 = vpop.xlane.xlu0 %2891 }
 0x1ea   : > { %7864 = vpow2.f32 %v3348_v11  ;;  %3473 = vadd.xlane.f32.xlu0 %v3472_v41  ;;  %v2895_v13 = vpop.xlane.xlu1 %2894  ;;  %v3142_v39 = vsub.f32 %v10576_v51, %v2892_v55  ;;  %7533 = vmatpush3.msra.mxu1 %v575_v63  ;;  %v3499_v11 = vsel %vm2691_vm1, %v9030_v24, 0.0  ;;  %v563_v41 = vld [vmem:[%s8611_s25 + $0x208] sm:$0xff]  ;;  %v573_v55 = vld [vmem:[%s8611_s25 + $0x258] sm:$0xff] }
 0x1eb   : > { %v9498_v36 = vpop.eup %7852  ;;  %7866 = vpow2.f32 %v3350_v8  ;;  %v3143_v60 = vsub.f32 %v10577_v10, %v2895_v13  ;;  %7510 = vmatprep.subr.mxu0 %v564_v3  ;;  %7534 = vmatprep.subr.mxu1 %v574_v15  ;;  %v3496_v8 = vsel %vm2691_vm1, %v9023_v34, 0.0 }
 0x1ec   : > { %v9501_v61 = vpop.eup %7854  ;;  %v3336_v62 = vmul.f32 1.442695, %v3142_v39  ;;  %7469 = vmatprep.mubr.msk.f32.mxu0 %vm2691_vm1, %v9498_v36  ;;  %7511 = vmatpush3.msra.mxu0 %v564_v3  ;;  %v10578_v39 = vld [vmem:[#allocation26_spill] sm:$0xff]  ;;  %v10579_v3 = vld [vmem:[#allocation25_spill] sm:$0xff] }
 0x1ed   : > { %v3338_v63 = vmul.f32 1.442695, %v3143_v60  ;;  %3500 = vadd.xlane.f32.xlu1 %v3499_v11  ;;  %7470 = vmatmul.mubr.msk.f32.gmra.mxu0 %vm2691_vm1, %v9501_v61  ;;  %v2916_v13 = vpop.xlane.xlu0 %2915 }
 0x1ee   : > { %7868 = vpow2.f32 %v3336_v62  ;;  %3497 = vadd.xlane.f32.xlu0 %v3496_v8  ;;  %v2919_v51 = vpop.xlane.xlu1 %2918  ;;  %v3150_v10 = vsub.f32 %v10578_v39, %v2916_v13  ;;  %7535 = vmatpush3.msra.mxu1 %v574_v15  ;;  %v3481_v62 = vsel %vm2691_vm1, %v9050_v35, 0.0  ;;  %v562_v8 = vld [vmem:[%s8611_s25 + $0x200] sm:$0xff]  ;;  %v572_v13 = vld [vmem:[%s8611_s25 + $0x250] sm:$0xff] }
 0x1ef   : > { %v9514_v24 = vpop.eup %7856  ;;  %7870 = vpow2.f32 %v3338_v63  ;;  %v3151_v60 = vsub.f32 %v10579_v3, %v2919_v51  ;;  %7512 = vmatprep.subr.mxu0 %v563_v41  ;;  %7536 = vmatprep.subr.mxu1 %v573_v55  ;;  %v3478_v63 = vsel %vm2691_vm1, %v9043_v38, 0.0 }
 0x1f0   : > { %v9517_v34 = vpop.eup %7858  ;;  %v3352_v11 = vmul.f32 1.442695, %v3150_v10  ;;  %7497 = vmatprep.mubr.msk.f32.mxu1 %vm2691_vm1, %v9514_v24  ;;  %7513 = vmatpush3.msra.mxu0 %v563_v41  ;;  %v10580_v10 = vld [vmem:[#allocation28_spill] sm:$0xff]  ;;  %v10581_v41 = vld [vmem:[#allocation27_spill] sm:$0xff] }
 0x1f1   : > { %v3354_v15 = vmul.f32 1.442695, %v3151_v60  ;;  %3482 = vadd.xlane.f32.xlu1 %v3481_v62  ;;  %7498 = vmatmul.mubr.msk.f32.gmra.mxu1 %vm2691_vm1, %v9517_v34  ;;  %v2898_v51 = vpop.xlane.xlu0 %2897 }
 0x1f2   : > { %7872 = vpow2.f32 %v3352_v11  ;;  %3479 = vadd.xlane.f32.xlu0 %v3478_v63  ;;  %v2901_v39 = vpop.xlane.xlu1 %2900  ;;  %v3144_v3 = vsub.f32 %v10580_v10, %v2898_v51  ;;  %7537 = vmatpush3.msra.mxu1 %v573_v55  ;;  %v3505_v11 = vsel %vm2691_vm1, %v9070_v52, 0.0  ;;  %v571_v63 = vld [vmem:[%s8611_s25 + $0x248] sm:$0xff]  ;;  %v585_v55 = vld [vmem:[%s8611_s25 + $0x2b8] sm:$0xff] }
 0x1f3   : > { %v9530_v35 = vpop.eup %7860  ;;  %7874 = vpow2.f32 %v3354_v15  ;;  %v3145_v60 = vsub.f32 %v10581_v41, %v2901_v39  ;;  %7514 = vmatprep.subr.mxu0 %v562_v8  ;;  %7538 = vmatprep.subr.mxu1 %v572_v13  ;;  %v3502_v15 = vsel %vm2691_vm1, %v9063_v20, 0.0 }
 0x1f4   : > { %v9533_v38 = vpop.eup %7862  ;;  %v3340_v62 = vmul.f32 1.442695, %v3144_v3  ;;  %7515 = vmatpush3.msra.mxu0 %v562_v8  ;;  %7516 = vmatprep.mubr.msk.f32.mxu0 %vm2691_vm1, %v9530_v35  ;;  %v570_v3 = vld [vmem:[%s8611_s25 + $0x240] sm:$0xff] }
 0x1f5   : > { %v3342_v51 = vmul.f32 1.442695, %v3145_v60  ;;  %7539 = vmatpush3.msra.mxu1 %v572_v13  ;;  %3506 = vadd.xlane.f32.xlu1 %v3505_v11  ;;  %v2922_v39 = vpop.xlane.xlu0 %2921  ;;  %v3511_v60 = vsel %vm2691_vm1, %v9085_v50, 0.0 }
 0x1f6   : > { %7876 = vpow2.f32 %v3340_v62  ;;  %3503 = vadd.xlane.f32.xlu0 %v3502_v15  ;;  %7517 = vmatmul.mubr.msk.f32.vlgmr.msra.gmra.mxu0 %vm2691_vm1, %v9533_v38  ;;  %v2925_v8 = vpop.xlane.xlu1 %2924  ;;  %v3152_v10 = vsub.f32 %v8898_v49, %v2922_v39  ;;  %v3508_v62 = vsel %vm2691_vm1, %v9082_v26, 0.0 }
 0x1f7   : > { %v9547_v52 = vpop.eup %7864  ;;  %7878 = vpow2.f32 %v3342_v51  ;;  %7540 = vmatprep.subr.mxu1 %v571_v63  ;;  %v3153_v13 = vsub.f32 %v8892_v54, %v2925_v8  ;;  %7556 = vmatprep.subr.mxu0 %v585_v55  ;;  %v584_v51 = vld [vmem:[%s8611_s25 + $0x2b0] sm:$0xff]  ;;  %v3535_v8 = vsel %vm2691_vm1, %v9110_v12, 0.0 }
 0x1f8   : > { %v9550_v41 = vpop.eup %7866  ;;  %v3356_v20 = vmul.f32 1.442695, %v3152_v10  ;;  %7541 = vmatpush3.msra.mxu1 %v571_v63  ;;  %7544 = vmatprep.mubr.msk.f32.mxu1 %vm2691_vm1, %v9547_v52  ;;  %v593_v10 = vld [vmem:[%s8611_s25 + $0x2f8] sm:$0xff] }
 0x1f9   : > { %v3358_v49 = vmul.f32 1.442695, %v3153_v13  ;;  %7542 = vmatprep.subr.mxu1 %v570_v3  ;;  %3512 = vadd.xlane.f32.xlu1 %v3511_v60  ;;  %v2904_v11 = vpop.xlane.xlu0 %2903  ;;  %v3532_v13 = vsel %vm2691_vm1, %v9105_v42, 0.0 }
 0x1fa   : > { %7880 = vpow2.f32 %v3356_v20  ;;  %7543 = vmatpush3.msra.mxu1 %v570_v3  ;;  %3509 = vadd.xlane.f32.xlu0 %v3508_v62  ;;  %v2907_v54 = vpop.xlane.xlu1 %2906  ;;  %v3146_v63 = vsub.f32 %v8911_v31, %v2904_v11  ;;  %v583_v31 = vld [vmem:[%s8611_s25 + $0x2a8] sm:$0xff]  ;;  %v3517_v62 = vsel %vm2691_vm1, %v9125_v33, 0.0  ;;  %v582_v11 = vld [vmem:[%s8611_s25 + $0x2a0] sm:$0xff] }
 0x1fb   : > { %v9560_v15 = vpop.eup %7868  ;;  %7882 = vpow2.f32 %v3358_v49  ;;  %7545 = vmatmul.mubr.msk.f32.vlgmr.msra.gmra.mxu1 %vm2691_vm1, %v9550_v41  ;;  %v3147_v50 = vsub.f32 %v8902_v4, %v2907_v54  ;;  %7557 = vmatpush3.msra.mxu0 %v585_v55  ;;  %v3514_v54 = vsel %vm2691_vm1, %v9120_v59, 0.0 }
 0x1fc   : > { %v9565_v26 = vpop.eup %7870  ;;  %v3344_v39 = vmul.f32 1.442695, %v3146_v63  ;;  %7519 = vmatprep.mubr.msk.f32.mxu0 %vm2691_vm1, %v9560_v15  ;;  %7558 = vmatprep.subr.mxu0 %v584_v51 }
 0x1fd   : > { %v3346_v3 = vmul.f32 1.442695, %v3147_v50  ;;  %3536 = vadd.xlane.f32.xlu1 %v3535_v8  ;;  %7520 = vmatmul.mubr.msk.f32.gmra.mxu0 %vm2691_vm1, %v9565_v26  ;;  %v2928_v4 = vpop.xlane.xlu0 %2927 }
 0x1fe   : > { %7884 = vpow2.f32 %v3344_v39  ;;  %3533 = vadd.xlane.f32.xlu0 %v3532_v13  ;;  %v2931_v55 = vpop.xlane.xlu1 %2930  ;;  %v3154_v20 = vsub.f32 %v8919_v17, %v2928_v4  ;;  %7559 = vmatpush3.msra.mxu0 %v584_v51  ;;  %v592_v17 = vld [vmem:[%s8611_s25 + $0x2f0] sm:$0xff]  ;;  %v3538_v13 = vsel %vm2691_vm1, %v9144_v46, 0.0 }
 0x1ff   : > { %v9578_v12 = vpop.eup %7872  ;;  %7886 = vpow2.f32 %v3346_v3  ;;  %v3155_v60 = vsub.f32 %v8913_v22, %v2931_v55  ;;  %7560 = vmatprep.subr.mxu0 %v583_v31  ;;  %7584 = vmatprep.subr.mxu1 %v593_v10  ;;  %v581_v3 = vld [vmem:[%s8611_s25 + $0x298] sm:$0xff]  ;;  %v10582_v55 = vld [vmem:[#allocation30_spill] sm:$0xff] }
 0x200   : > { %v9581_v42 = vpop.eup %7874  ;;  %v3360_v49 = vmul.f32 1.442695, %v3154_v20  ;;  %7547 = vmatprep.mubr.msk.f32.mxu1 %vm2691_vm1, %v9578_v12  ;;  %7561 = vmatpush3.msra.mxu0 %v583_v31  ;;  %v3541_v31 = vsel %vm2691_vm1, %v9149_v32, 0.0 }
 0x201   : > { %v3362_v51 = vmul.f32 1.442695, %v3155_v60  ;;  %3518 = vadd.xlane.f32.xlu1 %v3517_v62  ;;  %7548 = vmatmul.mubr.msk.f32.gmra.mxu1 %vm2691_vm1, %v9581_v42  ;;  %v2934_v22 = vpop.xlane.xlu0 %2933  ;;  %v10583_v60 = vld [vmem:[#allocation29_spill] sm:$0xff] }
 0x202   : > { %7888 = vpow2.f32 %v3360_v49  ;;  %3515 = vadd.xlane.f32.xlu0 %v3514_v54  ;;  %v2937_v63 = vpop.xlane.xlu1 %2936  ;;  %v3156_v50 = vsub.f32 %v8931_v18, %v2934_v22  ;;  %7585 = vmatpush3.msra.mxu1 %v593_v10  ;;  %v591_v18 = vld [vmem:[%s8611_s25 + $0x2e8] sm:$0xff]  ;;  %v590_v54 = vld [vmem:[%s8611_s25 + $0x2e0] sm:$0xff]  ;;  %v3520_v22 = vsel %vm2691_vm1, %v9162_v40, 0.0 }
 0x203   : > { %v9594_v33 = vpop.eup %7876  ;;  %7890 = vpow2.f32 %v3362_v51  ;;  %v3157_v39 = vsub.f32 %v8923_v56, %v2937_v63  ;;  %7562 = vmatprep.subr.mxu0 %v582_v11  ;;  %7586 = vmatprep.subr.mxu1 %v592_v17  ;;  %v580_v51 = vld [vmem:[%s8611_s25 + $0x290] sm:$0xff] }
 0x204   : > { %v9597_v59 = vpop.eup %7878  ;;  %v3364_v8 = vmul.f32 1.442695, %v3156_v50  ;;  %7522 = vmatprep.mubr.msk.f32.mxu0 %vm2691_vm1, %v9594_v33  ;;  %7563 = vmatpush3.msra.mxu0 %v582_v11  ;;  %v3523_v11 = vsel %vm2691_vm1, %v9165_v7, 0.0 }
 0x205   : > { %v3366_v10 = vmul.f32 1.442695, %v3157_v39  ;;  %3542 = vadd.xlane.f32.xlu1 %v3541_v31  ;;  %7523 = vmatmul.mubr.msk.f32.gmra.mxu0 %vm2691_vm1, %v9597_v59  ;;  %v2958_v56 = vpop.xlane.xlu0 %2957  ;;  %v10584_v39 = vld [vmem:[#allocation32_spill] sm:$0xff]  ;;  %v10585_v31 = vld [vmem:[#allocation31_spill] sm:$0xff] }
 0x206   : > { %7892 = vpow2.f32 %v3364_v8  ;;  %3539 = vadd.xlane.f32.xlu0 %v3538_v13  ;;  %v2961_v4 = vpop.xlane.xlu1 %2960  ;;  %v3164_v20 = vsub.f32 %v10582_v55, %v2958_v56  ;;  %7587 = vmatpush3.msra.mxu1 %v592_v17  ;;  %v3547_v13 = vsel %vm2691_vm1, %v9189_v47, 0.0  ;;  %v579_v56 = vld [vmem:[%s8611_s25 + $0x288] sm:$0xff]  ;;  %v3544_v55 = vsel %vm2691_vm1, %v9184_v29, 0.0 }
 0x207   : > { %v9610_v32 = vpop.eup %7880  ;;  %7894 = vpow2.f32 %v3366_v10  ;;  %v3165_v49 = vsub.f32 %v10583_v60, %v2961_v4  ;;  %7564 = vmatprep.subr.mxu0 %v581_v3  ;;  %7588 = vmatprep.subr.mxu1 %v591_v18  ;;  %v589_v4 = vld [vmem:[%s8611_s25 + $0x2d8] sm:$0xff] }
 0x208   : > { %v9613_v46 = vpop.eup %7882  ;;  %v3380_v62 = vmul.f32 1.442695, %v3164_v20  ;;  %7550 = vmatprep.mubr.msk.f32.mxu1 %vm2691_vm1, %v9610_v32  ;;  %7565 = vmatpush3.msra.mxu0 %v581_v3 }
 0x209   : > { %v3382_v17 = vmul.f32 1.442695, %v3165_v49  ;;  %3524 = vadd.xlane.f32.xlu1 %v3523_v11  ;;  %7551 = vmatmul.mubr.msk.f32.gmra.mxu1 %vm2691_vm1, %v9613_v46  ;;  %v2940_v63 = vpop.xlane.xlu0 %2939  ;;  %v10586_v49 = vld [vmem:[#allocation34_spill] sm:$0xff]  ;;  %v10587_v11 = vld [vmem:[#allocation33_spill] sm:$0xff] }
 0x20a   : > { %7896 = vpow2.f32 %v3380_v62  ;;  %3521 = vadd.xlane.f32.xlu0 %v3520_v22  ;;  %v2943_v50 = vpop.xlane.xlu1 %2942  ;;  %v3158_v8 = vsub.f32 %v10584_v39, %v2940_v63  ;;  %7589 = vmatpush3.msra.mxu1 %v591_v18  ;;  %v3529_v22 = vsel %vm2691_vm1, %v9205_v23, 0.0  ;;  %v578_v63 = vld [vmem:[%s8611_s25 + $0x280] sm:$0xff]  ;;  %v3526_v39 = vsel %vm2691_vm1, %v9202_v14, 0.0 }
 0x20b   : > { %v9626_v7 = vpop.eup %7884  ;;  %7898 = vpow2.f32 %v3382_v17  ;;  %v3159_v3 = vsub.f32 %v10585_v31, %v2943_v50  ;;  %7566 = vmatprep.subr.mxu0 %v580_v51  ;;  %7590 = vmatprep.subr.mxu1 %v590_v54  ;;  %v588_v50 = vld [vmem:[%s8611_s25 + $0x2d0] sm:$0xff] }
 0x20c   : > { %v9629_v40 = vpop.eup %7886  ;;  %v3368_v10 = vmul.f32 1.442695, %v3158_v8  ;;  %7525 = vmatprep.mubr.msk.f32.mxu0 %vm2691_vm1, %v9626_v7  ;;  %7567 = vmatpush3.msra.mxu0 %v580_v51 }
 0x20d   : > { %v3370_v18 = vmul.f32 1.442695, %v3159_v3  ;;  %3548 = vadd.xlane.f32.xlu1 %v3547_v13  ;;  %7526 = vmatmul.mubr.msk.f32.gmra.mxu0 %vm2691_vm1, %v9629_v40  ;;  %v2964_v20 = vpop.xlane.xlu0 %2963 }
 0x20e   : > { %7900 = vpow2.f32 %v3368_v10  ;;  %3545 = vadd.xlane.f32.xlu0 %v3544_v55  ;;  %v2967_v60 = vpop.xlane.xlu1 %2966  ;;  %v3166_v62 = vsub.f32 %v10586_v49, %v2964_v20  ;;  %7591 = vmatpush3.msra.mxu1 %v590_v54  ;;  %v10588_v10 = vld [vmem:[#allocation35_spill] sm:$0xff]  ;;  %v3550_v20 = vsel %vm2691_vm1, %v9224_v28, 0.0 }
 0x20f   : > { %v9642_v47 = vpop.eup %7888  ;;  %7902 = vpow2.f32 %v3370_v18  ;;  %v3167_v51 = vsub.f32 %v10587_v11, %v2967_v60  ;;  %7568 = vmatprep.subr.mxu0 %v579_v56  ;;  %7592 = vmatprep.subr.mxu1 %v589_v4  ;;  %v3553_v18 = vsel %vm2691_vm1, %v9229_v57, 0.0 }
 0x210   : > { %v9645_v29 = vpop.eup %7890  ;;  %v3384_v17 = vmul.f32 1.442695, %v3166_v62  ;;  %7553 = vmatprep.mubr.msk.f32.mxu1 %vm2691_vm1, %v9642_v47  ;;  %7569 = vmatpush3.msra.mxu0 %v579_v56  ;;  %v10589_v62 = vld [vmem:[#allocation37_spill] sm:$0xff] }
 0x211   : > { %v3386_v54 = vmul.f32 1.442695, %v3167_v51  ;;  %3530 = vadd.xlane.f32.xlu1 %v3529_v22  ;;  %7554 = vmatmul.mubr.msk.f32.gmra.mxu1 %vm2691_vm1, %v9645_v29  ;;  %v2946_v8 = vpop.xlane.xlu0 %2945  ;;  %v586_v51 = vld [vmem:[%s8611_s25 + $0x2c0] sm:$0xff] }
 0x212   : > { %7904 = vpow2.f32 %v3384_v17  ;;  %3527 = vadd.xlane.f32.xlu0 %v3526_v39  ;;  %v2949_v31 = vpop.xlane.xlu1 %2948  ;;  %v3160_v3 = vsub.f32 %v9016_v37, %v2946_v8  ;;  %7593 = vmatpush3.msra.mxu1 %v589_v4  ;;  %v587_v37 = vld [vmem:[%s8611_s25 + $0x2c8] sm:$0xff]  ;;  %v601_v4 = vld [vmem:[%s8611_s25 + $0x338] sm:$0xff]  ;;  %v10590_v17 = vld [vmem:[#allocation36_spill] sm:$0xff]  ;;  %v3556_v8 = vsel %vm2691_vm1, %v9242_v30, 0.0 }
 0x213   : > { %v9658_v23 = vpop.eup %7892  ;;  %7906 = vpow2.f32 %v3386_v54  ;;  %v3161_v13 = vsub.f32 %v10588_v10, %v2949_v31  ;;  %7570 = vmatprep.subr.mxu0 %v578_v63  ;;  %7594 = vmatprep.subr.mxu1 %v588_v50  ;;  %v609_v54 = vld [vmem:[%s8611_s25 + $0x378] sm:$0xff]  ;;  %v10591_v10 = vld [vmem:[#allocation39_spill] sm:$0xff] }
 0x214   : > { %v9661_v14 = vpop.eup %7894  ;;  %v3372_v56 = vmul.f32 1.442695, %v3160_v3  ;;  %7571 = vmatpush3.msra.mxu0 %v578_v63  ;;  %7572 = vmatprep.mubr.msk.f32.mxu0 %vm2691_vm1, %v9658_v23 }
 0x215   : > { %v3374_v55 = vmul.f32 1.442695, %v3161_v13  ;;  %7595 = vmatpush3.msra.mxu1 %v588_v50  ;;  %3554 = vadd.xlane.f32.xlu1 %v3553_v18  ;;  %v2970_v60 = vpop.xlane.xlu0 %2969  ;;  %v3559_v50 = vsel %vm2691_vm1, %v9245_v2, 0.0  ;;  %v10592_v2 = vld [vmem:[#allocation38_spill] sm:$0xff] }
 0x216   : > { %7908 = vpow2.f32 %v3372_v56  ;;  %3551 = vadd.xlane.f32.xlu0 %v3550_v20  ;;  %7573 = vmatmul.mubr.msk.f32.vlgmr.msra.gmra.mxu0 %vm2691_vm1, %v9661_v14  ;;  %v2973_v49 = vpop.xlane.xlu1 %2972  ;;  %v3168_v11 = vsub.f32 %v10589_v62, %v2970_v60  ;;  %v600_v20 = vld [vmem:[%s8611_s25 + $0x330] sm:$0xff]  ;;  %v3580_v62 = vsel %vm2691_vm1, %v9265_v19, 0.0 }
 0x217   : > { %v9675_v57 = vpop.eup %7896  ;;  %7910 = vpow2.f32 %v3374_v55  ;;  %7596 = vmatprep.subr.mxu1 %v587_v37  ;;  %v3169_v22 = vsub.f32 %v10590_v17, %v2973_v49  ;;  %7612 = vmatprep.subr.mxu0 %v601_v4  ;;  %v3583_v55 = vsel %vm2691_vm1, %v9270_v5, 0.0  ;;  %v608_v60 = vld [vmem:[%s8611_s25 + $0x370] sm:$0xff] }
 0x218   : > { %v9678_v63 = vpop.eup %7898  ;;  %v3388_v28 = vmul.f32 1.442695, %v3168_v11  ;;  %7597 = vmatpush3.msra.mxu1 %v587_v37  ;;  %7600 = vmatprep.mubr.msk.f32.mxu1 %vm2691_vm1, %v9675_v57  ;;  %v10593_v5 = vld [vmem:[#allocation40_spill] sm:$0xff] }
 0x219   : > { %v3390_v39 = vmul.f32 1.442695, %v3169_v22  ;;  %7598 = vmatprep.subr.mxu1 %v586_v51  ;;  %3560 = vadd.xlane.f32.xlu1 %v3559_v50  ;;  %v2952_v31 = vpop.xlane.xlu0 %2951  ;;  %v599_v50 = vld [vmem:[%s8611_s25 + $0x328] sm:$0xff] }
 0x21a   : > { %7912 = vpow2.f32 %v3388_v28  ;;  %7599 = vmatpush3.msra.mxu1 %v586_v51  ;;  %3557 = vadd.xlane.f32.xlu0 %v3556_v8  ;;  %v2955_v3 = vpop.xlane.xlu1 %2954  ;;  %v3162_v13 = vsub.f32 %v10591_v10, %v2952_v31  ;;  %v3565_v28 = vsel %vm2691_vm1, %v9285_v45, 0.0  ;;  %v10594_v8 = vld [vmem:[#allocation61_spill] sm:$0xff] }
 0x21b   : > { %v9688_v56 = vpop.eup %7900  ;;  %7914 = vpow2.f32 %v3390_v39  ;;  %7601 = vmatmul.mubr.msk.f32.vlgmr.msra.gmra.mxu1 %vm2691_vm1, %v9678_v63  ;;  %v3163_v18 = vsub.f32 %v10592_v2, %v2955_v3  ;;  %7640 = vmatprep.subr.mxu1 %v609_v54  ;;  %v3562_v31 = vsel %vm2691_vm1, %v10594_v8, 0.0 }
 0x21c   : > { %v9693_v37 = vpop.eup %7902  ;;  %v3376_v30 = vmul.f32 1.442695, %v3162_v13  ;;  %7575 = vmatprep.mubr.msk.f32.mxu0 %vm2691_vm1, %v9688_v56  ;;  %7613 = vmatpush3.msra.mxu0 %v601_v4  ;;  %v10595_v13 = vld [vmem:[#allocation41_spill] sm:$0xff] }
 0x21d   : > { %v3378_v49 = vmul.f32 1.442695, %v3163_v18  ;;  %3584 = vadd.xlane.f32.xlu1 %v3583_v55  ;;  %7576 = vmatmul.mubr.msk.f32.gmra.mxu0 %vm2691_vm1, %v9693_v37 }
 0x21e   : > { %7916 = vpow2.f32 %v3376_v30  ;;  %3581 = vadd.xlane.f32.xlu0 %v3580_v62  ;;  %v2979_v11 = vpop.xlane.xlu1 %2978  ;;  %7641 = vmatpush3.msra.mxu1 %v609_v54  ;;  %v607_v54 = vld [vmem:[%s8611_s25 + $0x368] sm:$0xff]  ;;  %v10596_v30 = vld [vmem:[#allocation2_spill] sm:$0xff] }
 0x21f   : > { %v9705_v51 = vpop.eup %7904  ;;  %7918 = vpow2.f32 %v3378_v49  ;;  %v3171_v4 = vsub.f32 %v10593_v5, %v2979_v11  ;;  %v2976_v17 = vpop.xlane.xlu0 %2975  ;;  %7614 = vmatprep.subr.mxu0 %v600_v20  ;;  %7642 = vmatprep.subr.mxu1 %v608_v60  ;;  %v3589_v55 = vsel %vm2691_vm1, %v10596_v30, 0.0  ;;  %v10597_v49 = vld [vmem:[#allocation42_spill] sm:$0xff]  ;;  %v10598_v11 = vld [vmem:[#allocation64_spill] sm:$0xff] }
 0x220   : > { %v9708_v22 = vpop.eup %7906  ;;  %v3170_v19 = vsub.f32 %v9079_v0, %v2976_v17  ;;  %7603 = vmatprep.mubr.msk.f32.mxu1 %vm2691_vm1, %v9705_v51  ;;  %7615 = vmatpush3.msra.mxu0 %v600_v20  ;;  %v598_v20 = vld [vmem:[%s8611_s25 + $0x320] sm:$0xff]  ;;  %v3586_v5 = vsel %vm2691_vm1, %v10598_v11, 0.0 }
 0x221   : > { %v3394_v39 = vmul.f32 1.442695, %v3171_v4  ;;  %3566 = vadd.xlane.f32.xlu1 %v3565_v28  ;;  %7604 = vmatmul.mubr.msk.f32.gmra.mxu1 %vm2691_vm1, %v9708_v22  ;;  %v10599_v28 = vld [vmem:[#allocation43_spill] sm:$0xff] }
 0x222   : > { %v3392_v3 = vmul.f32 1.442695, %v3170_v19  ;;  %3563 = vadd.xlane.f32.xlu0 %v3562_v31  ;;  %v2985_v0 = vpop.xlane.xlu1 %2984  ;;  %7643 = vmatpush3.msra.mxu1 %v608_v60  ;;  %v606_v60 = vld [vmem:[%s8611_s25 + $0x360] sm:$0xff]  ;;  %v10600_v31 = vld [vmem:[#allocation44_spill] sm:$0xff] }
 0x223   : > { %v9721_v10 = vpop.eup %7908  ;;  %7920 = vpow2.f32 %v3394_v39  ;;  %v3009_v45 = vpop.xlane.xlu0 %3008  ;;  %v3173_v2 = vsub.f32 %v10595_v13, %v2985_v0  ;;  %7616 = vmatprep.subr.mxu0 %v599_v50  ;;  %7644 = vmatprep.subr.mxu1 %v607_v54  ;;  %v10601_v0 = vld [vmem:[#allocation3_spill] sm:$0xff]  ;;  %v597_v13 = vld [vmem:[%s8611_s25 + $0x318] sm:$0xff] }
 0x224   : > { %v9724_v18 = vpop.eup %7910  ;;  %7922 = vpow2.f32 %v3392_v3  ;;  %7578 = vmatprep.mubr.msk.f32.mxu0 %vm2691_vm1, %v9721_v10  ;;  %7617 = vmatpush3.msra.mxu0 %v599_v50  ;;  %v3181_v62 = vsub.f32 %v10597_v49, %v3009_v45  ;;  %v3571_v45 = vsel %vm2691_vm1, %v10601_v0, 0.0 }
 0x225   : > { %3590 = vadd.xlane.f32.xlu1 %v3589_v55  ;;  %7579 = vmatmul.mubr.msk.f32.gmra.mxu0 %vm2691_vm1, %v9724_v18  ;;  %v3398_v4 = vmul.f32 1.442695, %v3173_v2  ;;  %v10602_v55 = vld [vmem:[#allocation4_spill] sm:$0xff] }
 0x226   : > { %3587 = vadd.xlane.f32.xlu0 %v3586_v5  ;;  %v3006_v17 = vpop.xlane.xlu1 %3005  ;;  %7645 = vmatpush3.msra.mxu1 %v607_v54  ;;  %v605_v54 = vld [vmem:[%s8611_s25 + $0x358] sm:$0xff]  ;;  %v3414_v2 = vmul.f32 1.442695, %v3181_v62  ;;  %v3568_v49 = vsel %vm2691_vm1, %v10602_v55, 0.0 }
 0x227   : > { %v9737_v19 = vpop.eup %7912  ;;  %v3180_v50 = vsub.f32 %v10599_v28, %v3006_v17  ;;  %v2982_v39 = vpop.xlane.xlu0 %2981  ;;  %7618 = vmatprep.subr.mxu0 %v598_v20  ;;  %7646 = vmatprep.subr.mxu1 %v606_v60  ;;  %7924 = vpow2.f32 %v3398_v4  ;;  %v10605_v4 = vld [vmem:[#allocation5_spill] sm:$0xff] }
 0x228   : > { %v9740_v8 = vpop.eup %7914  ;;  %v3172_v3 = vsub.f32 %v10600_v31, %v2982_v39  ;;  %7606 = vmatprep.mubr.msk.f32.mxu1 %vm2691_vm1, %v9737_v19  ;;  %7619 = vmatpush3.msra.mxu0 %v598_v20  ;;  %v10604_v20 = vld [vmem:[#allocation45_spill] sm:$0xff]  ;;  %v3595_v39 = vsel %vm2691_vm1, %v10605_v4, 0.0  ;;  %v604_v31 = vld [vmem:[%s8611_s25 + $0x350] sm:$0xff] }
 0x229   : > { %v3412_v30 = vmul.f32 1.442695, %v3180_v50  ;;  %3572 = vadd.xlane.f32.xlu1 %v3571_v45  ;;  %7607 = vmatmul.mubr.msk.f32.gmra.mxu1 %vm2691_vm1, %v9740_v8  ;;  %v10607_v45 = vld [vmem:[#allocation6_spill] sm:$0xff] }
 0x22a   : > { %v3396_v11 = vmul.f32 1.442695, %v3172_v3  ;;  %3569 = vadd.xlane.f32.xlu0 %v3568_v49  ;;  %v3015_v5 = vpop.xlane.xlu1 %3014  ;;  %7647 = vmatpush3.msra.mxu1 %v606_v60  ;;  %v596_v60 = vld [vmem:[%s8611_s25 + $0x310] sm:$0xff]  ;;  %v10606_v3 = vld [vmem:[#allocation46_spill] sm:$0xff] }
 0x22b   : > { %v9753_v17 = vpop.eup %7916  ;;  %7926 = vpow2.f32 %v3412_v30  ;;  %v3183_v62 = vsub.f32 %v10604_v20, %v3015_v5  ;;  %v2991_v28 = vpop.xlane.xlu0 %2990  ;;  %7620 = vmatprep.subr.mxu0 %v597_v13  ;;  %7648 = vmatprep.subr.mxu1 %v605_v54  ;;  %v3592_v30 = vsel %vm2691_vm1, %v10607_v45, 0.0  ;;  %v10608_v5 = vld [vmem:[#allocation47_spill] sm:$0xff] }
 0x22c   : > { %10603 = vst [vmem:[#allocation12_spill] sm:$0xff] %v9753_v17  ;;  %v9756_v50 = vpop.eup %7918  ;;  %7928 = vpow2.f32 %v3396_v11  ;;  %7581 = vmatprep.mubr.msk.f32.mxu0 %vm2691_vm1, %v9753_v17  ;;  %7621 = vmatpush3.msra.mxu0 %v597_v13  ;;  %v3175_v0 = vsub.f32 %v10606_v3, %v2991_v28  ;;  %v595_v11 = vld [vmem:[%s8611_s25 + $0x308] sm:$0xff]  ;;  %v10610_v28 = vld [vmem:[#allocation48_spill] sm:$0xff] }
 0x22d   : > { %7930 = vpow2.f32 %v3414_v2  ;;  %3596 = vadd.xlane.f32.xlu1 %v3595_v39  ;;  %7582 = vmatmul.mubr.msk.f32.gmra.mxu0 %vm2691_vm1, %v9756_v50  ;;  %v3418_v55 = vmul.f32 1.442695, %v3183_v62  ;;  %v10611_v39 = vld [vmem:[#allocation7_spill] sm:$0xff] }
 0x22e   : > { %3593 = vadd.xlane.f32.xlu0 %v3592_v30  ;;  %v3012_v49 = vpop.xlane.xlu1 %3011  ;;  %7649 = vmatpush3.msra.mxu1 %v605_v54  ;;  %v3577_v3 = vsel %vm2691_vm1, %v10611_v39, 0.0  ;;  %v603_v62 = vld [vmem:[%s8611_s25 + $0x348] sm:$0xff]  ;;  %v3402_v54 = vmul.f32 1.442695, %v3175_v0  ;;  %v10616_v39 = vld [vmem:[#allocation50_spill] sm:$0xff] }
 0x22f   : > { %v3182_v13 = vsub.f32 %v10608_v5, %v3012_v49  ;;  %v2988_v20 = vpop.xlane.xlu0 %2987  ;;  %7622 = vmatprep.subr.mxu0 %v596_v60  ;;  %7650 = vmatprep.subr.mxu1 %v604_v31  ;;  %v10613_v49 = vld [vmem:[#allocation8_spill] sm:$0xff]  ;;  %7932 = vpow2.f32 %v3418_v55  ;;  %v10615_v55 = vld [vmem:[#allocation9_spill] sm:$0xff] }
 0x230   : > { %v9771_v2 = vpop.eup %7920  ;;  %v3174_v4 = vsub.f32 %v10610_v28, %v2988_v20  ;;  %7623 = vmatpush3.msra.mxu0 %v596_v60  ;;  %7651 = vmatpush3.msra.mxu1 %v604_v31  ;;  %v3574_v5 = vsel %vm2691_vm1, %v10613_v49, 0.0  ;;  %v594_v60 = vld [vmem:[%s8611_s25 + $0x300] sm:$0xff]  ;;  %v10614_v31 = vld [vmem:[#allocation49_spill] sm:$0xff] }
 0x231   : > { %10609 = vst [vmem:[#allocation11_spill] sm:$0xff] %v9771_v2  ;;  %v9777_v45 = vpop.eup %7922  ;;  %v3416_v30 = vmul.f32 1.442695, %v3182_v13  ;;  %3578 = vadd.xlane.f32.xlu1 %v3577_v3  ;;  %7624 = vmatprep.subr.mxu0 %v595_v11  ;;  %v602_v28 = vld [vmem:[%s8611_s25 + $0x340] sm:$0xff] }
 0x232   : > { %10612 = vst [vmem:[#allocation14_spill] sm:$0xff] %v9777_v45  ;;  %v3400_v17 = vmul.f32 1.442695, %v3174_v4  ;;  %7609 = vmatprep.mubr.msk.f32.mxu1 %vm2691_vm1, %v9777_v45  ;;  %3575 = vadd.xlane.f32.xlu0 %v3574_v5  ;;  %v3021_v20 = vpop.xlane.xlu1 %3020  ;;  %v3601_v4 = vsel %vm2691_vm1, %v10615_v55, 0.0  ;;  %v617_v5 = vld [vmem:[%s8611_s25 + $0x3b8] sm:$0xff] }
 0x233   : > { %7934 = vpow2.f32 %v3416_v30  ;;  %7610 = vmatmul.mubr.msk.f32.gmra.mxu1 %vm2691_vm1, %v9771_v2  ;;  %v3185_v0 = vsub.f32 %v10614_v31, %v3021_v20  ;;  %v2997_v13 = vpop.xlane.xlu0 %2996  ;;  %7652 = vmatprep.subr.mxu1 %v603_v62  ;;  %v10617_v30 = vld [vmem:[#allocation10_spill] sm:$0xff]  ;;  %v625_v45 = vld [vmem:[%s8611_s25 + $0x3f8] sm:$0xff]  ;;  %v10618_v2 = vld [vmem:[#allocation51_spill] sm:$0xff] }
 0x234   : > { %7936 = vpow2.f32 %v3400_v17  ;;  %7625 = vmatpush3.msra.mxu0 %v595_v11  ;;  %7653 = vmatpush3.msra.mxu1 %v603_v62  ;;  %v3177_v3 = vsub.f32 %v10616_v39, %v2997_v13  ;;  %v3598_v49 = vsel %vm2691_vm1, %v10617_v30, 0.0  ;;  %v9795_v17 = vpop.eup %7924 }
 0x235   : > { %7938 = vpow2.f32 %v3402_v54  ;;  %3602 = vadd.xlane.f32.xlu1 %v3601_v4  ;;  %7626 = vmatprep.subr.mxu0 %v594_v60  ;;  %v3422_v20 = vmul.f32 1.442695, %v3185_v0  ;;  %v10619_v54 = vld [vmem:[#allocation52_spill] sm:$0xff]  ;;  %v3607_v4 = vsel %vm2691_vm1, %v9405_v9, 0.0 }
 0x236   : > { %3599 = vadd.xlane.f32.xlu0 %v3598_v49  ;;  %v3018_v31 = vpop.xlane.xlu1 %3017  ;;  %7654 = vmatprep.subr.mxu1 %v602_v28  ;;  %v3406_v39 = vmul.f32 1.442695, %v3177_v3  ;;  %v616_v49 = vld [vmem:[%s8611_s25 + $0x3b0] sm:$0xff]  ;;  %v10620_v3 = vld [vmem:[#allocation53_spill] sm:$0xff] }
 0x237   : > { %v3184_v55 = vsub.f32 %v10618_v2, %v3018_v31  ;;  %v2994_v11 = vpop.xlane.xlu0 %2993  ;;  %7627 = vmatpush3.msra.mxu0 %v594_v60  ;;  %7655 = vmatpush3.msra.mxu1 %v602_v28  ;;  %v3604_v2 = vsel %vm2691_vm1, %v9402_v27, 0.0  ;;  %7940 = vpow2.f32 %v3422_v20  ;;  %v624_v20 = vld [vmem:[%s8611_s25 + $0x3f0] sm:$0xff] }
 0x238   : > { %v9798_v62 = vpop.eup %7926  ;;  %v3176_v13 = vsub.f32 %v10619_v54, %v2994_v11  ;;  %7668 = vmatprep.subr.mxu0 %v617_v5  ;;  %7696 = vmatprep.subr.mxu1 %v625_v45  ;;  %v10621_v11 = vld [vmem:[#allocation54_spill] sm:$0xff] }
 0x239   : > { %v9803_v0 = vpop.eup %7928  ;;  %v3420_v30 = vmul.f32 1.442695, %v3184_v55  ;;  %3608 = vadd.xlane.f32.xlu1 %v3607_v4  ;;  %7656 = vmatprep.mubr.msk.f32.mxu1 %vm2691_vm1, %v9798_v62  ;;  %v3631_v55 = vsel %vm2691_vm1, %v9422_v53, 0.0  ;;  %v623_v4 = vld [vmem:[%s8611_s25 + $0x3e8] sm:$0xff] }
 0x23a   : > { %v9809_v60 = vpop.eup %7930  ;;  %v3404_v28 = vmul.f32 1.442695, %v3176_v13  ;;  %7628 = vmatprep.mubr.msk.f32.mxu0 %vm2691_vm1, %v9803_v0  ;;  %3605 = vadd.xlane.f32.xlu0 %v3604_v2  ;;  %v3027_v9 = vpop.xlane.xlu1 %3026  ;;  %v3628_v13 = vsel %vm2691_vm1, %v9419_v48, 0.0  ;;  %v3613_v48 = vsel %vm2691_vm1, %v9437_v25, 0.0 }
 0x23b   : > { %7942 = vpow2.f32 %v3420_v30  ;;  %7657 = vmatmul.mubr.msk.f32.vlgmr.msra.gmra.mxu1 %vm2691_vm1, %v9809_v60  ;;  %v3187_v31 = vsub.f32 %v10620_v3, %v3027_v9  ;;  %7629 = vmatmul.mubr.msk.f32.vlgmr.msra.gmra.mxu0 %vm2691_vm1, %v9795_v17  ;;  %v3003_v27 = vpop.xlane.xlu0 %3002  ;;  %v615_v30 = vld [vmem:[%s8611_s25 + $0x3a8] sm:$0xff] }
 0x23c   : > { %7944 = vpow2.f32 %v3404_v28  ;;  %7669 = vmatpush3.msra.mxu0 %v617_v5  ;;  %7697 = vmatpush3.msra.mxu1 %v625_v45  ;;  %v3179_v54 = vsub.f32 %v10621_v11, %v3003_v27  ;;  %v9827_v28 = vpop.eup %7932  ;;  %v10622_v3 = vld [vmem:[#allocation55_spill] sm:$0xff] }
 0x23d   : > { %7946 = vpow2.f32 %v3406_v39  ;;  %3632 = vadd.xlane.f32.xlu1 %v3631_v55  ;;  %7670 = vmatprep.subr.mxu0 %v616_v49  ;;  %v3426_v2 = vmul.f32 1.442695, %v3187_v31  ;;  %v10623_v39 = vld [vmem:[#allocation56_spill] sm:$0xff] }
 0x23e   : > { %3629 = vadd.xlane.f32.xlu0 %v3628_v13  ;;  %v3024_v9 = vpop.xlane.xlu1 %3023  ;;  %7698 = vmatprep.subr.mxu1 %v624_v20  ;;  %v3410_v55 = vmul.f32 1.442695, %v3179_v54  ;;  %v10624_v54 = vld [vmem:[#allocation57_spill] sm:$0xff] }
 0x23f   : > { %v3186_v53 = vsub.f32 %v10622_v3, %v3024_v9  ;;  %v3000_v5 = vpop.xlane.xlu0 %2999  ;;  %7671 = vmatpush3.msra.mxu0 %v616_v49  ;;  %7699 = vmatpush3.msra.mxu1 %v624_v20  ;;  %v3610_v49 = vsel %vm2691_vm1, %v9432_v6, 0.0  ;;  %7948 = vpow2.f32 %v3426_v2  ;;  %v614_v9 = vld [vmem:[%s8611_s25 + $0x3a0] sm:$0xff] }
 0x240   : > { %v9830_v45 = vpop.eup %7934  ;;  %v3178_v27 = vsub.f32 %v10623_v39, %v3000_v5  ;;  %7700 = vmatprep.subr.mxu1 %v623_v4  ;;  %7672 = vmatprep.subr.mxu0 %v615_v30  ;;  %v622_v2 = vld [vmem:[%s8611_s25 + $0x3e0] sm:$0xff] }
 0x241   : > { %v9835_v31 = vpop.eup %7936  ;;  %v3424_v11 = vmul.f32 1.442695, %v3186_v53  ;;  %3614 = vadd.xlane.f32.xlu1 %v3613_v48  ;;  %7659 = vmatprep.mubr.msk.f32.mxu1 %vm2691_vm1, %v9830_v45  ;;  %v3637_v53 = vsel %vm2691_vm1, %v9453_v21, 0.0  ;;  %v10625_v5 = vld [vmem:[#allocation58_spill] sm:$0xff]  ;;  %v621_v48 = vld [vmem:[%s8611_s25 + $0x3d8] sm:$0xff] }
 0x242   : > { %v9841_v20 = vpop.eup %7938  ;;  %v3408_v13 = vmul.f32 1.442695, %v3178_v27  ;;  %7631 = vmatprep.mubr.msk.f32.mxu0 %vm2691_vm1, %v9835_v31  ;;  %3611 = vadd.xlane.f32.xlu0 %v3610_v49  ;;  %v3057_v25 = vpop.xlane.xlu1 %3056  ;;  %v3634_v27 = vsel %vm2691_vm1, %v9450_v58, 0.0  ;;  %v3619_v58 = vsel %vm2691_vm1, %v9469_v43, 0.0 }
 0x243   : > { %7950 = vpow2.f32 %v3424_v11  ;;  %7660 = vmatmul.mubr.msk.f32.gmra.mxu1 %vm2691_vm1, %v9827_v28  ;;  %v3197_v3 = vsub.f32 %v10624_v54, %v3057_v25  ;;  %7632 = vmatmul.mubr.msk.f32.gmra.mxu0 %vm2691_vm1, %v9841_v20  ;;  %v3033_v6 = vpop.xlane.xlu0 %3032  ;;  %v613_v11 = vld [vmem:[%s8611_s25 + $0x398] sm:$0xff]  ;;  %v10626_v54 = vld [vmem:[#allocation59_spill] sm:$0xff] }
 0x244   : > { %7952 = vpow2.f32 %v3408_v13  ;;  %7673 = vmatpush3.msra.mxu0 %v615_v30  ;;  %7701 = vmatpush3.msra.mxu1 %v623_v4  ;;  %v3189_v39 = vsub.f32 %v10625_v5, %v3033_v6  ;;  %v9859_v13 = vpop.eup %7940 }
 0x245   : > { %7954 = vpow2.f32 %v3410_v55  ;;  %3638 = vadd.xlane.f32.xlu1 %v3637_v53  ;;  %7674 = vmatprep.subr.mxu0 %v614_v9  ;;  %v3446_v49 = vmul.f32 1.442695, %v3197_v3  ;;  %v10627_v55 = vld [vmem:[#allocation60_spill] sm:$0xff] }
 0x246   : > { %3635 = vadd.xlane.f32.xlu0 %v3634_v27  ;;  %v3054_v25 = vpop.xlane.xlu1 %3053  ;;  %7702 = vmatprep.subr.mxu1 %v622_v2  ;;  %v3430_v53 = vmul.f32 1.442695, %v3189_v39  ;;  %v10628_v39 = vld [vmem:[#allocation62_spill] sm:$0xff] }
 0x247   : > { %v3196_v21 = vsub.f32 %v10626_v54, %v3054_v25  ;;  %v3030_v30 = vpop.xlane.xlu0 %3029  ;;  %7675 = vmatpush3.msra.mxu0 %v614_v9  ;;  %7703 = vmatpush3.msra.mxu1 %v622_v2  ;;  %v3616_v9 = vsel %vm2691_vm1, %v9466_v1, 0.0  ;;  %7956 = vpow2.f32 %v3446_v49  ;;  %v612_v25 = vld [vmem:[%s8611_s25 + $0x390] sm:$0xff] }
 0x248   : > { %v9862_v4 = vpop.eup %7942  ;;  %v3188_v6 = vsub.f32 %v10627_v55, %v3030_v30  ;;  %7704 = vmatprep.subr.mxu1 %v621_v48  ;;  %7676 = vmatprep.subr.mxu0 %v613_v11  ;;  %v620_v49 = vld [vmem:[%s8611_s25 + $0x3d0] sm:$0xff]  ;;  %v10629_v30 = vld [vmem:[#allocation63_spill] sm:$0xff] }
 0x249   : > { %v9867_v3 = vpop.eup %7944  ;;  %v3444_v5 = vmul.f32 1.442695, %v3196_v21  ;;  %3620 = vadd.xlane.f32.xlu1 %v3619_v58  ;;  %7662 = vmatprep.mubr.msk.f32.mxu1 %vm2691_vm1, %v9862_v4  ;;  %v3643_v21 = vsel %vm2691_vm1, %v9485_v16, 0.0  ;;  %v619_v58 = vld [vmem:[%s8611_s25 + $0x3c8] sm:$0xff] }
 0x24a   : > { %v9873_v2 = vpop.eup %7946  ;;  %v3428_v27 = vmul.f32 1.442695, %v3188_v6  ;;  %7634 = vmatprep.mubr.msk.f32.mxu0 %vm2691_vm1, %v9867_v3  ;;  %3617 = vadd.xlane.f32.xlu0 %v3616_v9  ;;  %v3063_v43 = vpop.xlane.xlu1 %3062  ;;  %v3640_v6 = vsel %vm2691_vm1, %v9482_v44, 0.0  ;;  %v3625_v44 = vsel %vm2691_vm1, %v9501_v61, 0.0 }
 0x24b   : > { %7958 = vpow2.f32 %v3444_v5  ;;  %7663 = vmatmul.mubr.msk.f32.gmra.mxu1 %vm2691_vm1, %v9859_v13  ;;  %v3199_v54 = vsub.f32 %v10628_v39, %v3063_v43  ;;  %7635 = vmatmul.mubr.msk.f32.gmra.mxu0 %vm2691_vm1, %v9873_v2  ;;  %v3039_v1 = vpop.xlane.xlu0 %3038  ;;  %v611_v5 = vld [vmem:[%s8611_s25 + $0x388] sm:$0xff]  ;;  %v10630_v39 = vld [vmem:[#allocation65_spill] sm:$0xff] }
 0x24c   : > { %7960 = vpow2.f32 %v3428_v27  ;;  %7677 = vmatpush3.msra.mxu0 %v613_v11  ;;  %7705 = vmatpush3.msra.mxu1 %v621_v48  ;;  %v3191_v55 = vsub.f32 %v10629_v30, %v3039_v1  ;;  %v9891_v27 = vpop.eup %7948 }
 0x24d   : > { %7962 = vpow2.f32 %v3430_v53  ;;  %3644 = vadd.xlane.f32.xlu1 %v3643_v21  ;;  %7678 = vmatprep.subr.mxu0 %v612_v25  ;;  %v3450_v9 = vmul.f32 1.442695, %v3199_v54  ;;  %v10631_v53 = vld [vmem:[#allocation66_spill] sm:$0xff] }
 0x24e   : > { %3641 = vadd.xlane.f32.xlu0 %v3640_v6  ;;  %v3060_v43 = vpop.xlane.xlu1 %3059  ;;  %7706 = vmatprep.subr.mxu1 %v620_v49  ;;  %v3434_v21 = vmul.f32 1.442695, %v3191_v55  ;;  %v10632_v55 = vld [vmem:[#allocation67_spill] sm:$0xff] }
 0x24f   : > { %v3198_v16 = vsub.f32 %v10630_v39, %v3060_v43  ;;  %v3036_v11 = vpop.xlane.xlu0 %3035  ;;  %7679 = vmatpush3.msra.mxu0 %v612_v25  ;;  %7707 = vmatpush3.msra.mxu1 %v620_v49  ;;  %v3622_v25 = vsel %vm2691_vm1, %v9498_v36, 0.0  ;;  %7964 = vpow2.f32 %v3450_v9  ;;  %v610_v43 = vld [vmem:[%s8611_s25 + $0x380] sm:$0xff]  ;;  %v3649_v9 = vsel %vm2691_vm1, %v9517_v34, 0.0 }
 0x250   : > { %v9894_v48 = vpop.eup %7950  ;;  %v3190_v1 = vsub.f32 %v10631_v53, %v3036_v11  ;;  %7708 = vmatprep.subr.mxu1 %v619_v58  ;;  %7680 = vmatprep.subr.mxu0 %v611_v5  ;;  %v10633_v11 = vld [vmem:[#allocation68_spill] sm:$0xff] }
 0x251   : > { %v9899_v54 = vpop.eup %7952  ;;  %v3448_v30 = vmul.f32 1.442695, %v3198_v16  ;;  %3626 = vadd.xlane.f32.xlu1 %v3625_v44  ;;  %7665 = vmatprep.mubr.msk.f32.mxu1 %vm2691_vm1, %v9894_v48  ;;  %v618_v16 = vld [vmem:[%s8611_s25 + $0x3c0] sm:$0xff] }
 0x252   : > { %v9905_v49 = vpop.eup %7954  ;;  %v3432_v6 = vmul.f32 1.442695, %v3190_v1  ;;  %7637 = vmatprep.mubr.msk.f32.mxu0 %vm2691_vm1, %v9899_v54  ;;  %3623 = vadd.xlane.f32.xlu0 %v3622_v25  ;;  %v3069_v61 = vpop.xlane.xlu1 %3068  ;;  %v3646_v1 = vsel %vm2691_vm1, %v9514_v24, 0.0 }
 0x253   : > { %7966 = vpow2.f32 %v3448_v30  ;;  %7666 = vmatmul.mubr.msk.f32.gmra.mxu1 %vm2691_vm1, %v9891_v27  ;;  %v3201_v39 = vsub.f32 %v10632_v55, %v3069_v61  ;;  %7638 = vmatmul.mubr.msk.f32.gmra.mxu0 %vm2691_vm1, %v9905_v49  ;;  %v3045_v36 = vpop.xlane.xlu0 %3044 }
 0x254   : > { %7968 = vpow2.f32 %v3432_v6  ;;  %7681 = vmatpush3.msra.mxu0 %v611_v5  ;;  %7709 = vmatpush3.msra.mxu1 %v619_v58  ;;  %v3193_v53 = vsub.f32 %v10633_v11, %v3045_v36  ;;  %v9921_v25 = vpop.eup %7956  ;;  %v10634_v6 = vld [vmem:[#allocation69_spill] sm:$0xff]  ;;  %v10635_v58 = vld [vmem:[#allocation70_spill] sm:$0xff]  ;;  %v10636_v11 = vld [vmem:[#allocation71_spill] sm:$0xff] }
 0x255   : > { %7970 = vpow2.f32 %v3434_v21  ;;  %3650 = vadd.xlane.f32.xlu1 %v3649_v9  ;;  %7682 = vmatprep.subr.mxu0 %v610_v43  ;;  %v3454_v44 = vmul.f32 1.442695, %v3201_v39  ;;  %v3655_v21 = vsel %vm2691_vm1, %v9533_v38, 0.0  ;;  %v3652_v9 = vsel %vm2691_vm1, %v9530_v35, 0.0  ;;  %v10637_v35 = vld [vmem:[#allocation72_spill] sm:$0xff] }
 0x256   : > { %3647 = vadd.xlane.f32.xlu0 %v3646_v1  ;;  %v3066_v30 = vpop.xlane.xlu1 %3065  ;;  %7710 = vmatprep.subr.mxu1 %v618_v16  ;;  %v3438_v39 = vmul.f32 1.442695, %v3193_v53 }
 0x257   : > { %v3200_v61 = vsub.f32 %v10634_v6, %v3066_v30  ;;  %v3042_v55 = vpop.xlane.xlu0 %3041  ;;  %7683 = vmatpush3.msra.mxu0 %v610_v43  ;;  %7711 = vmatpush3.msra.mxu1 %v618_v16  ;;  %7972 = vpow2.f32 %v3454_v44  ;;  %v3679_v44 = vsel %vm2691_vm1, %v9550_v41, 0.0  ;;  %v3661_v41 = vsel %vm2691_vm1, %v9565_v26, 0.0 }
 0x258   : > { %v9924_v34 = vpop.eup %7958  ;;  %v3192_v5 = vsub.f32 %v10635_v58, %v3042_v55 }
 0x259   : > { %v9929_v24 = vpop.eup %7960  ;;  %v3452_v36 = vmul.f32 1.442695, %v3200_v61  ;;  %3656 = vadd.xlane.f32.xlu1 %v3655_v21  ;;  %7712 = vmatprep.mubr.msk.f32.mxu1 %vm2691_vm1, %v9924_v34  ;;  %v3676_v61 = vsel %vm2691_vm1, %v9547_v52, 0.0  ;;  %v10638_v21 = vld [vmem:[#allocation73_spill] sm:$0xff]  ;;  %v3658_v52 = vsel %vm2691_vm1, %v9560_v15, 0.0  ;;  %v3685_v15 = vsel %vm2691_vm1, %v9581_v42, 0.0 }
 0x25a   : > { %v9935_v43 = vpop.eup %7962  ;;  %v3436_v16 = vmul.f32 1.442695, %v3192_v5  ;;  %7684 = vmatprep.mubr.msk.f32.mxu0 %vm2691_vm1, %v9929_v24  ;;  %3653 = vadd.xlane.f32.xlu0 %v3652_v9  ;;  %v3075_v38 = vpop.xlane.xlu1 %3074 }
 0x25b   : > { %7974 = vpow2.f32 %v3452_v36  ;;  %7713 = vmatmul.mubr.msk.f32.vlgmr.msra.gmra.mxu1 %vm2691_vm1, %v9921_v25  ;;  %v3203_v53 = vsub.f32 %v10636_v11, %v3075_v38  ;;  %7685 = vmatmul.mubr.msk.f32.vlgmr.msra.gmra.mxu0 %vm2691_vm1, %v9935_v43  ;;  %v3051_v1 = vpop.xlane.xlu0 %3050  ;;  %v10639_v38 = vld [vmem:[#allocation74_spill] sm:$0xff] }
 0x25c   : > { %7976 = vpow2.f32 %v3436_v16  ;;  %v3195_v30 = vsub.f32 %v10637_v35, %v3051_v1  ;;  %v9949_v5 = vpop.eup %7964 }
 0x25d   : > { %7978 = vpow2.f32 %v3438_v39  ;;  %v3458_v6 = vmul.f32 1.442695, %v3203_v53  ;;  %3680 = vadd.xlane.f32.xlu1 %v3679_v44  ;;  %v3682_v44 = vsel %vm2691_vm1, %v9578_v12, 0.0  ;;  %v3664_v12 = vsel %vm2691_vm1, %v9594_v33, 0.0 }
 0x25e   : > { %v3442_v55 = vmul.f32 1.442695, %v3195_v30  ;;  %3677 = vadd.xlane.f32.xlu0 %v3676_v61  ;;  %v3072_v58 = vpop.xlane.xlu1 %3071  ;;  %v3688_v33 = vsel %vm2691_vm1, %v9610_v32, 0.0  ;;  %v3670_v32 = vsel %vm2691_vm1, %v9626_v7, 0.0 }
 0x25f   : > { %v3202_v36 = vsub.f32 %v10638_v21, %v3072_v58  ;;  %v3048_v9 = vpop.xlane.xlu0 %3047  ;;  %7980 = vpow2.f32 %v3458_v6  ;;  %v3667_v21 = vsel %vm2691_vm1, %v9597_v59, 0.0 }
 0x260   : > { %v9952_v16 = vpop.eup %7966  ;;  %v3194_v11 = vsub.f32 %v10639_v38, %v3048_v9  ;;  %7982 = vpow2.f32 %v3442_v55  ;;  %v3691_v38 = vsel %vm2691_vm1, %v9613_v46, 0.0  ;;  %v3673_v46 = vsel %vm2691_vm1, %v9629_v40, 0.0 }
 0x261   : > { %v9957_v39 = vpop.eup %7968  ;;  %v3456_v53 = vmul.f32 1.442695, %v3202_v36  ;;  %3662 = vadd.xlane.f32.xlu1 %v3661_v41  ;;  %7715 = vmatprep.mubr.msk.f32.mxu1 %vm2691_vm1, %v9952_v16 }
 0x262   : > { %v9963_v1 = vpop.eup %7970  ;;  %v3440_v35 = vmul.f32 1.442695, %v3194_v11  ;;  %7687 = vmatprep.mubr.msk.f32.mxu0 %vm2691_vm1, %v9957_v39  ;;  %3659 = vadd.xlane.f32.xlu0 %v3658_v52  ;;  %v3465_v26 = vpop.xlane.xlu1 %3464 }
 0x263   : > { %7984 = vpow2.f32 %v3456_v53  ;;  %7716 = vmatmul.mubr.msk.f32.gmra.mxu1 %vm2691_vm1, %v9949_v5  ;;  %7688 = vmatmul.mubr.msk.f32.gmra.mxu0 %vm2691_vm1, %v9963_v1  ;;  %v3462_v30 = vpop.xlane.xlu0 %3461  ;;  %v7294_v52 = vpop.f32.mrf.mxu0 }
 0x264   : > { %7986 = vpow2.f32 %v3440_v35  ;;  %v9975_v61 = vpop.eup %7972 }
 0x265   : > { %7988 = vrcp.f32 %v3465_v26  ;;  %3686 = vadd.xlane.f32.xlu1 %v3685_v15  ;;  %v7322_v15 = vpop.f32.mrf.mxu1 }
 0x266   : > { %7990 = vrcp.f32 %v3462_v30  ;;  %3683 = vadd.xlane.f32.xlu0 %v3682_v44  ;;  %v3489_v6 = vpop.xlane.xlu1 %3488 }
 0x267   : > { %7992 = vrcp.f32 %v3489_v6  ;;  %v3486_v55 = vpop.xlane.xlu0 %3485 }
 0x268   : > { %v9977_v58 = vpop.eup %7974  ;;  %7994 = vrcp.f32 %v3486_v55  ;;  %v3934_v55 = vpop.f32.mrf.mxu0 }
 0x269   : > { %v9981_v36 = vpop.eup %7976  ;;  %3668 = vadd.xlane.f32.xlu1 %v3667_v21  ;;  %7718 = vmatprep.mubr.msk.f32.mxu1 %vm2691_vm1, %v9977_v58 }
 0x26a   : > { %v9987_v42 = vpop.eup %7978  ;;  %7690 = vmatprep.mubr.msk.f32.mxu0 %vm2691_vm1, %v9981_v36  ;;  %3665 = vadd.xlane.f32.xlu0 %v3664_v12  ;;  %v3471_v9 = vpop.xlane.xlu1 %3470 }
 0x26b   : > { %7719 = vmatmul.mubr.msk.f32.gmra.mxu1 %vm2691_vm1, %v9975_v61  ;;  %7996 = vrcp.f32 %v3471_v9  ;;  %7691 = vmatmul.mubr.msk.f32.gmra.mxu0 %vm2691_vm1, %v9987_v42  ;;  %v3468_v59 = vpop.xlane.xlu0 %3467 }
 0x26c   : > { %7998 = vrcp.f32 %v3468_v59  ;;  %v9999_v11 = vpop.eup %7980  ;;  %v3697_v59 = vsel %vm2691_vm1, %v9645_v29, 0.0 }
 0x26d   : > { %3692 = vadd.xlane.f32.xlu1 %v3691_v38  ;;  %v10001_v53 = vpop.eup %7982 }
 0x26e   : > { %3689 = vadd.xlane.f32.xlu0 %v3688_v33  ;;  %v3495_v41 = vpop.xlane.xlu1 %3494  ;;  %v4063_v33 = vpop.f32.mrf.mxu1 }
 0x26f   : > { %8000 = vrcp.f32 %v3495_v41  ;;  %v3492_v35 = vpop.xlane.xlu0 %3491  ;;  %v7297_v41 = vpop.f32.mrf.mxu0 }
 0x270   : > { %v10003_v26 = vpop.eup %7984  ;;  %8002 = vrcp.f32 %v3492_v35  ;;  %v3694_v35 = vsel %vm2691_vm1, %v9642_v47, 0.0  ;;  %v7325_v47 = vpop.f32.mrf.mxu1 }
 0x271   : > { %v10007_v30 = vpop.eup %7986  ;;  %3674 = vadd.xlane.f32.xlu1 %v3673_v46  ;;  %7721 = vmatprep.mubr.msk.f32.mxu1 %vm2691_vm1, %v10003_v26 }
 0x272   : > { %v7989_v44 = vpop.eup %7988  ;;  %3671 = vadd.xlane.f32.xlu0 %v3670_v32  ;;  %7693 = vmatprep.mubr.msk.f32.mxu0 %vm2691_vm1, %v10007_v30  ;;  %v3477_v40 = vpop.xlane.xlu1 %3476 }
 0x273   : > { %v7991_v6 = vpop.eup %7990  ;;  %v6037_v21 = vmul.f32 %v7989_v44, %v7294_v52  ;;  %7722 = vmatmul.mubr.msk.f32.gmra.mxu1 %vm2691_vm1, %v9999_v11  ;;  %8004 = vrcp.f32 %v3477_v40  ;;  %7694 = vmatmul.mubr.msk.f32.gmra.mxu0 %vm2691_vm1, %v10001_v53  ;;  %v3474_v7 = vpop.xlane.xlu0 %3473 }
 0x274   : > { %v7993_v12 = vpop.eup %7992  ;;  %v6036_v9 = vmul.f32 %v7991_v6, %v3934_v55  ;;  %8006 = vrcp.f32 %v3474_v7  ;;  %v3944_v6 = vpop.f32.mrf.mxu0 }
 0x275   : > { %v7995_v38 = vpop.eup %7994  ;;  %6166 = vst.msk [vmem:[%s10017_s28 + $0x8] sm:$0xff] %vm6164_vm2, %v6037_v21  ;;  %v6045_v52 = vmul.f32 %v7993_v12, %v7322_v15  ;;  %3698 = vadd.xlane.f32.xlu1 %v3697_v59  ;;  %v3703_v15 = vsel %vm2691_vm1, %v9661_v14, 0.0  ;;  %v3700_v21 = vsel %vm2691_vm1, %v9658_v23, 0.0  ;;  %v3727_v14 = vsel %vm2691_vm1, %v9678_v63, 0.0 }
 0x276   : > { %6165 = vst.msk [vmem:[%s10017_s28] sm:$0xff] %vm6164_vm2, %v6036_v9  ;;  %v6044_v46 = vmul.f32 %v7995_v38, %v4063_v33  ;;  %3695 = vadd.xlane.f32.xlu0 %v3694_v35  ;;  %v3501_v32 = vpop.xlane.xlu1 %3500  ;;  %v4073_v33 = vpop.f32.mrf.mxu1  ;;  %v3709_v63 = vsel %vm2691_vm1, %v9693_v37, 0.0  ;;  %v3733_v37 = vsel %vm2691_vm1, %v9708_v22, 0.0  ;;  %v3715_v22 = vsel %vm2691_vm1, %v9724_v18, 0.0 }
 0x277   : > { %6174 = vst.msk [vmem:[%s10017_s28 + $0x48] sm:$0xff] %vm6164_vm2, %v6045_v52  ;;  %8008 = vrcp.f32 %v3501_v32  ;;  %v3498_v29 = vpop.xlane.xlu0 %3497  ;;  %v3724_v52 = vsel %vm2691_vm1, %v9675_v57, 0.0  ;;  %v3739_v18 = vsel %vm2691_vm1, %v9740_v8, 0.0  ;;  %v3721_v8 = vsel %vm2691_vm1, %v9756_v50, 0.0  ;;  %v10641_v50 = vld [vmem:[#allocation11_spill] sm:$0xff] }
 0x278   : > { %v7997_v44 = vpop.eup %7996  ;;  %6173 = vst.msk [vmem:[%s10017_s28 + $0x40] sm:$0xff] %vm6164_vm2, %v6044_v46  ;;  %8010 = vrcp.f32 %v3498_v29 }
 0x279   : > { %v7999_v40 = vpop.eup %7998  ;;  %v6039_v55 = vmul.f32 %v7997_v44, %v7297_v41  ;;  %3704 = vadd.xlane.f32.xlu1 %v3703_v15  ;;  %v7300_v41 = vpop.f32.mrf.mxu0 }
 0x27a   : > { %v6038_v7 = vmul.f32 %v7999_v40, %v3944_v6  ;;  %3701 = vadd.xlane.f32.xlu0 %v3700_v21  ;;  %v3483_v12 = vpop.xlane.xlu1 %3482  ;;  %v7328_v40 = vpop.f32.mrf.mxu1 }
 0x27b   : > { %6168 = vst.msk [vmem:[%s10017_s28 + $0x18] sm:$0xff] %vm6164_vm2, %v6039_v55  ;;  %8012 = vrcp.f32 %v3483_v12  ;;  %v3480_v9 = vpop.xlane.xlu0 %3479  ;;  %v3954_v15 = vpop.f32.mrf.mxu0 }
 0x27c   : > { %v8001_v59 = vpop.eup %8000  ;;  %6167 = vst.msk [vmem:[%s10017_s28 + $0x10] sm:$0xff] %vm6164_vm2, %v6038_v7  ;;  %8014 = vrcp.f32 %v3480_v9  ;;  %v4083_v9 = vpop.f32.mrf.mxu1 }
 0x27d   : > { %v8003_v38 = vpop.eup %8002  ;;  %v6047_v23 = vmul.f32 %v8001_v59, %v7325_v47  ;;  %3728 = vadd.xlane.f32.xlu1 %v3727_v14  ;;  %v3706_v47 = vsel %vm2691_vm1, %v9688_v56, 0.0  ;;  %v7303_v59 = vpop.f32.mrf.mxu0  ;;  %v3730_v14 = vsel %vm2691_vm1, %v9705_v51, 0.0 }
 0x27e   : > { %v6046_v35 = vmul.f32 %v8003_v38, %v4073_v33  ;;  %3725 = vadd.xlane.f32.xlu0 %v3724_v52  ;;  %v3507_v46 = vpop.xlane.xlu1 %3506 }
 0x27f   : > { %6176 = vst.msk [vmem:[%s10017_s28 + $0x58] sm:$0xff] %vm6164_vm2, %v6047_v23  ;;  %8016 = vrcp.f32 %v3507_v46  ;;  %v3504_v32 = vpop.xlane.xlu0 %3503  ;;  %v7331_v46 = vpop.f32.mrf.mxu1 }
 0x280   : > { %v8005_v29 = vpop.eup %8004  ;;  %6175 = vst.msk [vmem:[%s10017_s28 + $0x50] sm:$0xff] %vm6164_vm2, %v6046_v35  ;;  %8018 = vrcp.f32 %v3504_v32  ;;  %v3964_v35 = vpop.f32.mrf.mxu0  ;;  %v3712_v32 = vsel %vm2691_vm1, %v9721_v10, 0.0 }
 0x281   : > { %v8007_v44 = vpop.eup %8006  ;;  %v6041_v57 = vmul.f32 %v8005_v29, %v7300_v41  ;;  %3710 = vadd.xlane.f32.xlu1 %v3709_v63 }
 0x282   : > { %v6040_v6 = vmul.f32 %v8007_v44, %v3954_v15  ;;  %3707 = vadd.xlane.f32.xlu0 %v3706_v47  ;;  %v3513_v55 = vpop.xlane.xlu1 %3512  ;;  %v7350_v47 = vpop.f32.mrf.mxu0 }
 0x283   : > { %6170 = vst.msk [vmem:[%s10017_s28 + $0x28] sm:$0xff] %vm6164_vm2, %v6041_v57  ;;  %8020 = vrcp.f32 %v3513_v55  ;;  %v3510_v21 = vpop.xlane.xlu0 %3509  ;;  %v4093_v57 = vpop.f32.mrf.mxu1 }
 0x284   : > { %v8009_v7 = vpop.eup %8008  ;;  %6169 = vst.msk [vmem:[%s10017_s28 + $0x20] sm:$0xff] %vm6164_vm2, %v6040_v6  ;;  %8022 = vrcp.f32 %v3510_v21  ;;  %v3736_v6 = vsel %vm2691_vm1, %v9737_v19, 0.0 }
 0x285   : > { %v8011_v12 = vpop.eup %8010  ;;  %v6049_v56 = vmul.f32 %v8009_v7, %v7328_v40  ;;  %3734 = vadd.xlane.f32.xlu1 %v3733_v37 }
 0x286   : > { %v6048_v38 = vmul.f32 %v8011_v12, %v4083_v9  ;;  %3731 = vadd.xlane.f32.xlu0 %v3730_v14  ;;  %v3537_v33 = vpop.xlane.xlu1 %3536  ;;  %v4192_v9 = vpop.f32.mrf.mxu0 }
 0x287   : > { %6178 = vst.msk [vmem:[%s10017_s28 + $0x68] sm:$0xff] %vm6164_vm2, %v6049_v56  ;;  %8024 = vrcp.f32 %v3537_v33  ;;  %v3534_v41 = vpop.xlane.xlu0 %3533  ;;  %v10640_v56 = vld [vmem:[#allocation12_spill] sm:$0xff] }
 0x288   : > { %v8013_v23 = vpop.eup %8012  ;;  %6177 = vst.msk [vmem:[%s10017_s28 + $0x60] sm:$0xff] %vm6164_vm2, %v6048_v38  ;;  %8026 = vrcp.f32 %v3534_v41  ;;  %v3718_v14 = vsel %vm2691_vm1, %v10640_v56, 0.0 }
 0x289   : > { %v8015_v52 = vpop.eup %8014  ;;  %v6043_v51 = vmul.f32 %v8013_v23, %v7303_v59  ;;  %3716 = vadd.xlane.f32.xlu1 %v3715_v22  ;;  %v7378_v59 = vpop.f32.mrf.mxu1  ;;  %v3745_v22 = vsel %vm2691_vm1, %v10641_v50, 0.0 }
 0x28a   : > { %v6042_v29 = vmul.f32 %v8015_v52, %v3964_v35  ;;  %3713 = vadd.xlane.f32.xlu0 %v3712_v32  ;;  %v3519_v63 = vpop.xlane.xlu1 %3518  ;;  %v10642_v32 = vld [vmem:[#allocation14_spill] sm:$0xff] }
 0x28b   : > { %6172 = vst.msk [vmem:[%s10017_s28 + $0x38] sm:$0xff] %vm6164_vm2, %v6043_v51  ;;  %8028 = vrcp.f32 %v3519_v63  ;;  %v3516_v44 = vpop.xlane.xlu0 %3515  ;;  %v4321_v35 = vpop.f32.mrf.mxu1 }
 0x28c   : > { %v8017_v15 = vpop.eup %8016  ;;  %6171 = vst.msk [vmem:[%s10017_s28 + $0x30] sm:$0xff] %vm6164_vm2, %v6042_v29  ;;  %8030 = vrcp.f32 %v3516_v44  ;;  %v3742_v29 = vsel %vm2691_vm1, %v10642_v32, 0.0 }
 0x28d   : > { %v8019_v40 = vpop.eup %8018  ;;  %v6051_v10 = vmul.f32 %v8017_v15, %v7331_v46  ;;  %3740 = vadd.xlane.f32.xlu1 %v3739_v18  ;;  %v7353_v46 = vpop.f32.mrf.mxu0 }
 0x28e   : > { %v6050_v55 = vmul.f32 %v8019_v40, %v4093_v57  ;;  %3737 = vadd.xlane.f32.xlu0 %v3736_v6  ;;  %v3543_v21 = vpop.xlane.xlu1 %3542  ;;  %v3751_v40 = vsel %vm2691_vm1, %v9795_v17, 0.0  ;;  %v3775_v17 = vsel %vm2691_vm1, %v9809_v60, 0.0  ;;  %v3757_v60 = vsel %vm2691_vm1, %v9841_v20, 0.0 }
 0x28f   : > { %6180 = vst.msk [vmem:[%s10017_s28 + $0x78] sm:$0xff] %vm6164_vm2, %v6051_v10  ;;  %8032 = vrcp.f32 %v3543_v21  ;;  %v3540_v7 = vpop.xlane.xlu0 %3539  ;;  %v7381_v10 = vpop.f32.mrf.mxu1  ;;  %v3781_v20 = vsel %vm2691_vm1, %v9827_v28, 0.0  ;;  %v3763_v28 = vsel %vm2691_vm1, %v9873_v2, 0.0  ;;  %v3769_v2 = vsel %vm2691_vm1, %v9905_v49, 0.0 }
 0x290   : > { %v8021_v37 = vpop.eup %8020  ;;  %6179 = vst.msk [vmem:[%s10017_s28 + $0x70] sm:$0xff] %vm6164_vm2, %v6050_v55  ;;  %8034 = vrcp.f32 %v3540_v7  ;;  %v3748_v55 = vsel %vm2691_vm1, %v9803_v0, 0.0  ;;  %v3787_v49 = vsel %vm2691_vm1, %v9859_v13, 0.0  ;;  %v3793_v13 = vsel %vm2691_vm1, %v9891_v27, 0.0 }
 0x291   : > { %v8023_v12 = vpop.eup %8022  ;;  %v6053_v19 = vmul.f32 %v8021_v37, %v7350_v47  ;;  %3722 = vadd.xlane.f32.xlu1 %v3721_v8  ;;  %v4202_v47 = vpop.f32.mrf.mxu0  ;;  %v3799_v27 = vsel %vm2691_vm1, %v9935_v43, 0.0  ;;  %v3805_v43 = vsel %vm2691_vm1, %v9963_v1, 0.0  ;;  %v3811_v1 = vsel %vm2691_vm1, %v9987_v42, 0.0 }
 0x292   : > { %v6052_v38 = vmul.f32 %v8023_v12, %v4192_v9  ;;  %3719 = vadd.xlane.f32.xlu0 %v3718_v14  ;;  %v3525_v33 = vpop.xlane.xlu1 %3524  ;;  %v4331_v9 = vpop.f32.mrf.mxu1  ;;  %v3817_v42 = vsel %vm2691_vm1, %v10001_v53, 0.0  ;;  %v3823_v53 = vsel %vm2691_vm1, %v9921_v25, 0.0  ;;  %v3829_v25 = vsel %vm2691_vm1, %v9949_v5, 0.0 }
 0x293   : > { %6182 = vst.msk [vmem:[%s10017_s28 + $0x88] sm:$0xff] %vm6164_vm2, %v6053_v19  ;;  %8036 = vrcp.f32 %v3525_v33  ;;  %v3522_v41 = vpop.xlane.xlu0 %3521  ;;  %v3772_v19 = vsel %vm2691_vm1, %v9798_v62, 0.0  ;;  %v3835_v5 = vsel %vm2691_vm1, %v9975_v61, 0.0  ;;  %v3841_v61 = vsel %vm2691_vm1, %v9999_v11, 0.0 }
 0x294   : > { %v8025_v23 = vpop.eup %8024  ;;  %6181 = vst.msk [vmem:[%s10017_s28 + $0x80] sm:$0xff] %vm6164_vm2, %v6052_v38  ;;  %8038 = vrcp.f32 %v3522_v41  ;;  %v7384_v50 = vpop.f32.mrf.mxu1 }
 0x295   : > { %v8027_v52 = vpop.eup %8026  ;;  %v6061_v51 = vmul.f32 %v8025_v23, %v7378_v59  ;;  %3746 = vadd.xlane.f32.xlu1 %v3745_v22  ;;  %v7356_v59 = vpop.f32.mrf.mxu0  ;;  %v3754_v22 = vsel %vm2691_vm1, %v9835_v31, 0.0 }
 0x296   : > { %v6060_v63 = vmul.f32 %v8027_v52, %v4321_v35  ;;  %3743 = vadd.xlane.f32.xlu0 %v3742_v29  ;;  %v3549_v44 = vpop.xlane.xlu1 %3548  ;;  %v4341_v29 = vpop.f32.mrf.mxu1 }
 0x297   : > { %6190 = vst.msk [vmem:[%s10017_s28 + $0xc8] sm:$0xff] %vm6164_vm2, %v6061_v51  ;;  %8040 = vrcp.f32 %v3549_v44  ;;  %v3546_v15 = vpop.xlane.xlu0 %3545  ;;  %v4212_v23 = vpop.f32.mrf.mxu0  ;;  %v3778_v44 = vsel %vm2691_vm1, %v9830_v45, 0.0 }
 0x298   : > { %v8029_v18 = vpop.eup %8028  ;;  %6189 = vst.msk [vmem:[%s10017_s28 + $0xc0] sm:$0xff] %vm6164_vm2, %v6060_v63  ;;  %8042 = vrcp.f32 %v3546_v15 }
 0x299   : > { %v8031_v57 = vpop.eup %8030  ;;  %v6055_v6 = vmul.f32 %v8029_v18, %v7353_v46  ;;  %3752 = vadd.xlane.f32.xlu1 %v3751_v40  ;;  %v7359_v63 = vpop.f32.mrf.mxu0 }
 0x29a   : > { %v6054_v21 = vmul.f32 %v8031_v57, %v4202_v47  ;;  %3749 = vadd.xlane.f32.xlu0 %v3748_v55  ;;  %v3531_v7 = vpop.xlane.xlu1 %3530  ;;  %v3760_v55 = vsel %vm2691_vm1, %v9867_v3, 0.0 }
 0x29b   : > { %6184 = vst.msk [vmem:[%s10017_s28 + $0x98] sm:$0xff] %vm6164_vm2, %v6055_v6  ;;  %8044 = vrcp.f32 %v3531_v7  ;;  %v3528_v37 = vpop.xlane.xlu0 %3527  ;;  %v7387_v6 = vpop.f32.mrf.mxu1 }
 0x29c   : > { %v8033_v8 = vpop.eup %8032  ;;  %6183 = vst.msk [vmem:[%s10017_s28 + $0x90] sm:$0xff] %vm6164_vm2, %v6054_v21  ;;  %8046 = vrcp.f32 %v3528_v37 }
 0x29d   : > { %v8035_v12 = vpop.eup %8034  ;;  %v6063_v0 = vmul.f32 %v8033_v8, %v7381_v10  ;;  %3776 = vadd.xlane.f32.xlu1 %v3775_v17  ;;  %v4222_v10 = vpop.f32.mrf.mxu0 }
 0x29e   : > { %v6062_v56 = vmul.f32 %v8035_v12, %v4331_v9  ;;  %3773 = vadd.xlane.f32.xlu0 %v3772_v19  ;;  %v3555_v14 = vpop.xlane.xlu1 %3554  ;;  %v4351_v12 = vpop.f32.mrf.mxu1 }
 0x29f   : > { %6192 = vst.msk [vmem:[%s10017_s28 + $0xd8] sm:$0xff] %vm6164_vm2, %v6063_v0  ;;  %8048 = vrcp.f32 %v3555_v14  ;;  %v3552_v38 = vpop.xlane.xlu0 %3551  ;;  %v7406_v9 = vpop.f32.mrf.mxu0 }
 0x2a0   : > { %v8037_v33 = vpop.eup %8036  ;;  %6191 = vst.msk [vmem:[%s10017_s28 + $0xd0] sm:$0xff] %vm6164_vm2, %v6062_v56  ;;  %8050 = vrcp.f32 %v3552_v38 }
 0x2a1   : > { %v8039_v41 = vpop.eup %8038  ;;  %v6057_v62 = vmul.f32 %v8037_v33, %v7356_v59  ;;  %3758 = vadd.xlane.f32.xlu1 %v3757_v60  ;;  %v3784_v59 = vsel %vm2691_vm1, %v9862_v4, 0.0  ;;  %v4450_v33 = vpop.f32.mrf.mxu0 }
 0x2a2   : > { %v6056_v52 = vmul.f32 %v8039_v41, %v4212_v23  ;;  %3755 = vadd.xlane.f32.xlu0 %v3754_v22  ;;  %v3561_v35 = vpop.xlane.xlu1 %3560  ;;  %v7434_v60 = vpop.f32.mrf.mxu1  ;;  %v3766_v41 = vsel %vm2691_vm1, %v9899_v54, 0.0 }
 0x2a3   : > { %6186 = vst.msk [vmem:[%s10017_s28 + $0xa8] sm:$0xff] %vm6164_vm2, %v6057_v62  ;;  %8052 = vrcp.f32 %v3561_v35  ;;  %v3558_v46 = vpop.xlane.xlu0 %3557 }
 0x2a4   : > { %v8041_v51 = vpop.eup %8040  ;;  %6185 = vst.msk [vmem:[%s10017_s28 + $0xa0] sm:$0xff] %vm6164_vm2, %v6056_v52  ;;  %8054 = vrcp.f32 %v3558_v46  ;;  %v4579_v35 = vpop.f32.mrf.mxu1 }
 0x2a5   : > { %v8043_v32 = vpop.eup %8042  ;;  %v6065_v31 = vmul.f32 %v8041_v51, %v7384_v50  ;;  %3782 = vadd.xlane.f32.xlu1 %v3781_v20  ;;  %v7409_v46 = vpop.f32.mrf.mxu0  ;;  %v3790_v51 = vsel %vm2691_vm1, %v9894_v48, 0.0 }
 0x2a6   : > { %v6064_v15 = vmul.f32 %v8043_v32, %v4341_v29  ;;  %3779 = vadd.xlane.f32.xlu0 %v3778_v44  ;;  %v3585_v18 = vpop.xlane.xlu1 %3584 }
 0x2a7   : > { %6194 = vst.msk [vmem:[%s10017_s28 + $0xe8] sm:$0xff] %vm6164_vm2, %v6065_v31  ;;  %8056 = vrcp.f32 %v3585_v18  ;;  %v3582_v40 = vpop.xlane.xlu0 %3581  ;;  %v4460_v44 = vpop.f32.mrf.mxu0  ;;  %v3796_v18 = vsel %vm2691_vm1, %v9929_v24, 0.0 }
 0x2a8   : > { %v8045_v57 = vpop.eup %8044  ;;  %6193 = vst.msk [vmem:[%s10017_s28 + $0xe0] sm:$0xff] %vm6164_vm2, %v6064_v15  ;;  %8058 = vrcp.f32 %v3582_v40  ;;  %v7437_v15 = vpop.f32.mrf.mxu1 }
 0x2a9   : > { %v8047_v47 = vpop.eup %8046  ;;  %v6059_v45 = vmul.f32 %v8045_v57, %v7359_v63  ;;  %3764 = vadd.xlane.f32.xlu1 %v3763_v28 }
 0x2aa   : > { %v6058_v21 = vmul.f32 %v8047_v47, %v4222_v10  ;;  %3761 = vadd.xlane.f32.xlu0 %v3760_v55  ;;  %v3567_v7 = vpop.xlane.xlu1 %3566  ;;  %v3802_v55 = vsel %vm2691_vm1, %v9957_v39, 0.0 }
 0x2ab   : > { %6188 = vst.msk [vmem:[%s10017_s28 + $0xb8] sm:$0xff] %vm6164_vm2, %v6059_v45  ;;  %8060 = vrcp.f32 %v3567_v7  ;;  %v3564_v37 = vpop.xlane.xlu0 %3563  ;;  %v7412_v45 = vpop.f32.mrf.mxu0 }
 0x2ac   : > { %v8049_v8 = vpop.eup %8048  ;;  %6187 = vst.msk [vmem:[%s10017_s28 + $0xb0] sm:$0xff] %vm6164_vm2, %v6058_v21  ;;  %8062 = vrcp.f32 %v3564_v37 }
 0x2ad   : > { %v8051_v17 = vpop.eup %8050  ;;  %v6067_v3 = vmul.f32 %v8049_v8, %v7387_v6  ;;  %3770 = vadd.xlane.f32.xlu1 %v3769_v2  ;;  %v4589_v6 = vpop.f32.mrf.mxu1 }
 0x2ae   : > { %v6066_v0 = vmul.f32 %v8051_v17, %v4351_v12  ;;  %3785 = vadd.xlane.f32.xlu0 %v3784_v59  ;;  %v3591_v19 = vpop.xlane.xlu1 %3590  ;;  %v4470_v17 = vpop.f32.mrf.mxu0 }
 0x2af   : > { %6196 = vst.msk [vmem:[%s10017_s28 + $0xf8] sm:$0xff] %vm6164_vm2, %v6067_v3  ;;  %8064 = vrcp.f32 %v3591_v19  ;;  %v3588_v56 = vpop.xlane.xlu0 %3587  ;;  %v7440_v12 = vpop.f32.mrf.mxu1 }
 0x2b0   : > { %v8053_v14 = vpop.eup %8052  ;;  %6195 = vst.msk [vmem:[%s10017_s28 + $0xf0] sm:$0xff] %vm6164_vm2, %v6066_v0  ;;  %8066 = vrcp.f32 %v3588_v56 }
 0x2b1   : > { %v8055_v38 = vpop.eup %8054  ;;  %v6069_v4 = vmul.f32 %v8053_v14, %v7406_v9  ;;  %3788 = vadd.xlane.f32.xlu1 %v3787_v49  ;;  %v3808_v9 = vsel %vm2691_vm1, %v9981_v36, 0.0  ;;  %v4599_v14 = vpop.f32.mrf.mxu1 }
 0x2b2   : > { %v6068_v23 = vmul.f32 %v8055_v38, %v4450_v33  ;;  %3767 = vadd.xlane.f32.xlu0 %v3766_v41  ;;  %v3573_v50 = vpop.xlane.xlu1 %3572  ;;  %v7415_v49 = vpop.f32.mrf.mxu0  ;;  %v3814_v38 = vsel %vm2691_vm1, %v10007_v30, 0.0 }
 0x2b3   : > { %6198 = vst.msk [vmem:[%s10017_s28 + $0x108] sm:$0xff] %vm6164_vm2, %v6069_v4  ;;  %8068 = vrcp.f32 %v3573_v50  ;;  %v3570_v62 = vpop.xlane.xlu0 %3569 }
 0x2b4   : > { %v8057_v22 = vpop.eup %8056  ;;  %6197 = vst.msk [vmem:[%s10017_s28 + $0x100] sm:$0xff] %vm6164_vm2, %v6068_v23  ;;  %8070 = vrcp.f32 %v3570_v62  ;;  %v4480_v50 = vpop.f32.mrf.mxu0 }
 0x2b5   : > { %v8059_v52 = vpop.eup %8058  ;;  %v6077_v54 = vmul.f32 %v8057_v22, %v7434_v60  ;;  %3794 = vadd.xlane.f32.xlu1 %v3793_v13  ;;  %v7443_v62 = vpop.f32.mrf.mxu1  ;;  %v3820_v22 = vsel %vm2691_vm1, %v9924_v34, 0.0 }
 0x2b6   : > { %v6076_v20 = vmul.f32 %v8059_v52, %v4579_v35  ;;  %3791 = vadd.xlane.f32.xlu0 %v3790_v51  ;;  %v3597_v32 = vpop.xlane.xlu1 %3596 }
 0x2b7   : > { %6206 = vst.msk [vmem:[%s10017_s28 + $0x148] sm:$0xff] %vm6164_vm2, %v6077_v54  ;;  %8072 = vrcp.f32 %v3597_v32  ;;  %v3594_v29 = vpop.xlane.xlu0 %3593  ;;  %v4609_v51 = vpop.f32.mrf.mxu1  ;;  %v3826_v32 = vsel %vm2691_vm1, %v9952_v16, 0.0 }
 0x2b8   : > { %v8061_v63 = vpop.eup %8060  ;;  %6205 = vst.msk [vmem:[%s10017_s28 + $0x140] sm:$0xff] %vm6164_vm2, %v6076_v20  ;;  %8074 = vrcp.f32 %v3594_v29  ;;  %v7462_v20 = vpop.f32.mrf.mxu0 }
 0x2b9   : > { %v8063_v31 = vpop.eup %8062  ;;  %v6071_v48 = vmul.f32 %v8061_v63, %v7409_v46  ;;  %3800 = vadd.xlane.f32.xlu1 %v3799_v27 }
 0x2ba   : > { %v6070_v40 = vmul.f32 %v8063_v31, %v4460_v44  ;;  %3797 = vadd.xlane.f32.xlu0 %v3796_v18  ;;  %v3579_v57 = vpop.xlane.xlu1 %3578  ;;  %v3832_v18 = vsel %vm2691_vm1, %v9977_v58, 0.0 }
 0x2bb   : > { %6200 = vst.msk [vmem:[%s10017_s28 + $0x118] sm:$0xff] %vm6164_vm2, %v6071_v48  ;;  %8076 = vrcp.f32 %v3579_v57  ;;  %v3576_v28 = vpop.xlane.xlu0 %3575  ;;  %v7490_v48 = vpop.f32.mrf.mxu1 }
 0x2bc   : > { %v8065_v47 = vpop.eup %8064  ;;  %6199 = vst.msk [vmem:[%s10017_s28 + $0x110] sm:$0xff] %vm6164_vm2, %v6070_v40  ;;  %8078 = vrcp.f32 %v3576_v28 }
 0x2bd   : > { %v8067_v10 = vpop.eup %8066  ;;  %v6079_v24 = vmul.f32 %v8065_v47, %v7437_v15  ;;  %3806 = vadd.xlane.f32.xlu1 %v3805_v43  ;;  %v4708_v15 = vpop.f32.mrf.mxu0 }
 0x2be   : > { %v6078_v21 = vmul.f32 %v8067_v10, %v4589_v6  ;;  %3803 = vadd.xlane.f32.xlu0 %v3802_v55  ;;  %v3603_v7 = vpop.xlane.xlu1 %3602  ;;  %v4837_v10 = vpop.f32.mrf.mxu1 }
 0x2bf   : > { %6208 = vst.msk [vmem:[%s10017_s28 + $0x158] sm:$0xff] %vm6164_vm2, %v6079_v24  ;;  %8080 = vrcp.f32 %v3603_v7  ;;  %v3600_v37 = vpop.xlane.xlu0 %3599  ;;  %v7465_v6 = vpop.f32.mrf.mxu0 }
 0x2c0   : > { %v8069_v8 = vpop.eup %8068  ;;  %6207 = vst.msk [vmem:[%s10017_s28 + $0x150] sm:$0xff] %vm6164_vm2, %v6078_v21  ;;  %8082 = vrcp.f32 %v3600_v37 }
 0x2c1   : > { %v8071_v2 = vpop.eup %8070  ;;  %v6073_v39 = vmul.f32 %v8069_v8, %v7412_v45  ;;  %3812 = vadd.xlane.f32.xlu1 %v3811_v1  ;;  %v3838_v45 = vsel %vm2691_vm1, %v10003_v26, 0.0  ;;  %v4718_v37 = vpop.f32.mrf.mxu0 }
 0x2c2   : > { %v6072_v3 = vmul.f32 %v8071_v2, %v4470_v17  ;;  %3809 = vadd.xlane.f32.xlu0 %v3808_v9  ;;  %v3609_v59 = vpop.xlane.xlu1 %3608  ;;  %v7493_v8 = vpop.f32.mrf.mxu1 }
 0x2c3   : > { %6202 = vst.msk [vmem:[%s10017_s28 + $0x128] sm:$0xff] %vm6164_vm2, %v6073_v39  ;;  %8084 = vrcp.f32 %v3609_v59  ;;  %v3606_v0 = vpop.xlane.xlu0 %3605 }
 0x2c4   : > { %v8073_v19 = vpop.eup %8072  ;;  %6201 = vst.msk [vmem:[%s10017_s28 + $0x120] sm:$0xff] %vm6164_vm2, %v6072_v3  ;;  %8086 = vrcp.f32 %v3606_v0  ;;  %v4847_v9 = vpop.f32.mrf.mxu1 }
 0x2c5   : > { %v8075_v56 = vpop.eup %8074  ;;  %v6081_v36 = vmul.f32 %v8073_v19, %v7440_v12  ;;  %3818 = vadd.xlane.f32.xlu1 %v3817_v42  ;;  %v7468_v3 = vpop.f32.mrf.mxu0 }
 0x2c6   : > { %v6080_v33 = vmul.f32 %v8075_v56, %v4599_v14  ;;  %3815 = vadd.xlane.f32.xlu0 %v3814_v38  ;;  %v3633_v60 = vpop.xlane.xlu1 %3632 }
 0x2c7   : > { %6210 = vst.msk [vmem:[%s10017_s28 + $0x168] sm:$0xff] %vm6164_vm2, %v6081_v36  ;;  %8088 = vrcp.f32 %v3633_v60  ;;  %v3630_v4 = vpop.xlane.xlu0 %3629  ;;  %v7496_v36 = vpop.f32.mrf.mxu1 }
 0x2c8   : > { %v8077_v41 = vpop.eup %8076  ;;  %6209 = vst.msk [vmem:[%s10017_s28 + $0x160] sm:$0xff] %vm6164_vm2, %v6080_v33  ;;  %8090 = vrcp.f32 %v3630_v4 }
 0x2c9   : > { %v8079_v23 = vpop.eup %8078  ;;  %v6075_v30 = vmul.f32 %v8077_v41, %v7415_v49  ;;  %3824 = vadd.xlane.f32.xlu1 %v3823_v53  ;;  %v4728_v49 = vpop.f32.mrf.mxu0 }
 0x2ca   : > { %v6074_v13 = vmul.f32 %v8079_v23, %v4480_v50  ;;  %3821 = vadd.xlane.f32.xlu0 %v3820_v22  ;;  %v3615_v52 = vpop.xlane.xlu1 %3614  ;;  %v4857_v23 = vpop.f32.mrf.mxu1 }
 0x2cb   : > { %6204 = vst.msk [vmem:[%s10017_s28 + $0x138] sm:$0xff] %vm6164_vm2, %v6075_v30  ;;  %8092 = vrcp.f32 %v3615_v52  ;;  %v3612_v35 = vpop.xlane.xlu0 %3611  ;;  %v7471_v50 = vpop.f32.mrf.mxu0 }
 0x2cc   : > { %v8081_v46 = vpop.eup %8080  ;;  %6203 = vst.msk [vmem:[%s10017_s28 + $0x130] sm:$0xff] %vm6164_vm2, %v6074_v13  ;;  %8094 = vrcp.f32 %v3612_v35 }
 0x2cd   : > { %v8083_v54 = vpop.eup %8082  ;;  %v6083_v34 = vmul.f32 %v8081_v46, %v7443_v62  ;;  %3830 = vadd.xlane.f32.xlu1 %v3829_v25  ;;  %v4738_v46 = vpop.f32.mrf.mxu0 }
 0x2ce   : > { %v6082_v29 = vmul.f32 %v8083_v54, %v4609_v51  ;;  %3827 = vadd.xlane.f32.xlu0 %v3826_v32  ;;  %v3639_v63 = vpop.xlane.xlu1 %3638  ;;  %v7499_v25 = vpop.f32.mrf.mxu1 }
 0x2cf   : > { %6212 = vst.msk [vmem:[%s10017_s28 + $0x178] sm:$0xff] %vm6164_vm2, %v6083_v34  ;;  %8096 = vrcp.f32 %v3639_v63  ;;  %v3636_v27 = vpop.xlane.xlu0 %3635 }
 0x2d0   : > { %v8085_v31 = vpop.eup %8084  ;;  %6211 = vst.msk [vmem:[%s10017_s28 + $0x170] sm:$0xff] %vm6164_vm2, %v6082_v29  ;;  %8098 = vrcp.f32 %v3636_v27  ;;  %v4867_v63 = vpop.f32.mrf.mxu1 }
 0x2d1   : > { %v8087_v44 = vpop.eup %8086  ;;  %v6085_v16 = vmul.f32 %v8085_v31, %v7462_v20  ;;  %3836 = vadd.xlane.f32.xlu1 %v3835_v5  ;;  %v7518_v27 = vpop.f32.mrf.mxu0 }
 0x2d2   : > { %v6084_v40 = vmul.f32 %v8087_v44, %v4708_v15  ;;  %3833 = vadd.xlane.f32.xlu0 %v3832_v18  ;;  %v3621_v57 = vpop.xlane.xlu1 %3620 }
 0x2d3   : > { %6214 = vst.msk [vmem:[%s10017_s28 + $0x188] sm:$0xff] %vm6164_vm2, %v6085_v16  ;;  %8100 = vrcp.f32 %v3621_v57  ;;  %v3618_v28 = vpop.xlane.xlu0 %3617  ;;  %v4966_v18 = vpop.f32.mrf.mxu0 }
 0x2d4   : > { %v8089_v47 = vpop.eup %8088  ;;  %6213 = vst.msk [vmem:[%s10017_s28 + $0x180] sm:$0xff] %vm6164_vm2, %v6084_v40  ;;  %8102 = vrcp.f32 %v3618_v28  ;;  %v7546_v40 = vpop.f32.mrf.mxu1 }
 0x2d5   : > { %v8091_v43 = vpop.eup %8090  ;;  %v6093_v58 = vmul.f32 %v8089_v47, %v7490_v48  ;;  %3842 = vadd.xlane.f32.xlu1 %v3841_v61 }
 0x2d6   : > { %v6092_v24 = vmul.f32 %v8091_v43, %v4837_v10  ;;  %3839 = vadd.xlane.f32.xlu0 %v3838_v45  ;;  %v3645_v55 = vpop.xlane.xlu1 %3644 }
 0x2d7   : > { %6222 = vst.msk [vmem:[%s10017_s28 + $0x1c8] sm:$0xff] %vm6164_vm2, %v6093_v58  ;;  %8104 = vrcp.f32 %v3645_v55  ;;  %v3642_v21 = vpop.xlane.xlu0 %3641  ;;  %v7521_v58 = vpop.f32.mrf.mxu0 }
 0x2d8   : > { %v8093_v7 = vpop.eup %8092  ;;  %6221 = vst.msk [vmem:[%s10017_s28 + $0x1c0] sm:$0xff] %vm6164_vm2, %v6092_v24  ;;  %8106 = vrcp.f32 %v3642_v21 }
 0x2d9   : > { %v8095_v11 = vpop.eup %8094  ;;  %v6087_v1 = vmul.f32 %v8093_v7, %v7465_v6  ;;  %v5095_v6 = vpop.f32.mrf.mxu1 }
 0x2da   : > { %v6086_v2 = vmul.f32 %v8095_v11, %v4718_v37  ;;  %v3627_v26 = vpop.xlane.xlu1 %3626  ;;  %v4976_v37 = vpop.f32.mrf.mxu0 }
 0x2db   : > { %6216 = vst.msk [vmem:[%s10017_s28 + $0x198] sm:$0xff] %vm6164_vm2, %v6087_v1  ;;  %8108 = vrcp.f32 %v3627_v26  ;;  %v3624_v17 = vpop.xlane.xlu0 %3623 }
 0x2dc   : > { %v8097_v12 = vpop.eup %8096  ;;  %6215 = vst.msk [vmem:[%s10017_s28 + $0x190] sm:$0xff] %vm6164_vm2, %v6086_v2  ;;  %8110 = vrcp.f32 %v3624_v17 }
 0x2dd   : > { %v8099_v39 = vpop.eup %8098  ;;  %v6095_v59 = vmul.f32 %v8097_v12, %v7493_v8  ;;  %v7549_v8 = vpop.f32.mrf.mxu1 }
 0x2de   : > { %v6094_v0 = vmul.f32 %v8099_v39, %v4847_v9  ;;  %v3651_v19 = vpop.xlane.xlu1 %3650 }
 0x2df   : > { %6224 = vst.msk [vmem:[%s10017_s28 + $0x1d8] sm:$0xff] %vm6164_vm2, %v6095_v59  ;;  %8112 = vrcp.f32 %v3651_v19  ;;  %v3648_v42 = vpop.xlane.xlu0 %3647  ;;  %v5105_v9 = vpop.f32.mrf.mxu1 }
 0x2e0   : > { %v8101_v56 = vpop.eup %8100  ;;  %6223 = vst.msk [vmem:[%s10017_s28 + $0x1d0] sm:$0xff] %vm6164_vm2, %v6094_v0  ;;  %8114 = vrcp.f32 %v3648_v42 }
 0x2e1   : > { %v8103_v14 = vpop.eup %8102  ;;  %v6089_v38 = vmul.f32 %v8101_v56, %v7468_v3  ;;  %v7524_v3 = vpop.f32.mrf.mxu0 }
 0x2e2   : > { %v6088_v33 = vmul.f32 %v8103_v14, %v4728_v49  ;;  %v3657_v60 = vpop.xlane.xlu1 %3656 }
 0x2e3   : > { %6218 = vst.msk [vmem:[%s10017_s28 + $0x1a8] sm:$0xff] %vm6164_vm2, %v6089_v38  ;;  %8116 = vrcp.f32 %v3657_v60  ;;  %v3654_v4 = vpop.xlane.xlu0 %3653  ;;  %v4986_v49 = vpop.f32.mrf.mxu0 }
 0x2e4   : > { %v8105_v41 = vpop.eup %8104  ;;  %6217 = vst.msk [vmem:[%s10017_s28 + $0x1a0] sm:$0xff] %vm6164_vm2, %v6088_v33  ;;  %8118 = vrcp.f32 %v3654_v4 }
 0x2e5   : > { %v8107_v53 = vpop.eup %8106  ;;  %v6097_v62 = vmul.f32 %v8105_v41, %v7496_v36  ;;  %v7552_v36 = vpop.f32.mrf.mxu1 }
 0x2e6   : > { %v6096_v30 = vmul.f32 %v8107_v53, %v4857_v23  ;;  %v3681_v22 = vpop.xlane.xlu1 %3680 }
 0x2e7   : > { %6226 = vst.msk [vmem:[%s10017_s28 + $0x1e8] sm:$0xff] %vm6164_vm2, %v6097_v62  ;;  %8120 = vrcp.f32 %v3681_v22  ;;  %v3678_v13 = vpop.xlane.xlu0 %3677  ;;  %v5115_v23 = vpop.f32.mrf.mxu1 }
 0x2e8   : > { %v8109_v52 = vpop.eup %8108  ;;  %6225 = vst.msk [vmem:[%s10017_s28 + $0x1e0] sm:$0xff] %vm6164_vm2, %v6096_v30  ;;  %8122 = vrcp.f32 %v3678_v13  ;;  %v7527_v62 = vpop.f32.mrf.mxu0 }
 0x2e9   : > { %v8111_v35 = vpop.eup %8110  ;;  %v6091_v54 = vmul.f32 %v8109_v52, %v7471_v50 }
 0x2ea   : > { %v6090_v51 = vmul.f32 %v8111_v35, %v4738_v46  ;;  %v3663_v20 = vpop.xlane.xlu1 %3662  ;;  %v7555_v35 = vpop.f32.mrf.mxu1 }
 0x2eb   : > { %6220 = vst.msk [vmem:[%s10017_s28 + $0x1b8] sm:$0xff] %vm6164_vm2, %v6091_v54  ;;  %8124 = vrcp.f32 %v3663_v20  ;;  %v3660_v34 = vpop.xlane.xlu0 %3659  ;;  %v4996_v54 = vpop.f32.mrf.mxu0 }
 0x2ec   : > { %v8113_v32 = vpop.eup %8112  ;;  %6219 = vst.msk [vmem:[%s10017_s28 + $0x1b0] sm:$0xff] %vm6164_vm2, %v6090_v51  ;;  %8126 = vrcp.f32 %v3660_v34 }
 0x2ed   : > { %v8115_v29 = vpop.eup %8114  ;;  %v6099_v31 = vmul.f32 %v8113_v32, %v7499_v25 }
 0x2ee   : > { %v6098_v5 = vmul.f32 %v8115_v29, %v4867_v63  ;;  %v3687_v44 = vpop.xlane.xlu1 %3686  ;;  %v5125_v29 = vpop.f32.mrf.mxu1 }
 0x2ef   : > { %6228 = vst.msk [vmem:[%s10017_s28 + $0x1f8] sm:$0xff] %vm6164_vm2, %v6099_v31  ;;  %8128 = vrcp.f32 %v3687_v44  ;;  %v3684_v15 = vpop.xlane.xlu0 %3683  ;;  %v7574_v31 = vpop.f32.mrf.mxu0 }
 0x2f0   : > { %v8117_v48 = vpop.eup %8116  ;;  %6227 = vst.msk [vmem:[%s10017_s28 + $0x1f0] sm:$0xff] %vm6164_vm2, %v6098_v5  ;;  %8130 = vrcp.f32 %v3684_v15 }
 0x2f1   : > { %v8119_v16 = vpop.eup %8118  ;;  %v6101_v57 = vmul.f32 %v8117_v48, %v7518_v27 }
 0x2f2   : > { %v6100_v28 = vmul.f32 %v8119_v16, %v4966_v18  ;;  %v3669_v47 = vpop.xlane.xlu1 %3668  ;;  %v7602_v16 = vpop.f32.mrf.mxu1 }
 0x2f3   : > { %6230 = vst.msk [vmem:[%s10017_s28 + $0x208] sm:$0xff] %vm6164_vm2, %v6101_v57  ;;  %8132 = vrcp.f32 %v3669_v47  ;;  %v3666_v61 = vpop.xlane.xlu0 %3665  ;;  %v5224_v57 = vpop.f32.mrf.mxu0 }
 0x2f4   : > { %v8121_v43 = vpop.eup %8120  ;;  %6229 = vst.msk [vmem:[%s10017_s28 + $0x200] sm:$0xff] %vm6164_vm2, %v6100_v28  ;;  %8134 = vrcp.f32 %v3666_v61 }
 0x2f5   : > { %v8123_v10 = vpop.eup %8122  ;;  %v6109_v45 = vmul.f32 %v8121_v43, %v7546_v40 }
 0x2f6   : > { %v6108_v24 = vmul.f32 %v8123_v10, %v5095_v6  ;;  %v3693_v55 = vpop.xlane.xlu1 %3692  ;;  %v5353_v10 = vpop.f32.mrf.mxu1 }
 0x2f7   : > { %6238 = vst.msk [vmem:[%s10017_s28 + $0x248] sm:$0xff] %vm6164_vm2, %v6109_v45  ;;  %8136 = vrcp.f32 %v3693_v55  ;;  %v3690_v21 = vpop.xlane.xlu0 %3689  ;;  %v7577_v45 = vpop.f32.mrf.mxu0 }
 0x2f8   : > { %v8125_v7 = vpop.eup %8124  ;;  %6237 = vst.msk [vmem:[%s10017_s28 + $0x240] sm:$0xff] %vm6164_vm2, %v6108_v24  ;;  %8138 = vrcp.f32 %v3690_v21 }
 0x2f9   : > { %v8127_v11 = vpop.eup %8126  ;;  %v6103_v1 = vmul.f32 %v8125_v7, %v7521_v58 }
 0x2fa   : > { %v6102_v2 = vmul.f32 %v8127_v11, %v4976_v37  ;;  %v3675_v26 = vpop.xlane.xlu1 %3674  ;;  %v7605_v11 = vpop.f32.mrf.mxu1 }
 0x2fb   : > { %6232 = vst.msk [vmem:[%s10017_s28 + $0x218] sm:$0xff] %vm6164_vm2, %v6103_v1  ;;  %8140 = vrcp.f32 %v3675_v26  ;;  %v3672_v12 = vpop.xlane.xlu0 %3671  ;;  %v5234_v1 = vpop.f32.mrf.mxu0 }
 0x2fc   : > { %v8129_v17 = vpop.eup %8128  ;;  %6231 = vst.msk [vmem:[%s10017_s28 + $0x210] sm:$0xff] %vm6164_vm2, %v6102_v2  ;;  %8142 = vrcp.f32 %v3672_v12 }
 0x2fd   : > { %v8131_v39 = vpop.eup %8130  ;;  %v6111_v59 = vmul.f32 %v8129_v17, %v7549_v8 }
 0x2fe   : > { %v6110_v0 = vmul.f32 %v8131_v39, %v5105_v9  ;;  %v3699_v19 = vpop.xlane.xlu1 %3698  ;;  %v5363_v39 = vpop.f32.mrf.mxu1 }
 0x2ff   : > { %6240 = vst.msk [vmem:[%s10017_s28 + $0x258] sm:$0xff] %vm6164_vm2, %v6111_v59  ;;  %8144 = vrcp.f32 %v3699_v19  ;;  %v3696_v56 = vpop.xlane.xlu0 %3695  ;;  %v7580_v59 = vpop.f32.mrf.mxu0 }
 0x300   : > { %v8133_v42 = vpop.eup %8132  ;;  %6239 = vst.msk [vmem:[%s10017_s28 + $0x250] sm:$0xff] %vm6164_vm2, %v6110_v0  ;;  %8146 = vrcp.f32 %v3696_v56 }
 0x301   : > { %v8135_v14 = vpop.eup %8134  ;;  %v6105_v38 = vmul.f32 %v8133_v42, %v7524_v3 }
 0x302   : > { %v6104_v33 = vmul.f32 %v8135_v14, %v4986_v49  ;;  %v3705_v60 = vpop.xlane.xlu1 %3704  ;;  %v7608_v14 = vpop.f32.mrf.mxu1 }
 0x303   : > { %6234 = vst.msk [vmem:[%s10017_s28 + $0x228] sm:$0xff] %vm6164_vm2, %v6105_v38  ;;  %8148 = vrcp.f32 %v3705_v60  ;;  %v3702_v41 = vpop.xlane.xlu0 %3701  ;;  %v5244_v38 = vpop.f32.mrf.mxu0 }
 0x304   : > { %v8137_v4 = vpop.eup %8136  ;;  %6233 = vst.msk [vmem:[%s10017_s28 + $0x220] sm:$0xff] %vm6164_vm2, %v6104_v33  ;;  %8150 = vrcp.f32 %v3702_v41 }
 0x305   : > { %v8139_v53 = vpop.eup %8138  ;;  %v6113_v50 = vmul.f32 %v8137_v4, %v7552_v36 }
 0x306   : > { %v6112_v30 = vmul.f32 %v8139_v53, %v5115_v23  ;;  %v3729_v22 = vpop.xlane.xlu1 %3728  ;;  %v5373_v53 = vpop.f32.mrf.mxu1 }
 0x307   : > { %6242 = vst.msk [vmem:[%s10017_s28 + $0x268] sm:$0xff] %vm6164_vm2, %v6113_v50  ;;  %8152 = vrcp.f32 %v3729_v22  ;;  %v3726_v52 = vpop.xlane.xlu0 %3725 }
 0x308   : > { %v8141_v13 = vpop.eup %8140  ;;  %6241 = vst.msk [vmem:[%s10017_s28 + $0x260] sm:$0xff] %vm6164_vm2, %v6112_v30  ;;  %8154 = vrcp.f32 %v3726_v52 }
 0x309   : > { %v6107_v46 = vmul.f32 %v8141_v13, %v7527_v62  ;;  %v8143_v25 = vpop.eup %8142  ;;  %v7583_v62 = vpop.f32.mrf.mxu0 }
 0x30a   : > { %v3711_v51 = vpop.xlane.xlu1 %3710  ;;  %v6106_v20 = vmul.f32 %v8143_v25, %v4996_v54 }
 0x30b   : > { %6236 = vst.msk [vmem:[%s10017_s28 + $0x238] sm:$0xff] %vm6164_vm2, %v6107_v46  ;;  %8156 = vrcp.f32 %v3711_v51  ;;  %v3708_v32 = vpop.xlane.xlu0 %3707  ;;  %v5254_v54 = vpop.f32.mrf.mxu0 }
 0x30c   : > { %v8145_v34 = vpop.eup %8144  ;;  %6235 = vst.msk [vmem:[%s10017_s28 + $0x230] sm:$0xff] %vm6164_vm2, %v6106_v20  ;;  %8158 = vrcp.f32 %v3708_v32 }
 0x30d   : > { %v6115_v63 = vmul.f32 %v8145_v34, %v7555_v35  ;;  %v8147_v27 = vpop.eup %8146  ;;  %v7611_v35 = vpop.f32.mrf.mxu1 }
 0x30e   : > { %v3735_v5 = vpop.xlane.xlu1 %3734  ;;  %v6114_v44 = vmul.f32 %v8147_v27, %v5125_v29 }
 0x30f   : > { %6244 = vst.msk [vmem:[%s10017_s28 + $0x278] sm:$0xff] %vm6164_vm2, %v6115_v63  ;;  %8160 = vrcp.f32 %v3735_v5  ;;  %v3732_v48 = vpop.xlane.xlu0 %3731  ;;  %v5383_v29 = vpop.f32.mrf.mxu1 }
 0x310   : > { %v8149_v15 = vpop.eup %8148  ;;  %6243 = vst.msk [vmem:[%s10017_s28 + $0x270] sm:$0xff] %vm6164_vm2, %v6114_v44  ;;  %8162 = vrcp.f32 %v3732_v48 }
 0x311   : > { %v6117_v18 = vmul.f32 %v8149_v15, %v7574_v31  ;;  %v8151_v40 = vpop.eup %8150  ;;  %v7630_v31 = vpop.f32.mrf.mxu0 }
 0x312   : > { %v3717_v28 = vpop.xlane.xlu1 %3716  ;;  %v6116_v47 = vmul.f32 %v8151_v40, %v5224_v57 }
 0x313   : > { %6246 = vst.msk [vmem:[%s10017_s28 + $0x288] sm:$0xff] %vm6164_vm2, %v6117_v18  ;;  %8164 = vrcp.f32 %v3717_v28  ;;  %v3714_v43 = vpop.xlane.xlu0 %3713  ;;  %v5482_v57 = vpop.f32.mrf.mxu0 }
 0x314   : > { %v8153_v61 = vpop.eup %8152  ;;  %6245 = vst.msk [vmem:[%s10017_s28 + $0x280] sm:$0xff] %vm6164_vm2, %v6116_v47  ;;  %8166 = vrcp.f32 %v3714_v43 }
 0x315   : > { %v6125_v6 = vmul.f32 %v8153_v61, %v7602_v16  ;;  %v8155_v58 = vpop.eup %8154  ;;  %v7658_v16 = vpop.f32.mrf.mxu1 }
 0x316   : > { %v3741_v24 = vpop.xlane.xlu1 %3740  ;;  %v6124_v55 = vmul.f32 %v8155_v58, %v5353_v10 }
 0x317   : > { %6254 = vst.msk [vmem:[%s10017_s28 + $0x2c8] sm:$0xff] %vm6164_vm2, %v6125_v6  ;;  %8168 = vrcp.f32 %v3741_v24  ;;  %v3738_v7 = vpop.xlane.xlu0 %3737  ;;  %v5611_v10 = vpop.f32.mrf.mxu1 }
 0x318   : > { %v8157_v21 = vpop.eup %8156  ;;  %6253 = vst.msk [vmem:[%s10017_s28 + $0x2c0] sm:$0xff] %vm6164_vm2, %v6124_v55  ;;  %8170 = vrcp.f32 %v3738_v7 }
 0x319   : > { %v6119_v37 = vmul.f32 %v8157_v21, %v7577_v45  ;;  %v8159_v8 = vpop.eup %8158  ;;  %v7633_v45 = vpop.f32.mrf.mxu0 }
 0x31a   : > { %v3723_v2 = vpop.xlane.xlu1 %3722  ;;  %v6118_v26 = vmul.f32 %v8159_v8, %v5234_v1 }
 0x31b   : > { %6248 = vst.msk [vmem:[%s10017_s28 + $0x298] sm:$0xff] %vm6164_vm2, %v6119_v37  ;;  %8172 = vrcp.f32 %v3723_v2  ;;  %v3720_v12 = vpop.xlane.xlu0 %3719  ;;  %v5492_v1 = vpop.f32.mrf.mxu0 }
 0x31c   : > { %v8161_v17 = vpop.eup %8160  ;;  %6247 = vst.msk [vmem:[%s10017_s28 + $0x290] sm:$0xff] %vm6164_vm2, %v6118_v26  ;;  %8174 = vrcp.f32 %v3720_v12 }
 0x31d   : > { %v6127_v9 = vmul.f32 %v8161_v17, %v7605_v11  ;;  %v8163_v3 = vpop.eup %8162  ;;  %v7661_v11 = vpop.f32.mrf.mxu1 }
 0x31e   : > { %v3747_v0 = vpop.xlane.xlu1 %3746  ;;  %v6126_v19 = vmul.f32 %v8163_v3, %v5363_v39  ;;  %v7636_v12 = vpop.f32.mrf.mxu0 }
 0x31f   : > { %6256 = vst.msk [vmem:[%s10017_s28 + $0x2d8] sm:$0xff] %vm6164_vm2, %v6127_v9  ;;  %8176 = vrcp.f32 %v3747_v0  ;;  %v3744_v56 = vpop.xlane.xlu0 %3743 }
 0x320   : > { %v8165_v42 = vpop.eup %8164  ;;  %6255 = vst.msk [vmem:[%s10017_s28 + $0x2d0] sm:$0xff] %vm6164_vm2, %v6126_v19  ;;  %8178 = vrcp.f32 %v3744_v56  ;;  %v5502_v56 = vpop.f32.mrf.mxu0 }
 0x321   : > { %v6121_v49 = vmul.f32 %v8165_v42, %v7580_v59  ;;  %v8167_v36 = vpop.eup %8166  ;;  %v5621_v59 = vpop.f32.mrf.mxu1 }
 0x322   : > { %v3753_v33 = vpop.xlane.xlu1 %3752  ;;  %v6120_v60 = vmul.f32 %v8167_v36, %v5244_v38 }
 0x323   : > { %6250 = vst.msk [vmem:[%s10017_s28 + $0x2a8] sm:$0xff] %vm6164_vm2, %v6121_v49  ;;  %8180 = vrcp.f32 %v3753_v33  ;;  %v3750_v41 = vpop.xlane.xlu0 %3749  ;;  %v7664_v49 = vpop.f32.mrf.mxu1 }
 0x324   : > { %v8169_v4 = vpop.eup %8168  ;;  %6249 = vst.msk [vmem:[%s10017_s28 + $0x2a0] sm:$0xff] %vm6164_vm2, %v6120_v60  ;;  %8182 = vrcp.f32 %v3750_v41  ;;  %v7639_v33 = vpop.f32.mrf.mxu0 }
 0x325   : > { %v6129_v23 = vmul.f32 %v8169_v4, %v7608_v14  ;;  %v8171_v50 = vpop.eup %8170 }
 0x326   : > { %v3777_v30 = vpop.xlane.xlu1 %3776  ;;  %v6128_v22 = vmul.f32 %v8171_v50, %v5373_v53 }
 0x327   : > { %6258 = vst.msk [vmem:[%s10017_s28 + $0x2e8] sm:$0xff] %vm6164_vm2, %v6129_v23  ;;  %8184 = vrcp.f32 %v3777_v30  ;;  %v3774_v52 = vpop.xlane.xlu0 %3773  ;;  %v5631_v23 = vpop.f32.mrf.mxu1 }
 0x328   : > { %v8173_v13 = vpop.eup %8172  ;;  %6257 = vst.msk [vmem:[%s10017_s28 + $0x2e0] sm:$0xff] %vm6164_vm2, %v6128_v22  ;;  %8186 = vrcp.f32 %v3774_v52  ;;  %v5512_v30 = vpop.f32.mrf.mxu0 }
 0x329   : > { %v6123_v46 = vmul.f32 %v8173_v13, %v7583_v62  ;;  %v8175_v25 = vpop.eup %8174 }
 0x32a   : > { %v3759_v51 = vpop.xlane.xlu1 %3758  ;;  %v6122_v20 = vmul.f32 %v8175_v25, %v5254_v54  ;;  %v7667_v25 = vpop.f32.mrf.mxu1 }
 0x32b   : > { %6252 = vst.msk [vmem:[%s10017_s28 + $0x2b8] sm:$0xff] %vm6164_vm2, %v6123_v46  ;;  %8188 = vrcp.f32 %v3759_v51  ;;  %v3756_v32 = vpop.xlane.xlu0 %3755 }
 0x32c   : > { %v8177_v34 = vpop.eup %8176  ;;  %6251 = vst.msk [vmem:[%s10017_s28 + $0x2b0] sm:$0xff] %vm6164_vm2, %v6122_v20  ;;  %8190 = vrcp.f32 %v3756_v32 }
 0x32d   : > { %v6131_v63 = vmul.f32 %v8177_v34, %v7611_v35  ;;  %v8179_v27 = vpop.eup %8178  ;;  %v7686_v35 = vpop.f32.mrf.mxu0 }
 0x32e   : > { %v3783_v5 = vpop.xlane.xlu1 %3782  ;;  %v6130_v44 = vmul.f32 %v8179_v27, %v5383_v29  ;;  %v5641_v27 = vpop.f32.mrf.mxu1 }
 0x32f   : > { %6260 = vst.msk [vmem:[%s10017_s28 + $0x2f8] sm:$0xff] %vm6164_vm2, %v6131_v63  ;;  %8192 = vrcp.f32 %v3783_v5  ;;  %v3780_v48 = vpop.xlane.xlu0 %3779  ;;  %v5740_v29 = vpop.f32.mrf.mxu0 }
 0x330   : > { %v8181_v15 = vpop.eup %8180  ;;  %6259 = vst.msk [vmem:[%s10017_s28 + $0x2f0] sm:$0xff] %vm6164_vm2, %v6130_v44  ;;  %8194 = vrcp.f32 %v3780_v48 }
 0x331   : > { %v6133_v18 = vmul.f32 %v8181_v15, %v7630_v31  ;;  %v8183_v40 = vpop.eup %8182  ;;  %v7689_v44 = vpop.f32.mrf.mxu0 }
 0x332   : > { %v3765_v28 = vpop.xlane.xlu1 %3764  ;;  %v6132_v47 = vmul.f32 %v8183_v40, %v5482_v57 }
 0x333   : > { %6262 = vst.msk [vmem:[%s10017_s28 + $0x308] sm:$0xff] %vm6164_vm2, %v6133_v18  ;;  %8196 = vrcp.f32 %v3765_v28  ;;  %v3762_v43 = vpop.xlane.xlu0 %3761  ;;  %v5750_v28 = vpop.f32.mrf.mxu0 }
 0x334   : > { %v8185_v61 = vpop.eup %8184  ;;  %6261 = vst.msk [vmem:[%s10017_s28 + $0x300] sm:$0xff] %vm6164_vm2, %v6132_v47  ;;  %8198 = vrcp.f32 %v3762_v43 }
 0x335   : > { %v6141_v6 = vmul.f32 %v8185_v61, %v7658_v16  ;;  %v8187_v58 = vpop.eup %8186 }
 0x336   : > { %v3771_v24 = vpop.xlane.xlu1 %3770  ;;  %v6140_v55 = vmul.f32 %v8187_v58, %v5611_v10  ;;  %v7692_v10 = vpop.f32.mrf.mxu0 }
 0x337   : > { %6270 = vst.msk [vmem:[%s10017_s28 + $0x348] sm:$0xff] %vm6164_vm2, %v6141_v6  ;;  %8200 = vrcp.f32 %v3771_v24  ;;  %v3786_v7 = vpop.xlane.xlu0 %3785 }
 0x338   : > { %v8189_v21 = vpop.eup %8188  ;;  %6269 = vst.msk [vmem:[%s10017_s28 + $0x340] sm:$0xff] %vm6164_vm2, %v6140_v55  ;;  %8202 = vrcp.f32 %v3786_v7  ;;  %v7714_v55 = vpop.f32.mrf.mxu1 }
 0x339   : > { %v6135_v37 = vmul.f32 %v8189_v21, %v7633_v45  ;;  %v8191_v8 = vpop.eup %8190 }
 0x33a   : > { %v3789_v2 = vpop.xlane.xlu1 %3788  ;;  %v6134_v26 = vmul.f32 %v8191_v8, %v5492_v1 }
 0x33b   : > { %6264 = vst.msk [vmem:[%s10017_s28 + $0x318] sm:$0xff] %vm6164_vm2, %v6135_v37  ;;  %8204 = vrcp.f32 %v3789_v2  ;;  %v3768_v39 = vpop.xlane.xlu0 %3767 }
 0x33c   : > { %v8193_v17 = vpop.eup %8192  ;;  %6263 = vst.msk [vmem:[%s10017_s28 + $0x310] sm:$0xff] %vm6164_vm2, %v6134_v26  ;;  %8206 = vrcp.f32 %v3768_v39 }
 0x33d   : > { %v6143_v9 = vmul.f32 %v8193_v17, %v7661_v11  ;;  %v8195_v3 = vpop.eup %8194  ;;  %v5760_v11 = vpop.f32.mrf.mxu0 }
 0x33e   : > { %v3795_v0 = vpop.xlane.xlu1 %3794  ;;  %v6142_v19 = vmul.f32 %v8195_v3, %v5621_v59  ;;  %v5869_v17 = vpop.f32.mrf.mxu1 }
 0x33f   : > { %6272 = vst.msk [vmem:[%s10017_s28 + $0x358] sm:$0xff] %vm6164_vm2, %v6143_v9  ;;  %8208 = vrcp.f32 %v3795_v0  ;;  %v3792_v14 = vpop.xlane.xlu0 %3791  ;;  %v7695_v2 = vpop.f32.mrf.mxu0 }
 0x340   : > { %v8197_v42 = vpop.eup %8196  ;;  %6271 = vst.msk [vmem:[%s10017_s28 + $0x350] sm:$0xff] %vm6164_vm2, %v6142_v19  ;;  %8210 = vrcp.f32 %v3792_v14  ;;  %v7717_v3 = vpop.f32.mrf.mxu1 }
 0x341   : > { %v6137_v36 = vmul.f32 %v8197_v42, %v7636_v12  ;;  %v8199_v38 = vpop.eup %8198  ;;  %v5770_v19 = vpop.f32.mrf.mxu0 }
 0x342   : > { %v3801_v60 = vpop.xlane.xlu1 %3800  ;;  %v6136_v4 = vmul.f32 %v8199_v38, %v5502_v56 }
 0x343   : > { %6266 = vst.msk [vmem:[%s10017_s28 + $0x328] sm:$0xff] %vm6164_vm2, %v6137_v36  ;;  %8212 = vrcp.f32 %v3801_v60  ;;  %v3798_v53 = vpop.xlane.xlu0 %3797 }
 0x344   : > { %v8201_v41 = vpop.eup %8200  ;;  %6265 = vst.msk [vmem:[%s10017_s28 + $0x320] sm:$0xff] %vm6164_vm2, %v6136_v4  ;;  %8214 = vrcp.f32 %v3798_v53 }
 0x345   : > { %v6139_v50 = vmul.f32 %v8201_v41, %v7639_v33  ;;  %v8203_v62 = vpop.eup %8202  ;;  %v5879_v33 = vpop.f32.mrf.mxu1 }
 0x346   : > { %v3807_v22 = vpop.xlane.xlu1 %3806  ;;  %v6144_v13 = vmul.f32 %v8203_v62, %v5631_v23 }
 0x347   : > { %6268 = vst.msk [vmem:[%s10017_s28 + $0x338] sm:$0xff] %vm6164_vm2, %v6139_v50  ;;  %8216 = vrcp.f32 %v3807_v22  ;;  %v3804_v46 = vpop.xlane.xlu0 %3803  ;;  %v7720_v41 = vpop.f32.mrf.mxu1 }
 0x348   : > { %v8205_v52 = vpop.eup %8204  ;;  %6273 = vst.msk [vmem:[%s10017_s28 + $0x360] sm:$0xff] %vm6164_vm2, %v6144_v13  ;;  %8218 = vrcp.f32 %v3804_v46 }
 0x349   : > { %v6145_v54 = vmul.f32 %v8205_v52, %v7664_v49  ;;  %v8207_v51 = vpop.eup %8206 }
 0x34a   : > { %v3813_v20 = vpop.xlane.xlu1 %3812  ;;  %v6138_v34 = vmul.f32 %v8207_v51, %v5512_v30  ;;  %v5889_v30 = vpop.f32.mrf.mxu1 }
 0x34b   : > { %6274 = vst.msk [vmem:[%s10017_s28 + $0x368] sm:$0xff] %vm6164_vm2, %v6145_v54  ;;  %8220 = vrcp.f32 %v3813_v20  ;;  %v3810_v63 = vpop.xlane.xlu0 %3809 }
 0x34c   : > { %v8209_v32 = vpop.eup %8208  ;;  %6267 = vst.msk [vmem:[%s10017_s28 + $0x330] sm:$0xff] %vm6164_vm2, %v6138_v34  ;;  %8222 = vrcp.f32 %v3810_v63  ;;  %v7723_v52 = vpop.f32.mrf.mxu1 }
 0x34d   : > { %v6147_v31 = vmul.f32 %v8209_v32, %v7667_v25  ;;  %v8211_v5 = vpop.eup %8210 }
 0x34e   : > { %v3819_v15 = vpop.xlane.xlu1 %3818  ;;  %v6146_v48 = vmul.f32 %v8211_v5, %v5641_v27  ;;  %v5899_v51 = vpop.f32.mrf.mxu1 }
 0x34f   : > { %6276 = vst.msk [vmem:[%s10017_s28 + $0x378] sm:$0xff] %vm6164_vm2, %v6147_v31  ;;  %8224 = vrcp.f32 %v3819_v15  ;;  %v3816_v18 = vpop.xlane.xlu0 %3815 }
 0x350   : > { %v8213_v16 = vpop.eup %8212  ;;  %6275 = vst.msk [vmem:[%s10017_s28 + $0x370] sm:$0xff] %vm6164_vm2, %v6146_v48  ;;  %8226 = vrcp.f32 %v3816_v18 }
 0x351   : > { %v6149_v40 = vmul.f32 %v8213_v16, %v7686_v35  ;;  %v8215_v57 = vpop.eup %8214 }
 0x352   : > { %v3825_v47 = vpop.xlane.xlu1 %3824  ;;  %v6148_v61 = vmul.f32 %v8215_v57, %v5740_v29 }
 0x353   : > { %6278 = vst.msk [vmem:[%s10017_s28 + $0x388] sm:$0xff] %vm6164_vm2, %v6149_v40  ;;  %8228 = vrcp.f32 %v3825_v47  ;;  %v3822_v6 = vpop.xlane.xlu0 %3821 }
 0x354   : > { %v8217_v43 = vpop.eup %8216  ;;  %6277 = vst.msk [vmem:[%s10017_s28 + $0x380] sm:$0xff] %vm6164_vm2, %v6148_v61  ;;  %8230 = vrcp.f32 %v3822_v6 }
 0x355   : > { %v6151_v58 = vmul.f32 %v8217_v43, %v7689_v44  ;;  %v8219_v45 = vpop.eup %8218 }
 0x356   : > { %v3831_v24 = vpop.xlane.xlu1 %3830  ;;  %v6150_v21 = vmul.f32 %v8219_v45, %v5750_v28 }
 0x357   : > { %6280 = vst.msk [vmem:[%s10017_s28 + $0x398] sm:$0xff] %vm6164_vm2, %v6151_v58  ;;  %8232 = vrcp.f32 %v3831_v24  ;;  %v3828_v37 = vpop.xlane.xlu0 %3827 }
 0x358   : > { %v8221_v7 = vpop.eup %8220  ;;  %6279 = vst.msk [vmem:[%s10017_s28 + $0x390] sm:$0xff] %vm6164_vm2, %v6150_v21  ;;  %8234 = vrcp.f32 %v3828_v37 }
 0x359   : > { %v6153_v8 = vmul.f32 %v8221_v7, %v7692_v10  ;;  %v8223_v1 = vpop.eup %8222 }
 0x35a   : > { %v3837_v26 = vpop.xlane.xlu1 %3836  ;;  %v6152_v12 = vmul.f32 %v8223_v1, %v5760_v11 }
 0x35b   : > { %6282 = vst.msk [vmem:[%s10017_s28 + $0x3a8] sm:$0xff] %vm6164_vm2, %v6153_v8  ;;  %8236 = vrcp.f32 %v3837_v26  ;;  %v3834_v9 = vpop.xlane.xlu0 %3833 }
 0x35c   : > { %v8225_v39 = vpop.eup %8224  ;;  %6281 = vst.msk [vmem:[%s10017_s28 + $0x3a0] sm:$0xff] %vm6164_vm2, %v6152_v12  ;;  %8238 = vrcp.f32 %v3834_v9 }
 0x35d   : > { %v6155_v59 = vmul.f32 %v8225_v39, %v7695_v2  ;;  %v8227_v0 = vpop.eup %8226 }
 0x35e   : > { %v3843_v42 = vpop.xlane.xlu1 %3842  ;;  %v6154_v56 = vmul.f32 %v8227_v0, %v5770_v19 }
 0x35f   : > { %6284 = vst.msk [vmem:[%s10017_s28 + $0x3b8] sm:$0xff] %vm6164_vm2, %v6155_v59  ;;  %8240 = vrcp.f32 %v3843_v42  ;;  %v3840_v49 = vpop.xlane.xlu0 %3839 }
 0x360   : > { %v8229_v14 = vpop.eup %8228  ;;  %6283 = vst.msk [vmem:[%s10017_s28 + $0x3b0] sm:$0xff] %vm6164_vm2, %v6154_v56  ;;  %8242 = vrcp.f32 %v3840_v49 }
 0x361   : > { %v6157_v36 = vmul.f32 %v8229_v14, %v7714_v55  ;;  %v8231_v38 = vpop.eup %8230 }
 0x362   : > { %v6156_v60 = vmul.f32 %v8231_v38, %v5869_v17 }
 0x363   : > { %6286 = vst.msk [vmem:[%s10017_s28 + $0x3c8] sm:$0xff] %vm6164_vm2, %v6157_v36 }
 0x364   : > { %v8233_v4 = vpop.eup %8232  ;;  %6285 = vst.msk [vmem:[%s10017_s28 + $0x3c0] sm:$0xff] %vm6164_vm2, %v6156_v60 }
 0x365   : > { %v6159_v53 = vmul.f32 %v8233_v4, %v7717_v3  ;;  %v8235_v23 = vpop.eup %8234 }
 0x366   : > { %v6158_v50 = vmul.f32 %v8235_v23, %v5879_v33 }
 0x367   : > { %6288 = vst.msk [vmem:[%s10017_s28 + $0x3d8] sm:$0xff] %vm6164_vm2, %v6159_v53 }
 0x368   : > { %v8237_v62 = vpop.eup %8236  ;;  %6287 = vst.msk [vmem:[%s10017_s28 + $0x3d0] sm:$0xff] %vm6164_vm2, %v6158_v50 }
 0x369   : > { %v6161_v22 = vmul.f32 %v8237_v62, %v7720_v41  ;;  %v8239_v13 = vpop.eup %8238 }
 0x36a   : > { %v6160_v35 = vmul.f32 %v8239_v13, %v5889_v30 }
 0x36b   : > { %6290 = vst.msk [vmem:[%s10017_s28 + $0x3e8] sm:$0xff] %vm6164_vm2, %v6161_v22 }
 0x36c   : > { %v8241_v46 = vpop.eup %8240  ;;  %6289 = vst.msk [vmem:[%s10017_s28 + $0x3e0] sm:$0xff] %vm6164_vm2, %v6160_v35 }
 0x36d   : > { %v6163_v25 = vmul.f32 %v8241_v46, %v7723_v52  ;;  %v8243_v54 = vpop.eup %8242 }
 0x36e   : > { %v6162_v20 = vmul.f32 %v8243_v54, %v5899_v51 }
 0x36f   : > { %6292 = vst.msk [vmem:[%s10017_s28 + $0x3f8] sm:$0xff] %vm6164_vm2, %v6163_v25 }
 0x370   : > { %6291 = vst.msk [vmem:[%s10017_s28 + $0x3f0] sm:$0xff] %vm6164_vm2, %v6162_v20 }
 0x371 PF: > { %s13_s12 = sadd.s32 1, %s8250_s12  }
 0x372   : > { %p10_p4 = scmp.ge.s32.totalorder %s13_s12, 6  }
 0x374   :  { %12 = sbr.rel (!%p10_p4) target bundleno = 1 (0x1), region = 68 }

</bundles_post_ra>
